<compile_context>
chip_gen: v6e
topology: v6e:2x2x1
jax: 0.10.0
libtpu: 0.0.40
codegen_flags: <defaults>
</compile_context>

<pallas_src>
import functools

import jax
import jax.numpy as jnp
from jax.experimental import pallas as pl
from jax.experimental.pallas import tpu as pltpu


# ----------------------------------------------------------------------------
# Fused kernel: expand 1x1 + BN + ReLU6 -> depthwise 3x3 + BN + ReLU6
#               -> project 1x1 + BN + ReLU6 (+ residual)
# ----------------------------------------------------------------------------
def _make_fused_kernel(*, H, W, Wo, th, stride, c_in, hidden, c_out,
                       has_expand, use_res, cdt, hdt):
    s = stride
    rows_mid = s * th          # input rows covered by the "mid" block
    rows_in = rows_mid + 2     # + top/bottom halo rows

    def kernel(*refs):
        if has_expand:
            (x_top_ref, x_mid_ref, x_bot_ref, w1_ref, b1_ref,
             wd_ref, bd_ref, w2_ref, b2_ref, o_ref, band_ref, h_ref) = refs
        else:
            (x_top_ref, x_mid_ref, x_bot_ref,
             wd_ref, bd_ref, w2_ref, b2_ref, o_ref, band_ref, h_ref) = refs
            w1_ref = b1_ref = None

        t = pl.program_id(1)

        # ---- stage 1: ONE expand matmul over the whole (halo+mid+halo) row band ----
        band_ref[pl.ds(0, 1)] = x_top_ref[0]                  # (1, W, c_in)
        band_ref[pl.ds(1, rows_mid)] = x_mid_ref[0]           # (rows_mid, W, c_in)
        band_ref[pl.ds(rows_mid + 1, 1)] = x_bot_ref[0]       # (1, W, c_in)
        flat = band_ref[...].reshape(rows_in * W, c_in)

        if has_expand:
            h2 = jnp.dot(flat.astype(cdt), w1_ref[...],
                         preferred_element_type=jnp.float32)
            h2 = jnp.clip(h2 + b1_ref[...], 0.0, 6.0)
        else:                                                  # expand_ratio == 1
            h2 = flat.astype(jnp.float32)

        # Unified halo / ragged-row mask: any band row that lies outside the real
        # image must be EXACT zero in hidden space (depthwise zero padding), which
        # a zero input row would not give once the folded BN bias + clip is applied.
        fid = jax.lax.broadcasted_iota(jnp.int32, (rows_in * W, 1), 0)
        lo = jnp.where(t == 0, W, 0)                  # band row 0 == image row -1
        hi = (H + 1) * W - rows_mid * W * t           # first flat index with row >= H
        h2 = jnp.where((fid >= lo) & (fid < hi), h2, 0.0)

        zcol = jnp.zeros((rows_in, 1, hidden), hdt)
        h_ref[:, pl.ds(0, 1), :] = zcol               # left conv-padding column
        h_ref[:, pl.ds(W + 1, 1), :] = zcol           # right conv-padding column
        h_ref[:, pl.ds(1, W), :] = h2.reshape(rows_in, W, hidden).astype(hdt)

        # ---- stage 2: depthwise 3x3 (BN scale folded into taps) + ReLU6, f32 acc ----
        acc = None
        for di in range(3):
            for dj in range(3):
                if s == 1:
                    patch = h_ref[pl.ds(di, th), pl.ds(dj, Wo), :]
                else:   # stride-2 output computed directly (no overcompute + slicing)
                    patch = h_ref[pl.ds(di, th, s), pl.ds(dj, Wo, s), :]
                tap = wd_ref[pl.ds(di * 3 + dj, 1), :]         # (1, hidden) f32
                term = patch * tap                             # bf16*f32 -> f32
                acc = term if acc is None else acc + term
        acc = jnp.clip(acc + bd_ref[...], 0.0, 6.0)            # (th, Wo, hidden) f32

        # ---- stage 3: project 1x1 + BN + ReLU6 (+ residual), lane-dense store ----
        p = jnp.dot(acc.reshape(th * Wo, hidden).astype(cdt), w2_ref[...],
                    preferred_element_type=jnp.float32)
        y = jnp.clip(p + b2_ref[...], 0.0, 6.0)                # (th*Wo, c_out)
        if use_res:                                            # stride==1, c_in==c_out
            y = y + x_mid_ref[0].reshape(th * W, c_in).astype(jnp.float32)
        o_ref[...] = y.reshape(1, th * Wo, c_out).astype(o_ref.dtype)

    return kernel


# ----------------------------------------------------------------------------
# Tiling helpers
# ----------------------------------------------------------------------------
def _vmem_bill(th, *, stride, W, Wo, c_in, hidden, c_out, has_expand,
               in_size, h_size, c_size):
    """Approximate per-grid-step VMEM bytes (double-buffered I/O + scratch + temps)."""
    rows_mid = stride * th
    rows_in = rows_mid + 2
    b = 2 * (rows_mid * W * c_in + 2 * W * c_in) * in_size    # pipelined inputs
    b += 2 * th * Wo * c_out * 4                              # pipelined output
    wbytes = 9 * hidden * 4 + hidden * 4 + hidden * c_out * c_size + c_out * 4
    if has_expand:
        wbytes += c_in * hidden * c_size + hidden * 4
    b += 2 * wbytes                                           # weights (2 buffers)
    b += rows_in * W * c_in * in_size                         # band scratch
    b += rows_in * (W + 2) * hidden * h_size                  # hidden scratch
    b += rows_in * W * hidden * 4                             # expanded f32 temp
    b += th * Wo * hidden * 4                                 # depthwise acc
    b += 2 * th * Wo * c_out * 4                              # projection temps
    return b


def _pick_row_tile(Ho, Wo, W, row_tile_pixels, bill, budget):
    """Largest output-row tile with ~row_tile_pixels matmul rows that fits budget.
    Prefers an exact divisor of Ho; otherwise accepts ragged tiling (in-kernel mask)."""
    cap = max(1, min(Ho, row_tile_pixels // max(W, 1)))

    def ok(th):
        T = -(-Ho // th)
        if T > 1 and (th * Wo) % 8 != 0:      # keep output block sublane-aligned
            return False
        return bill(th) <= budget

    exact = next((c for c in range(cap, 0, -1) if Ho % c == 0 and ok(c)), None)
    loose = next((c for c in range(cap, 0, -1) if ok(c)), None)
    if loose is None:
        return exact if exact is not None else 1
    if exact is not None and 3 * exact >= 2 * loose:
        return exact
    return loose


# ----------------------------------------------------------------------------
# NHWC-native forward (keep the whole network in NHWC to avoid per-block transposes)
# ----------------------------------------------------------------------------
def inverted_block_forward_nhwc(x_nhwc, params, *, ch_in, ch_out, expand_ratio,
                                stride, row_tile_pixels=2048,
                                compute_dtype=jnp.bfloat16,
                                input_dtype=jnp.bfloat16,
                                hidden_dtype=jnp.bfloat16,
                                out_dtype=jnp.float32,
                                vmem_budget_bytes=40 << 20):
    assert stride in (1, 2)
    N, H, W, C = x_nhwc.shape
    assert C == ch_in
    hidden = ch_in * expand_ratio
    has_expand = expand_ratio != 1
    use_res = (stride == 1) and (ch_in == ch_out)
    cdt, hdt = compute_dtype, hidden_dtype

    Ho = (H - 1) // stride + 1
    Wo = (W - 1) // stride + 1

    in_size = jnp.dtype(input_dtype).itemsize
    h_size = jnp.dtype(hidden_dtype).itemsize
    c_size = jnp.dtype(compute_dtype).itemsize
    bill = functools.partial(_vmem_bill, stride=stride, W=W, Wo=Wo, c_in=ch_in,
                             hidden=hidden, c_out=ch_out, has_expand=has_expand,
                             in_size=in_size, h_size=h_size, c_size=c_size)
    th = _pick_row_tile(Ho, Wo, W, row_tile_pixels, bill, vmem_budget_bytes)
    T = pl.cdiv(Ho, th)
    Ho_pad = T * th
    rows_mid = stride * th
    H_pad = rows_mid * T                     # rows of x consumed by the mid blocks

    x = x_nhwc.astype(input_dtype)
    if H_pad > H:                            # only when the row tiling is ragged
        x = jnp.pad(x, ((0, 0), (0, H_pad - H), (0, 0), (0, 0)))

    # Fold inference-mode BN: scale -> conv weights, bias -> fused epilogue.
    wd_f = (params["wd"] * params["sd"][None, None, :]).reshape(9, hidden)
    wd_f = wd_f.astype(jnp.float32)
    bd = params["bd"].reshape(1, 1, hidden).astype(jnp.float32)
    w2_f = (params["w2"] * params["s2"][None, :]).astype(cdt)
    b2 = params["b2"].reshape(1, ch_out).astype(jnp.float32)

    x_top_spec = pl.BlockSpec(
        (1, 1, W, ch_in),
        lambda n, t: (n, jnp.maximum(rows_mid * t - 1, 0), 0, 0))
    x_mid_spec = pl.BlockSpec((1, rows_mid, W, ch_in), lambda n, t: (n, t, 0, 0))
    x_bot_spec = pl.BlockSpec(
        (1, 1, W, ch_in),
        lambda n, t: (n, jnp.minimum(rows_mid * (t + 1), H_pad - 1), 0, 0))

    args = [x, x, x]
    in_specs = [x_top_spec, x_mid_spec, x_bot_spec]
    if has_expand:
        w1_f = (params["w1"] * params["s1"][None, :]).astype(cdt)
        b1 = params["b1"].reshape(1, hidden).astype(jnp.float32)
        args += [w1_f, b1]
        in_specs += [pl.BlockSpec((ch_in, hidden), lambda n, t: (0, 0)),
                     pl.BlockSpec((1, hidden), lambda n, t: (0, 0))]
    args += [wd_f, bd, w2_f, b2]
    in_specs += [pl.BlockSpec((9, hidden), lambda n, t: (0, 0)),
                 pl.BlockSpec((1, 1, hidden), lambda n, t: (0, 0, 0)),
                 pl.BlockSpec((hidden, ch_out), lambda n, t: (0, 0)),
                 pl.BlockSpec((1, ch_out), lambda n, t: (0, 0))]

    kernel = _make_fused_kernel(
        H=H, W=W, Wo=Wo, th=th, stride=stride, c_in=ch_in, hidden=hidden,
        c_out=ch_out, has_expand=has_expand, use_res=use_res, cdt=cdt, hdt=hdt)

    flops = 2 * N * Ho * Wo * hidden * (9 + ch_out)
    if has_expand:
        flops += 2 * N * H * W * ch_in * hidden
    bytes_accessed = (x.size * in_size
                      + N * Ho_pad * Wo * ch_out * jnp.dtype(out_dtype).itemsize
                      + 9 * hidden * 4 + hidden * 4
                      + hidden * ch_out * c_size + ch_out * 4
                      + (ch_in * hidden * c_size + hidden * 4 if has_expand else 0))
    vmem_limit = int(min(64 << 20, max(32 << 20, int(1.25 * bill(th)))))

    out = pl.pallas_call(
        kernel,
        out_shape=jax.ShapeDtypeStruct((N, Ho_pad * Wo, ch_out), out_dtype),
        grid=(N, T),
        in_specs=in_specs,
        out_specs=pl.BlockSpec((1, th * Wo, ch_out), lambda n, t: (n, t, 0)),
        scratch_shapes=[pltpu.VMEM((rows_mid + 2, W, ch_in), input_dtype),
                        pltpu.VMEM((rows_mid + 2, W + 2, hidden), hidden_dtype)],
        compiler_params=pltpu.CompilerParams(
            dimension_semantics=("parallel", "parallel"),
            vmem_limit_bytes=vmem_limit),
        cost_estimate=pl.CostEstimate(flops=int(flops), transcendentals=0,
                                      bytes_accessed=int(bytes_accessed)),
    )(*args)

    out = out.reshape(N, Ho_pad, Wo, ch_out)         # free, contiguous reshape
    if Ho_pad > Ho:
        out = out[:, :Ho]
    return out


# NCHW wrapper (matches the PyTorch module boundary; transpose only at the edge).
def inverted_block_forward(x_nchw, params, **kw):
    x_nhwc = jnp.transpose(x_nchw, (0, 2, 3, 1))
    y = inverted_block_forward_nhwc(x_nhwc, params, **kw)
    return jnp.transpose(y, (0, 3, 1, 2))


# ----------------------------------------------------------------------------
# Parameters (inference-mode BN folded to per-channel scale/bias)
# ----------------------------------------------------------------------------
def _fold_bn(gamma, beta, mean, var, eps=1e-5):
    scale = gamma / jnp.sqrt(var + eps)
    bias = beta - mean * scale
    return scale.astype(jnp.float32), bias.astype(jnp.float32)


def init_inverted_block(key, ch_in, ch_out, expand_ratio):
    hidden = ch_in * expand_ratio
    keys = jax.random.split(key, 16)
    p = {}
    if expand_ratio != 1:
        p["w1"] = 0.1 * jax.random.normal(keys[0], (ch_in, hidden), jnp.float32)
        p["s1"], p["b1"] = _fold_bn(
            1.0 + 0.1 * jax.random.normal(keys[1], (hidden,)),
            0.1 * jax.random.normal(keys[2], (hidden,)),
            0.05 * jax.random.normal(keys[3], (hidden,)),
            jnp.abs(1.0 + 0.1 * jax.random.normal(keys[4], (hidden,))),
        )
    p["wd"] = 0.2 * jax.random.normal(keys[5], (3, 3, hidden), jnp.float32)
    p["sd"], p["bd"] = _fold_bn(
        1.0 + 0.1 * jax.random.normal(keys[6], (hidden,)),
        0.1 * jax.random.normal(keys[7], (hidden,)),
        0.05 * jax.random.normal(keys[8], (hidden,)),
        jnp.abs(1.0 + 0.1 * jax.random.normal(keys[9], (hidden,))),
    )
    p["w2"] = 0.1 * jax.random.normal(keys[10], (hidden, ch_out), jnp.float32)
    p["s2"], p["b2"] = _fold_bn(
        1.0 + 0.1 * jax.random.normal(keys[11], (ch_out,)),
        0.1 * jax.random.normal(keys[12], (ch_out,)),
        0.05 * jax.random.normal(keys[13], (ch_out,)),
        jnp.abs(1.0 + 0.1 * jax.random.normal(keys[14], (ch_out,))),
    )
    return p


# ----------------------------------------------------------------------------
# Pure-JAX reference.  Defaults == exact float32 module math (BN folded).
# Passing bf16 input/compute/hidden dtypes mirrors the kernel's numerics.
# ----------------------------------------------------------------------------
def ref_forward(x_nchw, params, *, ch_in, ch_out, expand_ratio, stride,
                compute_dtype=jnp.float32, input_dtype=jnp.float32,
                hidden_dtype=jnp.float32):
    hidden = ch_in * expand_ratio
    use_res = (stride == 1) and (ch_in == ch_out)
    cdt = compute_dtype
    hi = jax.lax.Precision.HIGHEST
    x = jnp.transpose(x_nchw, (0, 2, 3, 1)).astype(jnp.float32)      # NHWC
    xq = x.astype(input_dtype).astype(jnp.float32)                   # kernel input cast
    N, H, W, _ = x.shape

    y = xq
    if expand_ratio != 1:
        w1f = (params["w1"] * params["s1"][None, :]).astype(cdt)
        h = jnp.dot(y.reshape(-1, ch_in).astype(cdt), w1f,
                    precision=hi, preferred_element_type=jnp.float32)
        h = jnp.clip(h + params["b1"][None, :], 0.0, 6.0)
        y = h.reshape(N, H, W, hidden)
    y = y.astype(hidden_dtype).astype(jnp.float32)                   # scratch dtype

    wd_f = (params["wd"] * params["sd"][None, None, :]).astype(jnp.float32)
    y = jax.lax.conv_general_dilated(
        y, wd_f.reshape(3, 3, 1, hidden),
        window_strides=(stride, stride), padding=((1, 1), (1, 1)),
        feature_group_count=hidden, precision=hi,
        dimension_numbers=("NHWC", "HWIO", "NHWC"))
    y = jnp.clip(y + params["bd"][None, None, None, :], 0.0, 6.0)
    _, Ho, Wo, _ = y.shape

    w2f = (params["w2"] * params["s2"][None, :]).astype(cdt)
    p = jnp.dot(y.reshape(-1, hidden).astype(cdt), w2f,
                precision=hi, preferred_element_type=jnp.float32)
    p = jnp.clip(p + params["b2"][None, :], 0.0, 6.0)
    y = p.reshape(N, Ho, Wo, ch_out)
    if use_res:
        y = y + xq
    return jnp.transpose(y, (0, 3, 1, 2))


if __name__ == "__main__":
    ch_in, ch_out, expand_ratio, stride = 4, 4, 4, 1
    N, H, W = 2, 16, 16

    key = jax.random.PRNGKey(0)
    k_x, k_p = jax.random.split(key)
    x = jax.random.normal(k_x, (N, ch_in, H, W), jnp.float32)   # NCHW like PyTorch
    params = init_inverted_block(k_p, ch_in, ch_out, expand_ratio)

    fwd = functools.partial(inverted_block_forward, ch_in=ch_in, ch_out=ch_out,
                            expand_ratio=expand_ratio, stride=stride)
    out = jax.block_until_ready(jax.jit(fwd)(x, params))

    # Check 1: reference mirroring the kernel numerics (bf16 input / matmul operands /
    # hidden scratch, f32 accumulation) -> tight tolerance.
    ref_mirror = ref_forward(x, params, ch_in=ch_in, ch_out=ch_out,
                             expand_ratio=expand_ratio, stride=stride,
                             compute_dtype=jnp.bfloat16,
                             input_dtype=jnp.bfloat16,
                             hidden_dtype=jnp.bfloat16)
    # Check 2: exact float32 module semantics (loose tolerance documents the bf16
    # compute contract; pass float32 dtypes to the wrapper for full-precision mode).
    ref_f32 = ref_forward(x, params, ch_in=ch_in, ch_out=ch_out,
                          expand_ratio=expand_ratio, stride=stride)

    assert out.shape == ref_f32.shape, (out.shape, ref_f32.shape)
    err1 = float(jnp.max(jnp.abs(out - ref_mirror)))
    err2 = float(jnp.max(jnp.abs(out - ref_f32)))
    assert jnp.allclose(out, ref_mirror, atol=3e-2, rtol=3e-2), err1
    assert jnp.allclose(out, ref_f32, atol=8e-2, rtol=8e-2), err2

    print("KERNEL_OK")
</pallas_src>

<mosaic_0001>
module attributes {stable_mosaic.version = 11 : i64} {
  func.func @kernel(%arg0: i32, %arg1: i32, %arg2: memref<1x1x16x4xbf16, #tpu.memory_space<vmem>>, %arg3: memref<1x16x16x4xbf16, #tpu.memory_space<vmem>>, %arg4: memref<1x1x16x4xbf16, #tpu.memory_space<vmem>>, %arg5: memref<4x16xbf16, #tpu.memory_space<vmem>>, %arg6: memref<1x16xf32, #tpu.memory_space<vmem>>, %arg7: memref<9x16xf32, #tpu.memory_space<vmem>>, %arg8: memref<1x1x16xf32, #tpu.memory_space<vmem>>, %arg9: memref<16x4xbf16, #tpu.memory_space<vmem>>, %arg10: memref<1x4xf32, #tpu.memory_space<vmem>>, %arg11: memref<1x256x4xf32, #tpu.memory_space<vmem>>, %arg12: memref<18x16x4xbf16, #tpu.memory_space<vmem>>, %arg13: memref<18x18x16xbf16, #tpu.memory_space<vmem>>) attributes {dimension_semantics = [#tpu.dimension_semantics<parallel>, #tpu.dimension_semantics<parallel>], iteration_bounds = array<i64: 2, 1>, scalar_prefetch = 0 : i64, scratch_operands = 2 : i64, tpu.core_type = #tpu.core_type<tc>, window_params = [{transform_indices = @transform_0, window_bounds = array<i64: 1, 1, 16, 4>}, {transform_indices = @transform_1, window_bounds = array<i64: 1, 16, 16, 4>}, {transform_indices = @transform_2, window_bounds = array<i64: 1, 1, 16, 4>}, {pipeline_mode = #tpu.pipeline_mode<synchronous>, transform_indices = @transform_3, window_bounds = array<i64: 4, 16>}, {pipeline_mode = #tpu.pipeline_mode<synchronous>, transform_indices = @transform_4, window_bounds = array<i64: 1, 16>}, {pipeline_mode = #tpu.pipeline_mode<synchronous>, transform_indices = @transform_5, window_bounds = array<i64: 9, 16>}, {pipeline_mode = #tpu.pipeline_mode<synchronous>, transform_indices = @transform_6, window_bounds = array<i64: 1, 1, 16>}, {pipeline_mode = #tpu.pipeline_mode<synchronous>, transform_indices = @transform_7, window_bounds = array<i64: 16, 4>}, {pipeline_mode = #tpu.pipeline_mode<synchronous>, transform_indices = @transform_8, window_bounds = array<i64: 1, 4>}, {transform_indices = @transform_9, window_bounds = array<i64: 1, 256, 4>}]} {
    %c0 = arith.constant 0 : index
    %c0_0 = arith.constant 0 : index
    %c0_1 = arith.constant 0 : index
    %c0_2 = arith.constant 0 : index
    %0 = vector.load %arg2[%c0, %c0_0, %c0_1, %c0_2] : memref<1x1x16x4xbf16, #tpu.memory_space<vmem>>, vector<1x1x16x4xbf16>
    %1 = vector.shape_cast %0 : vector<1x1x16x4xbf16> to vector<1x16x4xbf16>
    %c0_3 = arith.constant 0 : index
    %c0_4 = arith.constant 0 : index
    %c0_5 = arith.constant 0 : index
    %2 = vector.load %arg12[%c0_3, %c0_4, %c0_5] : memref<18x16x4xbf16, #tpu.memory_space<vmem>>, vector<1x16x4xbf16>
    tpu.vector_store %arg12[%c0_3, %c0_4, %c0_5], %1 {strides = array<i32>} : memref<18x16x4xbf16, #tpu.memory_space<vmem>>, vector<1x16x4xbf16>,
    %c0_6 = arith.constant 0 : index
    %c0_7 = arith.constant 0 : index
    %c0_8 = arith.constant 0 : index
    %c0_9 = arith.constant 0 : index
    %3 = vector.load %arg3[%c0_6, %c0_7, %c0_8, %c0_9] : memref<1x16x16x4xbf16, #tpu.memory_space<vmem>>, vector<1x16x16x4xbf16>
    %4 = vector.shape_cast %3 : vector<1x16x16x4xbf16> to vector<16x16x4xbf16>
    %c1 = arith.constant 1 : index
    %c0_10 = arith.constant 0 : index
    %c0_11 = arith.constant 0 : index
    %5 = vector.load %arg12[%c1, %c0_10, %c0_11] : memref<18x16x4xbf16, #tpu.memory_space<vmem>>, vector<16x16x4xbf16>
    tpu.vector_store %arg12[%c1, %c0_10, %c0_11], %4 {strides = array<i32>} : memref<18x16x4xbf16, #tpu.memory_space<vmem>>, vector<16x16x4xbf16>,
    %c0_12 = arith.constant 0 : index
    %c0_13 = arith.constant 0 : index
    %c0_14 = arith.constant 0 : index
    %c0_15 = arith.constant 0 : index
    %6 = vector.load %arg4[%c0_12, %c0_13, %c0_14, %c0_15] : memref<1x1x16x4xbf16, #tpu.memory_space<vmem>>, vector<1x1x16x4xbf16>
    %7 = vector.shape_cast %6 : vector<1x1x16x4xbf16> to vector<1x16x4xbf16>
    %c17 = arith.constant 17 : index
    %c0_16 = arith.constant 0 : index
    %c0_17 = arith.constant 0 : index
    %8 = vector.load %arg12[%c17, %c0_16, %c0_17] : memref<18x16x4xbf16, #tpu.memory_space<vmem>>, vector<1x16x4xbf16>
    tpu.vector_store %arg12[%c17, %c0_16, %c0_17], %7 {strides = array<i32>} : memref<18x16x4xbf16, #tpu.memory_space<vmem>>, vector<1x16x4xbf16>,
    %c0_18 = arith.constant 0 : index
    %c0_19 = arith.constant 0 : index
    %c0_20 = arith.constant 0 : index
    %9 = vector.load %arg12[%c0_18, %c0_19, %c0_20] : memref<18x16x4xbf16, #tpu.memory_space<vmem>>, vector<18x16x4xbf16>
    %10 = vector.shape_cast %9 : vector<18x16x4xbf16> to vector<288x4xbf16>
    %c0_21 = arith.constant 0 : index
    %c0_22 = arith.constant 0 : index
    %11 = vector.load %arg5[%c0_21, %c0_22] : memref<4x16xbf16, #tpu.memory_space<vmem>>, vector<4x16xbf16>
    %cst = arith.constant dense<0.000000e+00> : vector<288x16xf32>
    %12 = tpu.matmul %10, %11, %cst {dimension_numbers = #tpu.dot_dimension_numbers<[1], [0], [0], [1], [0, 0, 1, 1], [], []>} : vector<288x4xbf16>, vector<4x16xbf16>, vector<288x16xf32> -> vector<288x16xf32>
    %c0_23 = arith.constant 0 : index
    %c0_24 = arith.constant 0 : index
    %13 = vector.load %arg6[%c0_23, %c0_24] : memref<1x16xf32, #tpu.memory_space<vmem>>, vector<1x16xf32>
    %14 = vector.broadcast %13 : vector<1x16xf32> to vector<288x16xf32>
    %15 = arith.addf %12, %14 : vector<288x16xf32>
    %cst_25 = arith.constant 0.000000e+00 : f32
    %cst_26 = arith.constant 6.000000e+00 : f32
    %16 = vector.broadcast %cst_25 : f32 to vector<288x16xf32>
    %17 = arith.maximumf %16, %15 : vector<288x16xf32>
    %18 = vector.broadcast %cst_26 : f32 to vector<288x16xf32>
    %19 = arith.minimumf %18, %17 : vector<288x16xf32>
    %20 = tpu.iota {dimensions = array<i32: 0>} : vector<288x1xi32>
    %c0_i32 = arith.constant 0 : i32
    %21 = arith.cmpi eq, %arg1, %c0_i32 : i32
    %c16_i32 = arith.constant 16 : i32
    %c0_i32_27 = arith.constant 0 : i32
    %22 = arith.select %21, %c16_i32, %c0_i32_27 : i32
    %c256_i32 = arith.constant 256 : i32
    %23 = arith.muli %c256_i32, %arg1 : i32
    %c272_i32 = arith.constant 272 : i32
    %24 = arith.subi %c272_i32, %23 : i32
    %25 = vector.broadcast %22 : i32 to vector<288x1xi32>
    %26 = arith.cmpi sge, %20, %25 : vector<288x1xi32>
    %27 = vector.broadcast %24 : i32 to vector<288x1xi32>
    %28 = arith.cmpi slt, %20, %27 : vector<288x1xi32>
    %29 = arith.andi %26, %28 : vector<288x1xi1>
    %cst_28 = arith.constant 0.000000e+00 : f32
    %30 = vector.shape_cast %29 : vector<288x1xi1> to vector<288x1xi1>
    %31 = vector.broadcast %30 : vector<288x1xi1> to vector<288x16xi1>
    %32 = vector.broadcast %cst_28 : f32 to vector<288x16xf32>
    %33 = arith.select %31, %19, %32 : vector<288x16xi1>, vector<288x16xf32>
    %cst_29 = arith.constant 0.000000e+00 : bf16
    %34 = vector.broadcast %cst_29 : bf16 to vector<18x1x16xbf16>
    %c0_30 = arith.constant 0 : index
    %c0_31 = arith.constant 0 : index
    %c0_32 = arith.constant 0 : index
    %35 = vector.load %arg13[%c0_30, %c0_31, %c0_32] : memref<18x18x16xbf16, #tpu.memory_space<vmem>>, vector<18x1x16xbf16>
    tpu.vector_store %arg13[%c0_30, %c0_31, %c0_32], %34 {strides = array<i32>} : memref<18x18x16xbf16, #tpu.memory_space<vmem>>, vector<18x1x16xbf16>,
    %c0_33 = arith.constant 0 : index
    %c17_34 = arith.constant 17 : index
    %c0_35 = arith.constant 0 : index
    %36 = vector.load %arg13[%c0_33, %c17_34, %c0_35] : memref<18x18x16xbf16, #tpu.memory_space<vmem>>, vector<18x1x16xbf16>
    tpu.vector_store %arg13[%c0_33, %c17_34, %c0_35], %34 {strides = array<i32>} : memref<18x18x16xbf16, #tpu.memory_space<vmem>>, vector<18x1x16xbf16>,
    %37 = vector.shape_cast %33 : vector<288x16xf32> to vector<18x16x16xf32>
    %38 = arith.truncf %37 : vector<18x16x16xf32> to vector<18x16x16xbf16>
    %c0_36 = arith.constant 0 : index
    %c1_37 = arith.constant 1 : index
    %c0_38 = arith.constant 0 : index
    %39 = vector.load %arg13[%c0_36, %c1_37, %c0_38] : memref<18x18x16xbf16, #tpu.memory_space<vmem>>, vector<18x16x16xbf16>
    tpu.vector_store %arg13[%c0_36, %c1_37, %c0_38], %38 {strides = array<i32>} : memref<18x18x16xbf16, #tpu.memory_space<vmem>>, vector<18x16x16xbf16>,
    %c0_39 = arith.constant 0 : index
    %c0_40 = arith.constant 0 : index
    %c0_41 = arith.constant 0 : index
    %40 = vector.load %arg13[%c0_39, %c0_40, %c0_41] : memref<18x18x16xbf16, #tpu.memory_space<vmem>>, vector<16x16x16xbf16>
    %c0_42 = arith.constant 0 : index
    %c0_43 = arith.constant 0 : index
    %41 = vector.load %arg7[%c0_42, %c0_43] : memref<9x16xf32, #tpu.memory_space<vmem>>, vector<1x16xf32>
    %42 = arith.extf %40 : vector<16x16x16xbf16> to vector<16x16x16xf32>
    %43 = vector.shape_cast %41 : vector<1x16xf32> to vector<1x1x16xf32>
    %44 = vector.broadcast %43 : vector<1x1x16xf32> to vector<16x16x16xf32>
    %45 = arith.mulf %42, %44 : vector<16x16x16xf32>
    %c0_44 = arith.constant 0 : index
    %c1_45 = arith.constant 1 : index
    %c0_46 = arith.constant 0 : index
    %46 = vector.load %arg13[%c0_44, %c1_45, %c0_46] : memref<18x18x16xbf16, #tpu.memory_space<vmem>>, vector<16x16x16xbf16>
    %c1_47 = arith.constant 1 : index
    %c0_48 = arith.constant 0 : index
    %47 = vector.load %arg7[%c1_47, %c0_48] : memref<9x16xf32, #tpu.memory_space<vmem>>, vector<1x16xf32>
    %48 = arith.extf %46 : vector<16x16x16xbf16> to vector<16x16x16xf32>
    %49 = vector.shape_cast %47 : vector<1x16xf32> to vector<1x1x16xf32>
    %50 = vector.broadcast %49 : vector<1x1x16xf32> to vector<16x16x16xf32>
    %51 = arith.mulf %48, %50 : vector<16x16x16xf32>
    %52 = arith.addf %45, %51 : vector<16x16x16xf32>
    %c0_49 = arith.constant 0 : index
    %c2 = arith.constant 2 : index
    %c0_50 = arith.constant 0 : index
    %53 = vector.load %arg13[%c0_49, %c2, %c0_50] : memref<18x18x16xbf16, #tpu.memory_space<vmem>>, vector<16x16x16xbf16>
    %c2_51 = arith.constant 2 : index
    %c0_52 = arith.constant 0 : index
    %54 = vector.load %arg7[%c2_51, %c0_52] : memref<9x16xf32, #tpu.memory_space<vmem>>, vector<1x16xf32>
    %55 = arith.extf %53 : vector<16x16x16xbf16> to vector<16x16x16xf32>
    %56 = vector.shape_cast %54 : vector<1x16xf32> to vector<1x1x16xf32>
    %57 = vector.broadcast %56 : vector<1x1x16xf32> to vector<16x16x16xf32>
    %58 = arith.mulf %55, %57 : vector<16x16x16xf32>
    %59 = arith.addf %52, %58 : vector<16x16x16xf32>
    %c1_53 = arith.constant 1 : index
    %c0_54 = arith.constant 0 : index
    %c0_55 = arith.constant 0 : index
    %60 = vector.load %arg13[%c1_53, %c0_54, %c0_55] : memref<18x18x16xbf16, #tpu.memory_space<vmem>>, vector<16x16x16xbf16>
    %c3 = arith.constant 3 : index
    %c0_56 = arith.constant 0 : index
    %61 = vector.load %arg7[%c3, %c0_56] : memref<9x16xf32, #tpu.memory_space<vmem>>, vector<1x16xf32>
    %62 = arith.extf %60 : vector<16x16x16xbf16> to vector<16x16x16xf32>
    %63 = vector.shape_cast %61 : vector<1x16xf32> to vector<1x1x16xf32>
    %64 = vector.broadcast %63 : vector<1x1x16xf32> to vector<16x16x16xf32>
    %65 = arith.mulf %62, %64 : vector<16x16x16xf32>
    %66 = arith.addf %59, %65 : vector<16x16x16xf32>
    %c1_57 = arith.constant 1 : index
    %c1_58 = arith.constant 1 : index
    %c0_59 = arith.constant 0 : index
    %67 = vector.load %arg13[%c1_57, %c1_58, %c0_59] : memref<18x18x16xbf16, #tpu.memory_space<vmem>>, vector<16x16x16xbf16>
    %c4 = arith.constant 4 : index
    %c0_60 = arith.constant 0 : index
    %68 = vector.load %arg7[%c4, %c0_60] : memref<9x16xf32, #tpu.memory_space<vmem>>, vector<1x16xf32>
    %69 = arith.extf %67 : vector<16x16x16xbf16> to vector<16x16x16xf32>
    %70 = vector.shape_cast %68 : vector<1x16xf32> to vector<1x1x16xf32>
    %71 = vector.broadcast %70 : vector<1x1x16xf32> to vector<16x16x16xf32>
    %72 = arith.mulf %69, %71 : vector<16x16x16xf32>
    %73 = arith.addf %66, %72 : vector<16x16x16xf32>
    %c1_61 = arith.constant 1 : index
    %c2_62 = arith.constant 2 : index
    %c0_63 = arith.constant 0 : index
    %74 = vector.load %arg13[%c1_61, %c2_62, %c0_63] : memref<18x18x16xbf16, #tpu.memory_space<vmem>>, vector<16x16x16xbf16>
    %c5 = arith.constant 5 : index
    %c0_64 = arith.constant 0 : index
    %75 = vector.load %arg7[%c5, %c0_64] : memref<9x16xf32, #tpu.memory_space<vmem>>, vector<1x16xf32>
    %76 = arith.extf %74 : vector<16x16x16xbf16> to vector<16x16x16xf32>
    %77 = vector.shape_cast %75 : vector<1x16xf32> to vector<1x1x16xf32>
    %78 = vector.broadcast %77 : vector<1x1x16xf32> to vector<16x16x16xf32>
    %79 = arith.mulf %76, %78 : vector<16x16x16xf32>
    %80 = arith.addf %73, %79 : vector<16x16x16xf32>
    %c2_65 = arith.constant 2 : index
    %c0_66 = arith.constant 0 : index
    %c0_67 = arith.constant 0 : index
    %81 = vector.load %arg13[%c2_65, %c0_66, %c0_67] : memref<18x18x16xbf16, #tpu.memory_space<vmem>>, vector<16x16x16xbf16>
    %c6 = arith.constant 6 : index
    %c0_68 = arith.constant 0 : index
    %82 = vector.load %arg7[%c6, %c0_68] : memref<9x16xf32, #tpu.memory_space<vmem>>, vector<1x16xf32>
    %83 = arith.extf %81 : vector<16x16x16xbf16> to vector<16x16x16xf32>
    %84 = vector.shape_cast %82 : vector<1x16xf32> to vector<1x1x16xf32>
    %85 = vector.broadcast %84 : vector<1x1x16xf32> to vector<16x16x16xf32>
    %86 = arith.mulf %83, %85 : vector<16x16x16xf32>
    %87 = arith.addf %80, %86 : vector<16x16x16xf32>
    %c2_69 = arith.constant 2 : index
    %c1_70 = arith.constant 1 : index
    %c0_71 = arith.constant 0 : index
    %88 = vector.load %arg13[%c2_69, %c1_70, %c0_71] : memref<18x18x16xbf16, #tpu.memory_space<vmem>>, vector<16x16x16xbf16>
    %c7 = arith.constant 7 : index
    %c0_72 = arith.constant 0 : index
    %89 = vector.load %arg7[%c7, %c0_72] : memref<9x16xf32, #tpu.memory_space<vmem>>, vector<1x16xf32>
    %90 = arith.extf %88 : vector<16x16x16xbf16> to vector<16x16x16xf32>
    %91 = vector.shape_cast %89 : vector<1x16xf32> to vector<1x1x16xf32>
    %92 = vector.broadcast %91 : vector<1x1x16xf32> to vector<16x16x16xf32>
    %93 = arith.mulf %90, %92 : vector<16x16x16xf32>
    %94 = arith.addf %87, %93 : vector<16x16x16xf32>
    %c2_73 = arith.constant 2 : index
    %c2_74 = arith.constant 2 : index
    %c0_75 = arith.constant 0 : index
    %95 = vector.load %arg13[%c2_73, %c2_74, %c0_75] : memref<18x18x16xbf16, #tpu.memory_space<vmem>>, vector<16x16x16xbf16>
    %c8 = arith.constant 8 : index
    %c0_76 = arith.constant 0 : index
    %96 = vector.load %arg7[%c8, %c0_76] : memref<9x16xf32, #tpu.memory_space<vmem>>, vector<1x16xf32>
    %97 = arith.extf %95 : vector<16x16x16xbf16> to vector<16x16x16xf32>
    %98 = vector.shape_cast %96 : vector<1x16xf32> to vector<1x1x16xf32>
    %99 = vector.broadcast %98 : vector<1x1x16xf32> to vector<16x16x16xf32>
    %100 = arith.mulf %97, %99 : vector<16x16x16xf32>
    %101 = arith.addf %94, %100 : vector<16x16x16xf32>
    %c0_77 = arith.constant 0 : index
    %c0_78 = arith.constant 0 : index
    %c0_79 = arith.constant 0 : index
    %102 = vector.load %arg8[%c0_77, %c0_78, %c0_79] : memref<1x1x16xf32, #tpu.memory_space<vmem>>, vector<1x1x16xf32>
    %103 = vector.broadcast %102 : vector<1x1x16xf32> to vector<16x16x16xf32>
    %104 = arith.addf %101, %103 : vector<16x16x16xf32>
    %cst_80 = arith.constant 0.000000e+00 : f32
    %cst_81 = arith.constant 6.000000e+00 : f32
    %105 = vector.broadcast %cst_80 : f32 to vector<16x16x16xf32>
    %106 = arith.maximumf %105, %104 : vector<16x16x16xf32>
    %107 = vector.broadcast %cst_81 : f32 to vector<16x16x16xf32>
    %108 = arith.minimumf %107, %106 : vector<16x16x16xf32>
    %109 = vector.shape_cast %108 : vector<16x16x16xf32> to vector<256x16xf32>
    %110 = arith.truncf %109 : vector<256x16xf32> to vector<256x16xbf16>
    %c0_82 = arith.constant 0 : index
    %c0_83 = arith.constant 0 : index
    %111 = vector.load %arg9[%c0_82, %c0_83] : memref<16x4xbf16, #tpu.memory_space<vmem>>, vector<16x4xbf16>
    %cst_84 = arith.constant dense<0.000000e+00> : vector<256x4xf32>
    %112 = tpu.matmul %110, %111, %cst_84 {dimension_numbers = #tpu.dot_dimension_numbers<[1], [0], [0], [1], [0, 0, 1, 1], [], []>} : vector<256x16xbf16>, vector<16x4xbf16>, vector<256x4xf32> -> vector<256x4xf32>
    %c0_85 = arith.constant 0 : index
    %c0_86 = arith.constant 0 : index
    %113 = vector.load %arg10[%c0_85, %c0_86] : memref<1x4xf32, #tpu.memory_space<vmem>>, vector<1x4xf32>
    %114 = vector.broadcast %113 : vector<1x4xf32> to vector<256x4xf32>
    %115 = arith.addf %112, %114 : vector<256x4xf32>
    %cst_87 = arith.constant 0.000000e+00 : f32
    %cst_88 = arith.constant 6.000000e+00 : f32
    %116 = vector.broadcast %cst_87 : f32 to vector<256x4xf32>
    %117 = arith.maximumf %116, %115 : vector<256x4xf32>
    %118 = vector.broadcast %cst_88 : f32 to vector<256x4xf32>
    %119 = arith.minimumf %118, %117 : vector<256x4xf32>
    %c0_89 = arith.constant 0 : index
    %c0_90 = arith.constant 0 : index
    %c0_91 = arith.constant 0 : index
    %c0_92 = arith.constant 0 : index
    %120 = vector.load %arg3[%c0_89, %c0_90, %c0_91, %c0_92] : memref<1x16x16x4xbf16, #tpu.memory_space<vmem>>, vector<1x16x16x4xbf16>
    %121 = vector.shape_cast %120 : vector<1x16x16x4xbf16> to vector<16x16x4xbf16>
    %122 = vector.shape_cast %121 : vector<16x16x4xbf16> to vector<256x4xbf16>
    %123 = arith.extf %122 : vector<256x4xbf16> to vector<256x4xf32>
    %124 = arith.addf %119, %123 : vector<256x4xf32>
    %125 = vector.shape_cast %124 : vector<256x4xf32> to vector<1x256x4xf32>
    %c0_93 = arith.constant 0 : index
    %c0_94 = arith.constant 0 : index
    %c0_95 = arith.constant 0 : index
    %126 = vector.load %arg11[%c0_93, %c0_94, %c0_95] : memref<1x256x4xf32, #tpu.memory_space<vmem>>, vector<1x256x4xf32>
    tpu.vector_store %arg11[%c0_93, %c0_94, %c0_95], %125 {strides = array<i32>} : memref<1x256x4xf32, #tpu.memory_space<vmem>>, vector<1x256x4xf32>,
    return
  }
  func.func @transform_0(%arg0: i32, %arg1: i32) -> (i32, i32, i32, i32) {
    %c16_i32 = arith.constant 16 : i32
    %0 = arith.muli %c16_i32, %arg1 : i32
    %c1_i32 = arith.constant 1 : i32
    %1 = arith.subi %0, %c1_i32 : i32
    %c0_i32 = arith.constant 0 : i32
    %2 = arith.maxsi %1, %c0_i32 : i32
    %c0_i32_0 = arith.constant 0 : i32
    %c0_i32_1 = arith.constant 0 : i32
    %c0_i32_2 = arith.constant 0 : i32
    return %arg0, %2, %c0_i32_0, %c0_i32_1 : i32, i32, i32, i32
  }
  func.func @transform_1(%arg0: i32, %arg1: i32) -> (i32, i32, i32, i32) {
    %c0_i32 = arith.constant 0 : i32
    %c0_i32_0 = arith.constant 0 : i32
    %c0_i32_1 = arith.constant 0 : i32
    return %arg0, %arg1, %c0_i32, %c0_i32_0 : i32, i32, i32, i32
  }
  func.func @transform_2(%arg0: i32, %arg1: i32) -> (i32, i32, i32, i32) {
    %c1_i32 = arith.constant 1 : i32
    %0 = arith.addi %arg1, %c1_i32 : i32
    %c16_i32 = arith.constant 16 : i32
    %1 = arith.muli %c16_i32, %0 : i32
    %c15_i32 = arith.constant 15 : i32
    %2 = arith.minsi %1, %c15_i32 : i32
    %c0_i32 = arith.constant 0 : i32
    %c0_i32_0 = arith.constant 0 : i32
    %c0_i32_1 = arith.constant 0 : i32
    return %arg0, %2, %c0_i32, %c0_i32_0 : i32, i32, i32, i32
  }
  func.func @transform_3(%arg0: i32, %arg1: i32) -> (i32, i32) {
    %c0_i32 = arith.constant 0 : i32
    %c0_i32_0 = arith.constant 0 : i32
    %c0_i32_1 = arith.constant 0 : i32
    return %c0_i32, %c0_i32_0 : i32, i32
  }
  func.func @transform_4(%arg0: i32, %arg1: i32) -> (i32, i32) {
    %c0_i32 = arith.constant 0 : i32
    %c0_i32_0 = arith.constant 0 : i32
    %c0_i32_1 = arith.constant 0 : i32
    return %c0_i32, %c0_i32_0 : i32, i32
  }
  func.func @transform_5(%arg0: i32, %arg1: i32) -> (i32, i32) {
    %c0_i32 = arith.constant 0 : i32
    %c0_i32_0 = arith.constant 0 : i32
    %c0_i32_1 = arith.constant 0 : i32
    return %c0_i32, %c0_i32_0 : i32, i32
  }
  func.func @transform_6(%arg0: i32, %arg1: i32) -> (i32, i32, i32) {
    %c0_i32 = arith.constant 0 : i32
    %c0_i32_0 = arith.constant 0 : i32
    %c0_i32_1 = arith.constant 0 : i32
    %c0_i32_2 = arith.constant 0 : i32
    return %c0_i32, %c0_i32_0, %c0_i32_1 : i32, i32, i32
  }
  func.func @transform_7(%arg0: i32, %arg1: i32) -> (i32, i32) {
    %c0_i32 = arith.constant 0 : i32
    %c0_i32_0 = arith.constant 0 : i32
    %c0_i32_1 = arith.constant 0 : i32
    return %c0_i32, %c0_i32_0 : i32, i32
  }
  func.func @transform_8(%arg0: i32, %arg1: i32) -> (i32, i32) {
    %c0_i32 = arith.constant 0 : i32
    %c0_i32_0 = arith.constant 0 : i32
    %c0_i32_1 = arith.constant 0 : i32
    return %c0_i32, %c0_i32_0 : i32, i32
  }
  func.func @transform_9(%arg0: i32, %arg1: i32) -> (i32, i32, i32) {
    %c0_i32 = arith.constant 0 : i32
    %c0_i32_0 = arith.constant 0 : i32
    return %arg0, %arg1, %c0_i32 : i32, i32, i32
  }
}

</mosaic_0001>

<bundles_post_ra>
// kernel: inverted_block_forward.1
= control target key start
LH: loop header
LB: loop body
LE: loop exit
PB: predicated region body
PF: predicated region fallthrough
CT: control target
= control target key end

     0   :  { %s5292_s30 = smov 0   ;;  %s5294_s10 = smov 0   ;;  %s6844_s0 = inlined_call_operand.vmem [shape: bf16[2,16,16,4], index: 0, kind: input, shape index: {}, may-alias: {0,1,2}]   ;;  %s6845_s1 = inlined_call_operand.vmem [shape: bf16[2,16,16,4], index: 1, kind: input, shape index: {}, may-alias: {0,1,2}]   ;;  %s6846_s2 = inlined_call_operand.vmem [shape: bf16[2,16,16,4], index: 2, kind: input, shape index: {}, may-alias: {0,1,2}]   ;;  %s6847_s3 = inlined_call_operand.vmem [shape: bf16[4,16], index: 3, kind: input, shape index: {}]   ;;  %s6848_s4 = inlined_call_operand.vmem [shape: f32[1,16], index: 4, kind: input, shape index: {}]   ;;  %s6849_s5 = inlined_call_operand.vmem [shape: f32[9,16], index: 5, kind: input, shape index: {}]   ;;  %s6850_s6 = inlined_call_operand.vmem [shape: f32[1,1,16], index: 6, kind: input, shape index: {}]   ;;  %s6851_s7 = inlined_call_operand.vmem [shape: bf16[16,4], index: 7, kind: input, shape index: {}]   ;;  %s6852_s8 = inlined_call_operand.vmem [shape: f32[1,4], index: 8, kind: input, shape index: {}]   ;;  %s6853_s9 = inlined_call_operand.vmem [shape: f32[2,256,4], index: 9, kind: output, shape index: {}]  }
   0x1   :  { %s5296_s11 = smov 0  }
   0x2 LB: > { %s31_s12 = sadd.s32 1, %s5235_s10  ;;  %p4693_p0 = scmp.ge.s32.totalorder %s5239_s11, 1  ;;  %s5239_s11 = sphi %s5296_s11, %s19_s11   ;;  %s5235_s10 = sphi %s5294_s10, %s6863_s10   ;;  %s5231_s30 = sphi %s5292_s30, %s6862_s30  }
   0x3   : > { %p33_p1 = scmp.ge.s32.totalorder %s31_s12, 2  ;;  %p373_p2 = scmp.lt.s32.totalorder %s5239_s11, 3 }
   0x5   : > { %s6865_s12 = smov (%p33_p1, %s31_s12), 0  ;;  %p374_p3 = pnand %p4693_p0, %p373_p2 }
   0x6   : > { %p448_p4 = scmp.lt.s32.totalorder (!%p374_p3), %s5231_s30, 1 }
   0x7   : > { %377 = sbr.rel (%p374_p3) target bundleno = 880 (0x370), region = 56 }
   0xc   : > { %v611_v0 = vld [vmem:[%s6847_s3] sm:$0x3]  ;;  %vm764_vm0 = vcmask 1041408   ;;  %s6867_s30 = smov (!%p448_p4, %s5231_s30), 1  ;;  %vm502_vm1 = vcmask 27648   ;;  %vm709_vm2 = vcmask 31744  }
   0xd   : > { %5148 = vmatprep.subr.msk.bf16.mxu0 %vm764_vm0, %v611_v0  ;;  %v766_v1 = vsel %vm764_vm0, %v611_v0, 0  ;;  %s5316_s15 = sshll.u32 %s6867_s30, 7  ;;  %vm1276_vm3 = vcmask 122880   ;;  %vm1277_vm4 = vsmask.f32 256  ;;  %vm1859_vm8 = vcmask 125952  }
   0xe   : > { %5077 = vmatpush3.bf16.msra.mxu0 %v766_v1  ;;  %s456_s18 = scalar_lea.vmem %s6844_s0, %s5316_s15  ;;  %s5326_s21 = scalar_lea.vmem %s6845_s1, %s5316_s15  ;;  %vm5419_vm5 = vmand %vm1276_vm3, %vm1277_vm4  ;;  %v1282_v57 = vld [vmem:[#allocation3 + $0xc] sm:$0x1]  ;;  %vm1333_vm6 = vsmask.f32 7938  ;;  %v1338_v60 = vld [vmem:[#allocation3 + $0x14] sm:$0x1] }
   0xf   : > { %v500_v2 = vld [vmem:[%s456_s18] sm:$0xf]  ;;  %v501_v3 = vld [vmem:[%s456_s18 + $0x4] sm:$0xf]  ;;  %v507_v6 = vld [vmem:[%s5326_s21 + $0x8] sm:$0xf] }
  0x10   : > { %503 = vst.msk [vmem:[#allocation2] sm:$0xf] %vm502_vm1, %v500_v2  ;;  %504 = vst.msk [vmem:[#allocation2 + $0x4] sm:$0xf] %vm502_vm1, %v501_v3  ;;  %v505_v4 = vld [vmem:[%s5326_s21] sm:$0xf] }
  0x11   : > { %v506_v5 = vld [vmem:[%s5326_s21 + $0x4] sm:$0xf]  ;;  %538 = vst.msk [vmem:[#allocation2 + $0x8] sm:$0xf] %vm502_vm1, %v505_v4  ;;  %v508_v7 = vld [vmem:[%s5326_s21 + $0xc] sm:$0xf]  ;;  %vm5426_vm7 = vmand %vm1276_vm3, %vm1333_vm6 }
  0x12   : > { %539 = vst.msk [vmem:[#allocation2 + $0xc] sm:$0xf] %vm502_vm1, %v506_v5  ;;  %540 = vst.msk [vmem:[#allocation2 + $0x10] sm:$0xf] %vm502_vm1, %v507_v6  ;;  %v509_v8 = vld [vmem:[%s5326_s21 + $0x10] sm:$0xf] }
  0x13   : > { %v510_v9 = vld [vmem:[%s5326_s21 + $0x14] sm:$0xf]  ;;  %541 = vst.msk [vmem:[#allocation2 + $0x14] sm:$0xf] %vm502_vm1, %v508_v7  ;;  %542 = vst.msk [vmem:[#allocation2 + $0x18] sm:$0xf] %vm502_vm1, %v509_v8 }
  0x14   : > { %543 = vst.msk [vmem:[#allocation2 + $0x1c] sm:$0xf] %vm502_vm1, %v510_v9  ;;  %v511_v10 = vld [vmem:[%s5326_s21 + $0x18] sm:$0xf]  ;;  %v512_v11 = vld [vmem:[%s5326_s21 + $0x1c] sm:$0xf]  ;;  %vm5448_vm10 = vmand %vm1859_vm8, %vm1333_vm6 }
  0x15   : > { %v513_v12 = vld [vmem:[%s5326_s21 + $0x20] sm:$0xf]  ;;  %544 = vst.msk [vmem:[#allocation2 + $0x20] sm:$0xf] %vm502_vm1, %v511_v10  ;;  %545 = vst.msk [vmem:[#allocation2 + $0x24] sm:$0xf] %vm502_vm1, %v512_v11 }
  0x16   : > { %v514_v13 = vld [vmem:[%s5326_s21 + $0x24] sm:$0xf]  ;;  %546 = vst.msk [vmem:[#allocation2 + $0x28] sm:$0xf] %vm502_vm1, %v513_v12  ;;  %v515_v14 = vld [vmem:[%s5326_s21 + $0x28] sm:$0xf] }
  0x17   : > { %v516_v15 = vld [vmem:[%s5326_s21 + $0x2c] sm:$0xf]  ;;  %547 = vst.msk [vmem:[#allocation2 + $0x2c] sm:$0xf] %vm502_vm1, %v514_v13  ;;  %548 = vst.msk [vmem:[#allocation2 + $0x30] sm:$0xf] %vm502_vm1, %v515_v14 }
  0x18   : > { %549 = vst.msk [vmem:[#allocation2 + $0x34] sm:$0xf] %vm502_vm1, %v516_v15  ;;  %v517_v16 = vld [vmem:[%s5326_s21 + $0x30] sm:$0xf]  ;;  %v518_v17 = vld [vmem:[%s5326_s21 + $0x34] sm:$0xf] }
  0x19   : > { %v519_v18 = vld [vmem:[%s5326_s21 + $0x38] sm:$0xf]  ;;  %550 = vst.msk [vmem:[#allocation2 + $0x38] sm:$0xf] %vm502_vm1, %v517_v16  ;;  %551 = vst.msk [vmem:[#allocation2 + $0x3c] sm:$0xf] %vm502_vm1, %v518_v17 }
  0x1a   : > { %v520_v19 = vld [vmem:[%s5326_s21 + $0x3c] sm:$0xf]  ;;  %552 = vst.msk [vmem:[#allocation2 + $0x40] sm:$0xf] %vm502_vm1, %v519_v18  ;;  %v521_v20 = vld [vmem:[%s5326_s21 + $0x40] sm:$0xf] }
  0x1b   : > { %v522_v21 = vld [vmem:[%s5326_s21 + $0x44] sm:$0xf]  ;;  %553 = vst.msk [vmem:[#allocation2 + $0x44] sm:$0xf] %vm502_vm1, %v520_v19  ;;  %554 = vst.msk [vmem:[#allocation2 + $0x48] sm:$0xf] %vm502_vm1, %v521_v20 }
  0x1c   : > { %555 = vst.msk [vmem:[#allocation2 + $0x4c] sm:$0xf] %vm502_vm1, %v522_v21  ;;  %v523_v22 = vld [vmem:[%s5326_s21 + $0x48] sm:$0xf]  ;;  %v524_v23 = vld [vmem:[%s5326_s21 + $0x4c] sm:$0xf] }
  0x1d   : > { %v525_v24 = vld [vmem:[%s5326_s21 + $0x50] sm:$0xf]  ;;  %v5174_v25 = vld [vmem:[#allocation2] sm:$0xff]   ;;  %556 = vst.msk [vmem:[#allocation2 + $0x50] sm:$0xf] %vm502_vm1, %v523_v22  ;;  %v5175_v26 = vld [vmem:[#allocation2 + $0x8] sm:$0xff]  }
  0x1e   : > { %557 = vst.msk [vmem:[#allocation2 + $0x54] sm:$0xf] %vm502_vm1, %v524_v23  ;;  %558 = vst.msk [vmem:[#allocation2 + $0x58] sm:$0xf] %vm502_vm1, %v525_v24  ;;  %5078 = vmatprep.mubr.msk.bf16.mxu0 %vm709_vm2, %v5174_v25  ;;  %v5176_v27 = vld [vmem:[#allocation2 + $0x10] sm:$0xff]   ;;  %v5177_v28 = vld [vmem:[#allocation2 + $0x18] sm:$0xff]  }
  0x1f   : > { %5079 = vmatmul.mubr.msk.bf16.vlgmr.msra.gmra.mxu0 %vm709_vm2, %v5175_v26  ;;  %v5178_v29 = vld [vmem:[#allocation2 + $0x20] sm:$0xff]   ;;  %s4808_s22 = sadd.s32 120, %s5316_s15  ;;  %v526_v30 = vld [vmem:[%s5326_s21 + $0x54] sm:$0xf]  ;;  %v527_v31 = vld [vmem:[%s5326_s21 + $0x58] sm:$0xf] }
  0x20   : > { %5082 = vmatprep.mubr.msk.bf16.mxu0 %vm709_vm2, %v5176_v27  ;;  %s484_s25 = scalar_lea.vmem %s6846_s2, %s4808_s22  ;;  %559 = vst.msk [vmem:[#allocation2 + $0x5c] sm:$0xf] %vm502_vm1, %v526_v30  ;;  %v528_v32 = vld [vmem:[%s5326_s21 + $0x5c] sm:$0xf]  ;;  %560 = vst.msk [vmem:[#allocation2 + $0x60] sm:$0xf] %vm502_vm1, %v527_v31 }
  0x21   : > { %v529_v33 = vld [vmem:[%s5326_s21 + $0x60] sm:$0xf]  ;;  %v530_v34 = vld [vmem:[%s5326_s21 + $0x64] sm:$0xf]  ;;  %561 = vst.msk [vmem:[#allocation2 + $0x64] sm:$0xf] %vm502_vm1, %v528_v32 }
  0x22   : > { %562 = vst.msk [vmem:[#allocation2 + $0x68] sm:$0xf] %vm502_vm1, %v529_v33  ;;  %563 = vst.msk [vmem:[#allocation2 + $0x6c] sm:$0xf] %vm502_vm1, %v530_v34  ;;  %v531_v35 = vld [vmem:[%s5326_s21 + $0x68] sm:$0xf] }
  0x23   : > { %v532_v36 = vld [vmem:[%s5326_s21 + $0x6c] sm:$0xf]  ;;  %v533_v37 = vld [vmem:[%s5326_s21 + $0x70] sm:$0xf]  ;;  %564 = vst.msk [vmem:[#allocation2 + $0x70] sm:$0xf] %vm502_vm1, %v531_v35 }
  0x24   : > { %565 = vst.msk [vmem:[#allocation2 + $0x74] sm:$0xf] %vm502_vm1, %v532_v36  ;;  %v534_v38 = vld [vmem:[%s5326_s21 + $0x74] sm:$0xf]  ;;  %566 = vst.msk [vmem:[#allocation2 + $0x78] sm:$0xf] %vm502_vm1, %v533_v37 }
  0x25   : > { %v535_v39 = vld [vmem:[%s5326_s21 + $0x78] sm:$0xf]  ;;  %v536_v40 = vld [vmem:[%s5326_s21 + $0x7c] sm:$0xf]  ;;  %v5179_v41 = vld [vmem:[#allocation2 + $0x28] sm:$0xff]   ;;  %v1283_v58 = vsel %vm5419_vm5, 0, %v1282_v57 }
  0x26   : > { %567 = vst.msk [vmem:[#allocation2 + $0x7c] sm:$0xf] %vm502_vm1, %v534_v38  ;;  %568 = vst.msk [vmem:[#allocation2 + $0x80] sm:$0xf] %vm502_vm1, %v535_v39  ;;  %v570_v42 = vld [vmem:[%s484_s25] sm:$0xf] }
  0x27   : > { %5083 = vmatmul.mubr.msk.bf16.gmra.mxu0 %vm709_vm2, %v5177_v28  ;;  %569 = vst.msk [vmem:[#allocation2 + $0x84] sm:$0xf] %vm502_vm1, %v536_v40  ;;  %v571_v43 = vld [vmem:[%s484_s25 + $0x4] sm:$0xf]  ;;  %v5180_v44 = vld [vmem:[#allocation2 + $0x30] sm:$0xff]   ;;  %v5181_v45 = vld [vmem:[#allocation2 + $0x38] sm:$0xff]  }
  0x28   : > { %5086 = vmatprep.mubr.msk.bf16.mxu0 %vm709_vm2, %v5178_v29  ;;  %573 = vst.msk [vmem:[#allocation2 + $0x88] sm:$0xf] %vm502_vm1, %v570_v42  ;;  %574 = vst.msk [vmem:[#allocation2 + $0x8c] sm:$0xf] %vm502_vm1, %v571_v43  ;;  %v5182_v46 = vld [vmem:[#allocation2 + $0x40] sm:$0xff]   ;;  %v5183_v47 = vld [vmem:[#allocation2 + $0x48] sm:$0xff]  }
  0x29   : > { %v5184_v48 = vld [vmem:[#allocation2 + $0x50] sm:$0xff]   ;;  %v5185_v49 = vld [vmem:[#allocation2 + $0x58] sm:$0xff]   ;;  %v5186_v50 = vld [vmem:[#allocation2 + $0x60] sm:$0xff]   ;;  %1284 = vst [vmem:[#allocation3 + $0xc] sm:$0x1] %v1283_v58  ;;  %v1339_v61 = vsel %vm5426_vm7, 0, %v1338_v60 }
  0x2a   : > { %v5187_v51 = vld [vmem:[#allocation2 + $0x68] sm:$0xff]   ;;  %1340 = vst [vmem:[#allocation3 + $0x14] sm:$0x1] %v1339_v61  ;;  %v1288_v62 = vld [vmem:[#allocation3 + $0x24] sm:$0x1]  ;;  %v5241_v9 = vmov 0.0|0.0  }
  0x2b   : > { %v5188_v52 = vld [vmem:[#allocation2 + $0x70] sm:$0xff]   ;;  %v1289_v63 = vsel %vm5419_vm5, 0, %v1288_v62  ;;  %v1285_v0 = vld [vmem:[#allocation3 + $0x18] sm:$0x1]  ;;  %v1344_v2 = vld [vmem:[#allocation3 + $0x2c] sm:$0x1]  ;;  %v4739_v10 = vcombine.low %v5241_v9, %v5241_v9  ;;  %v4740_v11 = vcombine.high %v5241_v9, %v5241_v9 }
  0x2c   : > { %1290 = vst [vmem:[#allocation3 + $0x24] sm:$0x1] %v1289_v63  ;;  %v1286_v1 = vsel %vm5419_vm5, 0, %v1285_v0  ;;  %v1345_v3 = vsel %vm5426_vm7, 0, %v1344_v2  ;;  %v1279_v4 = vld [vmem:[#allocation3] sm:$0x1] }
  0x2d   : > { %v5189_v53 = vld [vmem:[#allocation2 + $0x78] sm:$0xff]   ;;  %1287 = vst [vmem:[#allocation3 + $0x18] sm:$0x1] %v1286_v1  ;;  %1346 = vst [vmem:[#allocation3 + $0x2c] sm:$0x1] %v1345_v3  ;;  %v1280_v6 = vsel %vm5419_vm5, 0, %v1279_v4 }
  0x2e   : > { %v5190_v54 = vld [vmem:[#allocation2 + $0x80] sm:$0xff]   ;;  %v1335_v5 = vld [vmem:[#allocation3 + $0x8] sm:$0x1]  ;;  %v1341_v8 = vld [vmem:[#allocation3 + $0x20] sm:$0x1]  ;;  %v1500_v14 = vshrl.u32 %v4739_v10, 16 }
  0x2f   : > { %5087 = vmatmul.mubr.msk.bf16.gmra.mxu0 %vm709_vm2, %v5179_v41  ;;  %v5191_v55 = vld [vmem:[#allocation2 + $0x88] sm:$0xff]   ;;  %v1336_v7 = vsel %vm5426_vm7, 0, %v1335_v5  ;;  %1281 = vst [vmem:[#allocation3] sm:$0x1] %v1280_v6  ;;  %v1342_v12 = vsel %vm5426_vm7, 0, %v1341_v8  ;;  %v1508_v15 = vshrl.u32 %v4740_v11, 16 }
  0x30   : > { %5090 = vmatprep.mubr.msk.bf16.mxu0 %vm709_vm2, %v5180_v44  ;;  %1337 = vst [vmem:[#allocation3 + $0x8] sm:$0x1] %v1336_v7  ;;  %vm1497_vm9 = vsmask.f32 4368  ;;  %1343 = vst [vmem:[#allocation3 + $0x20] sm:$0x1] %v1342_v12 }
  0x31   : > { %v1294_v13 = vld [vmem:[#allocation3 + $0x3c] sm:$0x1]  ;;  %v1502_v18 = vrot.slane %v1500_v14, 7  ;;  %v1503_v19 = vshll.u32 %v4739_v10, 16  ;;  %v5452_v20 = vrot.slane %v1508_v15, 7  ;;  %v1511_v21 = vshll.u32 %v4740_v11, 16  ;;  %vm5455_vm11 = vmor %vm1277_vm4, %vm1497_vm9 }
  0x32   : > { %v1295_v16 = vsel %vm5419_vm5, 0, %v1294_v13  ;;  %v1291_v23 = vld [vmem:[#allocation3 + $0x30] sm:$0x1]  ;;  %v1350_v33 = vld [vmem:[#allocation3 + $0x44] sm:$0x1]  ;;  %vm2222_vm12 = vcmask 1046528  }
  0x33   : > { %1296 = vst [vmem:[#allocation3 + $0x3c] sm:$0x1] %v1295_v16  ;;  %v5459_v24 = vor.u32 %v1503_v19, %v1502_v18  ;;  %v1506_v25 = vrot.slane %v1502_v18, 4  ;;  %v1513_v26 = vor.u32 %v1511_v21, %v5452_v20  ;;  %v1515_v27 = vrot.slane %v5452_v20, 4  ;;  %v1347_v36 = vld [vmem:[#allocation3 + $0x38] sm:$0x1] }
  0x34   : > { %v1292_v28 = vsel %vm5419_vm5, 0, %v1291_v23  ;;  %v1351_v35 = vsel %vm5426_vm7, 0, %v1350_v33  ;;  %v1348_v37 = vsel %vm5426_vm7, 0, %v1347_v36  ;;  %v1300_v38 = vld [vmem:[#allocation3 + $0x54] sm:$0x1]  ;;  %vm2500_vm13 = vcmask 1045504  }
  0x35   : > { %1293 = vst [vmem:[#allocation3 + $0x30] sm:$0x1] %v1292_v28  ;;  %v1514_v30 = vsel %vm5455_vm11, %v1506_v25, %v1513_v26  ;;  %1352 = vst [vmem:[#allocation3 + $0x44] sm:$0x1] %v1351_v35  ;;  %v1301_v39 = vsel %vm5419_vm5, 0, %v1300_v38  ;;  %v5192_v12 = vld [vmem:[%s6851_s7] sm:$0xff]  }
  0x36   : > { %v1861_v29 = vld [vmem:[#allocation3] sm:$0xf]  ;;  %1865 = vst.msk [vmem:[#allocation3 + $0x4] sm:$0xf] %vm1859_vm8, %v1514_v30  ;;  %1984 = vst.msk [vmem:[#allocation3 + $0xd0] sm:$0xf] %vm1859_vm8, %v1514_v30  ;;  %5114 = vmatprep.subr.bf16.mxu1 %v5192_v12 }
  0x37   : > { %5091 = vmatmul.mubr.msk.bf16.gmra.mxu0 %vm709_vm2, %v5181_v45  ;;  %v1862_v31 = vsel %vm5448_vm10, %v5459_v24, %v1861_v29  ;;  %v1866_v32 = vld [vmem:[#allocation3 + $0x8] sm:$0x1]  ;;  %1349 = vst [vmem:[#allocation3 + $0x38] sm:$0x1] %v1348_v37  ;;  %1302 = vst [vmem:[#allocation3 + $0x54] sm:$0x1] %v1301_v39  ;;  %5115 = vmatpush3.bf16.msra.mxu1 %v5192_v12 }
  0x38   : > { %5094 = vmatprep.mubr.msk.bf16.mxu0 %vm709_vm2, %v5182_v46  ;;  %1863 = vst [vmem:[#allocation3] sm:$0xf] %v1862_v31  ;;  %v1867_v34 = vsel %vm5419_vm5, %v1515_v27, %v1866_v32  ;;  %v1297_v40 = vld [vmem:[#allocation3 + $0x48] sm:$0x1]  ;;  %v1356_v42 = vld [vmem:[#allocation3 + $0x5c] sm:$0x1] }
  0x39   : > { %1868 = vst [vmem:[#allocation3 + $0x8] sm:$0x1] %v1867_v34  ;;  %v1298_v41 = vsel %vm5419_vm5, 0, %v1297_v40  ;;  %v1357_v43 = vsel %vm5426_vm7, 0, %v1356_v42  ;;  %v1353_v44 = vld [vmem:[#allocation3 + $0x50] sm:$0x1] }
  0x3a   : > { %1299 = vst [vmem:[#allocation3 + $0x48] sm:$0x1] %v1298_v41  ;;  %1358 = vst [vmem:[#allocation3 + $0x5c] sm:$0x1] %v1357_v43  ;;  %v1354_v45 = vsel %vm5426_vm7, 0, %v1353_v44  ;;  %vm4155_vm14 = vcmask 130048  }
  0x3b   : > { %1355 = vst [vmem:[#allocation3 + $0x50] sm:$0x1] %v1354_v45  ;;  %v1306_v46 = vld [vmem:[#allocation3 + $0x6c] sm:$0x1]  ;;  %v1309_v57 = vld [vmem:[#allocation3 + $0x78] sm:$0x1] }
  0x3c   : > { %v1310_v58 = vsel %vm5419_vm5, 0, %v1309_v57  ;;  %v1368_v60 = vld [vmem:[#allocation3 + $0x8c] sm:$0x1]  ;;  %v1365_v62 = vld [vmem:[#allocation3 + $0x80] sm:$0x1]  ;;  %s4809_s19 = sshll.u32 %s6867_s30, 8 }
  0x3d   : > { %1311 = vst [vmem:[#allocation3 + $0x78] sm:$0x1] %v1310_v58  ;;  %v1369_v61 = vsel %vm5426_vm7, 0, %v1368_v60  ;;  %v1366_v63 = vsel %vm5426_vm7, 0, %v1365_v62  ;;  %v1318_v0 = vld [vmem:[#allocation3 + $0x9c] sm:$0x1]  ;;  %s6716_s22 = scalar_lea.vmem %s6853_s9, %s4809_s19 }
  0x3e   : > { %1370 = vst [vmem:[#allocation3 + $0x8c] sm:$0x1] %v1369_v61  ;;  %1367 = vst [vmem:[#allocation3 + $0x80] sm:$0x1] %v1366_v63  ;;  %v1319_v1 = vsel %vm5419_vm5, 0, %v1318_v0 }
  0x3f   : > { %5095 = vmatmul.mubr.msk.bf16.gmra.mxu0 %vm709_vm2, %v5183_v47  ;;  %v1307_v47 = vsel %vm5419_vm5, 0, %v1306_v46  ;;  %1320 = vst [vmem:[#allocation3 + $0x9c] sm:$0x1] %v1319_v1  ;;  %v1315_v2 = vld [vmem:[#allocation3 + $0x90] sm:$0x1]  ;;  %v4843_v18 = vld [vmem:[#allocation3] sm:$0xff]  }
  0x40   : > { %5098 = vmatprep.mubr.msk.bf16.mxu0 %vm709_vm2, %v5184_v48  ;;  %1308 = vst [vmem:[#allocation3 + $0x6c] sm:$0x1] %v1307_v47  ;;  %v1303_v48 = vld [vmem:[#allocation3 + $0x60] sm:$0x1]  ;;  %v1316_v3 = vsel %vm5419_vm5, 0, %v1315_v2  ;;  %v4844_v21 = vunpack.c.l.bf16 %v4843_v18  ;;  %v4845_v23 = vunpack.c.h.bf16 %v4843_v18 }
  0x41   : > { %1317 = vst [vmem:[#allocation3 + $0x90] sm:$0x1] %v1316_v3  ;;  %v1374_v4 = vld [vmem:[#allocation3 + $0xa4] sm:$0x1]  ;;  %v1371_v6 = vld [vmem:[#allocation3 + $0x98] sm:$0x1] }
  0x42   : > { %v1375_v5 = vsel %vm5426_vm7, 0, %v1374_v4  ;;  %v1372_v7 = vsel %vm5426_vm7, 0, %v1371_v6  ;;  %v1324_v8 = vld [vmem:[#allocation3 + $0xb4] sm:$0x1]  ;;  %v1321_v10 = vld [vmem:[#allocation3 + $0xa8] sm:$0x1] }
  0x43   : > { %1376 = vst [vmem:[#allocation3 + $0xa4] sm:$0x1] %v1375_v5  ;;  %1373 = vst [vmem:[#allocation3 + $0x98] sm:$0x1] %v1372_v7  ;;  %v1325_v9 = vsel %vm5419_vm5, 0, %v1324_v8  ;;  %v1322_v11 = vsel %vm5419_vm5, 0, %v1321_v10 }
  0x44   : > { %1326 = vst [vmem:[#allocation3 + $0xb4] sm:$0x1] %v1325_v9  ;;  %v1380_v13 = vld [vmem:[#allocation3 + $0xbc] sm:$0x1]  ;;  %1323 = vst [vmem:[#allocation3 + $0xa8] sm:$0x1] %v1322_v11 }
  0x45   : > { %v1381_v14 = vsel %vm5426_vm7, 0, %v1380_v13  ;;  %v1377_v15 = vld [vmem:[#allocation3 + $0xb0] sm:$0x1]  ;;  %v2089_v19 = vld [vmem:[#allocation3 + $0x8] sm:$0x1] }
  0x46   : > { %1382 = vst [vmem:[#allocation3 + $0xbc] sm:$0x1] %v1381_v14  ;;  %v1378_v16 = vsel %vm5426_vm7, 0, %v1377_v15  ;;  %v5526_v25 = vld [vmem:[%s6849_s5 + $0x1] ss:$0 sm:$0xff]  ;;  %v2106_v26 = vunpack.c.l.bf16 %v2089_v19 }
  0x47   : > { %5099 = vmatmul.mubr.msk.bf16.gmra.mxu0 %vm709_vm2, %v5185_v49  ;;  %v1304_v49 = vsel %vm5419_vm5, 0, %v1303_v48  ;;  %1379 = vst [vmem:[#allocation3 + $0xb0] sm:$0x1] %v1378_v16  ;;  %v2367_v28 = vld [vmem:[#allocation3] sm:$0xe]  ;;  %v2126_v29 = vmul.f32 %v4844_v21, %v5526_v25  ;;  %v2127_v30 = vmul.f32 %v4845_v23, %v5526_v25 }
  0x48   : > { %5102 = vmatprep.mubr.msk.bf16.mxu0 %vm709_vm2, %v5186_v50  ;;  %1305 = vst [vmem:[#allocation3 + $0x60] sm:$0x1] %v1304_v49  ;;  %v1362_v50 = vld [vmem:[#allocation3 + $0x74] sm:$0x1]  ;;  %v5533_v31 = vld [vmem:[%s6848_s4] ss:$0 sm:$0xff]  ;;  %v2128_v32 = vmul.f32 %v5526_v25, %v2106_v26  ;;  %v2384_v34 = vunpack.c.l.bf16 %v2367_v28 }
  0x49   : > { %v4777_v33 = vld [vmem:[%s6849_s5 + $0x2] ss:$0 sm:$0xff]  ;;  %v5543_v37 = vld [vmem:[%s6849_s5] ss:$0 sm:$0xff]  ;;  %v2223_v38 = vrot.slane %v2126_v29, 1  ;;  %v2224_v39 = vrot.slane %v2127_v30, 1 }
  0x4a   : > { %v2405_v40 = vmul.f32 %v4845_v23, %v4777_v33  ;;  %v2226_v42 = vrot.slane %v2128_v32, 1  ;;  %v2404_v43 = vmul.f32 %v4777_v33, %v2384_v34  ;;  %v2406_v44 = vmul.f32 %v4777_v33, %v2106_v26  ;;  %v1327_v63 = vld [vmem:[#allocation3 + $0xc0] sm:$0x1]  ;;  %v1869_v13 = vld [vmem:[#allocation3 + $0xc] sm:$0xf] }
  0x4b   : > { %v2057_v47 = vmul.f32 %v4844_v21, %v5543_v37  ;;  %v1328_v8 = vsel %vm5419_vm5, 0, %v1327_v63 }
  0x4c   : > { %v2504_v57 = vrot.slane %v2406_v44, 2  ;;  %1329 = vst [vmem:[#allocation3 + $0xc0] sm:$0x1] %v1328_v8 }
  0x4f   : > { %5103 = vmatmul.mubr.msk.bf16.gmra.mxu0 %vm709_vm2, %v5187_v51  ;;  %v1363_v51 = vsel %vm5426_vm7, 0, %v1362_v50  ;;  %v2058_v50 = vmul.f32 %v4845_v23, %v5543_v37 }
  0x50   : > { %5106 = vmatprep.mubr.msk.bf16.mxu0 %vm709_vm2, %v5188_v52  ;;  %1364 = vst [vmem:[#allocation3 + $0x74] sm:$0x1] %v1363_v51  ;;  %v1359_v52 = vld [vmem:[#allocation3 + $0x68] sm:$0x1]  ;;  %v2225_v51 = vsel %vm2222_vm12, %v2223_v38, %v2224_v39 }
  0x51   : > { %v2335_v62 = vadd.f32 %v2225_v51, %v2057_v47 }
  0x57   : > { %5107 = vmatmul.mubr.msk.bf16.gmra.mxu0 %vm709_vm2, %v5189_v53  ;;  %v1360_v53 = vsel %vm5426_vm7, 0, %v1359_v52 }
  0x58   : > { %5110 = vmatprep.mubr.msk.bf16.mxu0 %vm709_vm2, %v5190_v54  ;;  %1361 = vst [vmem:[#allocation3 + $0x68] sm:$0x1] %v1360_v53  ;;  %v1312_v54 = vld [vmem:[#allocation3 + $0x84] sm:$0x1]  ;;  %v2227_v53 = vsel %vm2222_vm12, %v2224_v39, %v2226_v42 }
  0x59   : > { %v2336_v3 = vadd.f32 %v2227_v53, %v2058_v50 }
  0x5f   : > { %5111 = vmatmul.mubr.msk.bf16.gmra.mxu0 %vm709_vm2, %v5191_v55  ;;  %v1313_v55 = vsel %vm5419_vm5, 0, %v1312_v54  ;;  %v2501_v54 = vrot.slane %v2404_v43, 2 }
  0x60   : > { %1314 = vst [vmem:[#allocation3 + $0x84] sm:$0x1] %v1313_v55  ;;  %v2502_v55 = vrot.slane %v2405_v40, 2 }
  0x62   : > { %v2503_v6 = vsel %vm2500_vm13, %v2501_v54, %v2502_v55  ;;  %v2505_v7 = vsel %vm2500_vm13, %v2502_v55, %v2504_v57 }
  0x63   : > { %v5556_v18 = vadd.f32 %v2503_v6, %v2335_v62  ;;  %v5559_v28 = vadd.f32 %v2505_v7, %v2336_v3  ;;  %v1876_v7 = vld [vmem:[#allocation3 + $0x18] sm:$0xf] }
  0xdf   : > { %v5080_v35 = vpop.f32.mrf.mxu0 }
  0xe0   : > { %v811_v36 = vadd.f32 %v5080_v35, %v5533_v31  ;;  %v1873_v35 = vld [vmem:[#allocation3 + $0x14] sm:$0x1] }
  0xe1   : > { %v802_v41 = vpop.f32.mrf.mxu0 }
  0xe2   : > { %v947_v45 = vmax.f32 %v811_v36, 0.0 }
  0xe3   : > { %v5081_v46 = vpop.f32.mrf.mxu0 }
  0xe4   : > { %v983_v48 = vmin.f32 %v947_v45, 6.0  ;;  %v814_v49 = vadd.f32 %v5081_v46, %v5533_v31 }
  0xe5   : > { %v805_v52 = vpop.f32.mrf.mxu0 }
  0xe6   : > { %v4810_v58 = vpack.c.bf16 %v983_v48, %v983_v48  ;;  %v948_v60 = vmax.f32 %v814_v49, 0.0 }
  0xe7   : > { %v5084_v61 = vpop.f32.mrf.mxu0 }
  0xe8   : > { %v1517_v0 = vshrl.u32 %v4810_v58, 16  ;;  %v984_v1 = vmin.f32 %v948_v60, 6.0  ;;  %v827_v2 = vadd.f32 %v5084_v61, %v5533_v31  ;;  %v1520_v4 = vshll.u32 %v4810_v58, 16  ;;  %v1883_v61 = vld [vmem:[#allocation3 + $0x24] sm:$0xf] }
  0xe9   : > { %v818_v5 = vpop.f32.mrf.mxu0 }
  0xea   : > { %v1519_v9 = vrot.slane %v1517_v0, 7  ;;  %v4811_v10 = vpack.c.bf16 %v984_v1, %v984_v1  ;;  %v951_v11 = vmax.f32 %v827_v2, 0.0  ;;  %v819_v12 = vadd.f32 %v5533_v31, %v818_v5 }
  0xeb   : > { %v5085_v14 = vpop.f32.mrf.mxu0 }
  0xec   : > { %v1522_v15 = vor.u32 %v1520_v4, %v1519_v9  ;;  %v1525_v16 = vshrl.u32 %v4811_v10, 16  ;;  %v987_v19 = vmin.f32 %v951_v11, 6.0  ;;  %v949_v21 = vmax.f32 %v819_v12, 0.0 }
  0xed   : > { %v830_v23 = vadd.f32 %v5085_v14, %v5533_v31  ;;  %v821_v26 = vpop.f32.mrf.mxu0  ;;  %v1528_v32 = vshll.u32 %v4811_v10, 16  ;;  %v1523_v34 = vrot.slane %v1519_v9, 4 }
  0xee   : > { %v1870_v29 = vsel %vm5448_vm10, %v1522_v15, %v1869_v13  ;;  %v1527_v30 = vrot.slane %v1525_v16, 7  ;;  %v822_v33 = vadd.f32 %v5533_v31, %v821_v26  ;;  %v4814_v36 = vpack.c.bf16 %v987_v19, %v987_v19  ;;  %v1887_v19 = vld [vmem:[#allocation3 + $0x2c] sm:$0x1] }
  0xef   : > { %1871 = vst [vmem:[#allocation3 + $0xc] sm:$0xf] %v1870_v29  ;;  %v985_v38 = vmin.f32 %v949_v21, 6.0  ;;  %v952_v39 = vmax.f32 %v830_v23, 0.0  ;;  %v5088_v40 = vpop.f32.mrf.mxu0 }
  0xf0   : > { %v1530_v41 = vor.u32 %v1528_v32, %v1527_v30  ;;  %v1532_v42 = vrot.slane %v1527_v30, 4  ;;  %v950_v43 = vmax.f32 %v822_v33, 0.0  ;;  %v843_v44 = vadd.f32 %v5088_v40, %v5533_v31 }
  0xf1   : > { %v1551_v45 = vshrl.u32 %v4814_v36, 16  ;;  %v1554_v46 = vshll.u32 %v4814_v36, 16  ;;  %v4812_v47 = vpack.c.bf16 %v985_v38, %v985_v38  ;;  %v988_v48 = vmin.f32 %v952_v39, 6.0  ;;  %v834_v49 = vpop.f32.mrf.mxu0 }
  0xf2   : > { %v1531_v50 = vsel %vm5455_vm11, %v1523_v34, %v1530_v41  ;;  %v1874_v51 = vsel %vm5419_vm5, %v1532_v42, %v1873_v35  ;;  %v986_v52 = vmin.f32 %v950_v43, 6.0  ;;  %v955_v53 = vmax.f32 %v843_v44, 0.0  ;;  %v1880_v34 = vld [vmem:[#allocation3 + $0x20] sm:$0x1]  ;;  %v1897_v44 = vld [vmem:[#allocation3 + $0x3c] sm:$0xf] }
  0xf3   : > { %1872 = vst.msk [vmem:[#allocation3 + $0x10] sm:$0xf] %vm1859_vm8, %v1531_v50  ;;  %1875 = vst [vmem:[#allocation3 + $0x14] sm:$0x1] %v1874_v51  ;;  %v1553_v54 = vrot.slane %v1551_v45, 7  ;;  %v1534_v55 = vshrl.u32 %v4812_v47, 16  ;;  %v4815_v58 = vpack.c.bf16 %v988_v48, %v988_v48  ;;  %v5089_v60 = vpop.f32.mrf.mxu0  ;;  %v835_v0 = vadd.f32 %v5533_v31, %v834_v49 }
  0xf4   : > { %v1537_v57 = vshll.u32 %v4812_v47, 16  ;;  %v4813_v62 = vpack.c.bf16 %v986_v52, %v986_v52  ;;  %v991_v63 = vmin.f32 %v955_v53, 6.0  ;;  %v846_v1 = vadd.f32 %v5089_v60, %v5533_v31 }
  0xf5   : > { %v1556_v2 = vor.u32 %v1554_v46, %v1553_v54  ;;  %v1557_v3 = vrot.slane %v1553_v54, 4  ;;  %v1536_v4 = vrot.slane %v1534_v55, 7  ;;  %v1559_v5 = vshrl.u32 %v4815_v58, 16  ;;  %v837_v6 = vpop.f32.mrf.mxu0 }
  0xf6   : > { %v1562_v8 = vshll.u32 %v4815_v58, 16  ;;  %v1542_v9 = vshrl.u32 %v4813_v62, 16  ;;  %v1545_v10 = vshll.u32 %v4813_v62, 16  ;;  %v4818_v11 = vpack.c.bf16 %v991_v63, %v991_v63 }
  0xf7   : > { %v1884_v12 = vsel %vm5448_vm10, %v1556_v2, %v1883_v61  ;;  %v1539_v13 = vor.u32 %v1537_v57, %v1536_v4  ;;  %v1540_v14 = vrot.slane %v1536_v4, 4  ;;  %v1561_v15 = vrot.slane %v1559_v5, 7  ;;  %v5092_v16 = vpop.f32.mrf.mxu0 }
  0xf8   : > { %1885 = vst [vmem:[#allocation3 + $0x24] sm:$0xf] %v1884_v12  ;;  %v1544_v21 = vrot.slane %v1542_v9, 7  ;;  %v1585_v23 = vshrl.u32 %v4818_v11, 16  ;;  %v1588_v26 = vshll.u32 %v4818_v11, 16  ;;  %v953_v29 = vmax.f32 %v835_v0, 0.0 }
  0xf9   : > { %v1877_v30 = vsel %vm5448_vm10, %v1539_v13, %v1876_v7  ;;  %v1564_v32 = vor.u32 %v1562_v8, %v1561_v15  ;;  %v1566_v33 = vrot.slane %v1561_v15, 4  ;;  %v956_v35 = vmax.f32 %v846_v1, 0.0  ;;  %v850_v36 = vpop.f32.mrf.mxu0  ;;  %v1890_v9 = vld [vmem:[#allocation3 + $0x30] sm:$0xf] }
  0xfa   : > { %1878 = vst [vmem:[#allocation3 + $0x18] sm:$0xf] %v1877_v30  ;;  %v1547_v38 = vor.u32 %v1545_v10, %v1544_v21  ;;  %v1549_v39 = vrot.slane %v1544_v21, 4  ;;  %v1587_v40 = vrot.slane %v1585_v23, 7  ;;  %v989_v41 = vmin.f32 %v953_v29, 6.0 }
  0xfb   : > { %v1565_v42 = vsel %vm5455_vm11, %v1557_v3, %v1564_v32  ;;  %v1888_v43 = vsel %vm5419_vm5, %v1566_v33, %v1887_v19  ;;  %v992_v45 = vmin.f32 %v956_v35, 6.0  ;;  %v838_v46 = vadd.f32 %v5533_v31, %v837_v6  ;;  %v5093_v47 = vpop.f32.mrf.mxu0 }
  0xfc   : > { %1886 = vst.msk [vmem:[#allocation3 + $0x28] sm:$0xf] %vm1859_vm8, %v1565_v42  ;;  %1889 = vst [vmem:[#allocation3 + $0x2c] sm:$0x1] %v1888_v43  ;;  %v1548_v48 = vsel %vm5455_vm11, %v1540_v14, %v1547_v38  ;;  %v1881_v49 = vsel %vm5419_vm5, %v1549_v39, %v1880_v34  ;;  %v1590_v50 = vor.u32 %v1588_v26, %v1587_v40  ;;  %v1591_v51 = vrot.slane %v1587_v40, 4 }
  0xfd   : > { %1879 = vst.msk [vmem:[#allocation3 + $0x1c] sm:$0xf] %vm1859_vm8, %v1548_v48  ;;  %1882 = vst [vmem:[#allocation3 + $0x20] sm:$0x1] %v1881_v49  ;;  %v4816_v52 = vpack.c.bf16 %v989_v41, %v989_v41  ;;  %v4819_v53 = vpack.c.bf16 %v992_v45, %v992_v45  ;;  %v954_v54 = vmax.f32 %v838_v46, 0.0  ;;  %v859_v55 = vadd.f32 %v5092_v16, %v5533_v31  ;;  %v853_v57 = vpop.f32.mrf.mxu0 }
  0xfe   : > { %v1898_v58 = vsel %vm5448_vm10, %v1590_v50, %v1897_v44  ;;  %v851_v60 = vadd.f32 %v5533_v31, %v850_v36  ;;  %v862_v61 = vadd.f32 %v5093_v47, %v5533_v31  ;;  %v854_v62 = vadd.f32 %v5533_v31, %v853_v57  ;;  %v1901_v14 = vld [vmem:[#allocation3 + $0x44] sm:$0x1]  ;;  %v1894_v47 = vld [vmem:[#allocation3 + $0x38] sm:$0x1] }
  0xff   : > { %1899 = vst [vmem:[#allocation3 + $0x3c] sm:$0xf] %v1898_v58  ;;  %v1568_v63 = vshrl.u32 %v4816_v52, 16  ;;  %v1571_v0 = vshll.u32 %v4816_v52, 16  ;;  %v1593_v1 = vshrl.u32 %v4819_v53, 16  ;;  %v1596_v2 = vshll.u32 %v4819_v53, 16  ;;  %v5096_v3 = vpop.f32.mrf.mxu0 }
 0x100   : > { %v990_v4 = vmin.f32 %v954_v54, 6.0  ;;  %v959_v5 = vmax.f32 %v859_v55, 0.0  ;;  %v957_v6 = vmax.f32 %v851_v60, 0.0  ;;  %v960_v7 = vmax.f32 %v862_v61, 0.0  ;;  %v1911_v58 = vld [vmem:[#allocation3 + $0x54] sm:$0xf] }
 0x101   : > { %v1570_v8 = vrot.slane %v1568_v63, 7  ;;  %v1595_v10 = vrot.slane %v1593_v1, 7  ;;  %v958_v11 = vmax.f32 %v854_v62, 0.0  ;;  %v875_v12 = vadd.f32 %v5096_v3, %v5533_v31  ;;  %v866_v13 = vpop.f32.mrf.mxu0 }
 0x102   : > { %v4817_v15 = vpack.c.bf16 %v990_v4, %v990_v4  ;;  %v995_v16 = vmin.f32 %v959_v5, 6.0  ;;  %v993_v19 = vmin.f32 %v957_v6, 6.0  ;;  %v996_v21 = vmin.f32 %v960_v7, 6.0  ;;  %v1904_v5 = vld [vmem:[#allocation3 + $0x48] sm:$0xf] }
 0x103   : > { %v1573_v23 = vor.u32 %v1571_v0, %v1570_v8  ;;  %v1574_v26 = vrot.slane %v1570_v8, 4  ;;  %v1598_v29 = vor.u32 %v1596_v2, %v1595_v10  ;;  %v1600_v30 = vrot.slane %v1595_v10, 4  ;;  %v5097_v32 = vpop.f32.mrf.mxu0  ;;  %v1915_v6 = vld [vmem:[#allocation3 + $0x5c] sm:$0x1] }
 0x104   : > { %v1576_v33 = vshrl.u32 %v4817_v15, 16  ;;  %v1579_v34 = vshll.u32 %v4817_v15, 16  ;;  %v4822_v35 = vpack.c.bf16 %v995_v16, %v995_v16  ;;  %v4820_v36 = vpack.c.bf16 %v993_v19, %v993_v19 }
 0x105   : > { %v1891_v38 = vsel %vm5448_vm10, %v1573_v23, %v1890_v9  ;;  %v1599_v39 = vsel %vm5455_vm11, %v1591_v51, %v1598_v29  ;;  %v1902_v40 = vsel %vm5419_vm5, %v1600_v30, %v1901_v14  ;;  %v4823_v41 = vpack.c.bf16 %v996_v21, %v996_v21  ;;  %v869_v42 = vpop.f32.mrf.mxu0 }
 0x106   : > { %1892 = vst [vmem:[#allocation3 + $0x30] sm:$0xf] %v1891_v38  ;;  %1900 = vst.msk [vmem:[#allocation3 + $0x40] sm:$0xf] %vm1859_vm8, %v1599_v39  ;;  %v1578_v43 = vrot.slane %v1576_v33, 7  ;;  %v1619_v44 = vshrl.u32 %v4822_v35, 16  ;;  %v867_v63 = vadd.f32 %v5533_v31, %v866_v13  ;;  %v878_v33 = vadd.f32 %v5097_v32, %v5533_v31 }
 0x107   : > { %1903 = vst [vmem:[#allocation3 + $0x44] sm:$0x1] %v1902_v40  ;;  %v1622_v45 = vshll.u32 %v4822_v35, 16  ;;  %v1602_v46 = vshrl.u32 %v4820_v36, 16  ;;  %v1605_v48 = vshll.u32 %v4820_v36, 16  ;;  %v1627_v49 = vshrl.u32 %v4823_v41, 16  ;;  %v5100_v53 = vpop.f32.mrf.mxu0 }
 0x108   : > { %v1630_v50 = vshll.u32 %v4823_v41, 16  ;;  %v994_v52 = vmin.f32 %v958_v11, 6.0  ;;  %v1581_v51 = vor.u32 %v1579_v34, %v1578_v43  ;;  %v1583_v54 = vrot.slane %v1578_v43, 4  ;;  %v1908_v35 = vld [vmem:[#allocation3 + $0x50] sm:$0x1] }
 0x109   : > { %v1621_v55 = vrot.slane %v1619_v44, 7  ;;  %v1604_v57 = vrot.slane %v1602_v46, 7  ;;  %v1629_v60 = vrot.slane %v1627_v49, 7  ;;  %v963_v62 = vmax.f32 %v875_v12, 0.0  ;;  %v882_v0 = vpop.f32.mrf.mxu0 }
 0x10a   : > { %v4821_v61 = vpack.c.bf16 %v994_v52, %v994_v52  ;;  %v1582_v1 = vsel %vm5455_vm11, %v1574_v26, %v1581_v51  ;;  %v1895_v2 = vsel %vm5419_vm5, %v1583_v54, %v1894_v47  ;;  %v961_v23 = vmax.f32 %v867_v63, 0.0  ;;  %v1925_v54 = vld [vmem:[#allocation3 + $0x6c] sm:$0xf] }
 0x10b   : > { %v1624_v3 = vor.u32 %v1622_v45, %v1621_v55  ;;  %v1625_v4 = vrot.slane %v1621_v55, 4  ;;  %1893 = vst.msk [vmem:[#allocation3 + $0x34] sm:$0xf] %vm1859_vm8, %v1582_v1  ;;  %1896 = vst [vmem:[#allocation3 + $0x38] sm:$0x1] %v1895_v2  ;;  %v1607_v7 = vor.u32 %v1605_v48, %v1604_v57  ;;  %v1608_v8 = vrot.slane %v1604_v57, 4  ;;  %v5101_v11 = vpop.f32.mrf.mxu0 }
 0x10c   : > { %v1632_v9 = vor.u32 %v1630_v50, %v1629_v60  ;;  %v1634_v10 = vrot.slane %v1629_v60, 4  ;;  %v1610_v13 = vshrl.u32 %v4821_v61, 16  ;;  %v1613_v14 = vshll.u32 %v4821_v61, 16 }
 0x10d   : > { %v1912_v12 = vsel %vm5448_vm10, %v1624_v3, %v1911_v58  ;;  %v999_v15 = vmin.f32 %v963_v62, 6.0  ;;  %v1905_v16 = vsel %vm5448_vm10, %v1607_v7, %v1904_v5  ;;  %v885_v26 = vpop.f32.mrf.mxu0  ;;  %v870_v34 = vadd.f32 %v5533_v31, %v869_v42 }
 0x10e   : > { %1913 = vst [vmem:[#allocation3 + $0x54] sm:$0xf] %v1912_v12  ;;  %v1633_v19 = vsel %vm5455_vm11, %v1625_v4, %v1632_v9  ;;  %v1916_v21 = vsel %vm5419_vm5, %v1634_v10, %v1915_v6  ;;  %1906 = vst [vmem:[#allocation3 + $0x48] sm:$0xf] %v1905_v16  ;;  %v1612_v29 = vrot.slane %v1610_v13, 7  ;;  %v997_v36 = vmin.f32 %v961_v23, 6.0 }
 0x10f   : > { %1914 = vst.msk [vmem:[#allocation3 + $0x58] sm:$0xf] %vm1859_vm8, %v1633_v19  ;;  %1917 = vst [vmem:[#allocation3 + $0x5c] sm:$0x1] %v1916_v21  ;;  %v4826_v30 = vpack.c.bf16 %v999_v15, %v999_v15  ;;  %v891_v38 = vadd.f32 %v5100_v53, %v5533_v31  ;;  %v883_v39 = vadd.f32 %v5533_v31, %v882_v0  ;;  %v5104_v41 = vpop.f32.mrf.mxu0  ;;  %v964_v48 = vmax.f32 %v878_v33, 0.0 }
 0x110   : > { %v894_v40 = vadd.f32 %v5101_v11, %v5533_v31  ;;  %v1615_v43 = vor.u32 %v1613_v14, %v1612_v29  ;;  %v1617_v44 = vrot.slane %v1612_v29, 4  ;;  %v4824_v47 = vpack.c.bf16 %v997_v36, %v997_v36 }
 0x111   : > { %v1653_v45 = vshrl.u32 %v4826_v30, 16  ;;  %v1656_v46 = vshll.u32 %v4826_v30, 16  ;;  %v962_v49 = vmax.f32 %v870_v34, 0.0  ;;  %v967_v50 = vmax.f32 %v891_v38, 0.0  ;;  %v5621_v32 = vpop.f32.mrf.mxu0 }
 0x112   : > { %v1616_v42 = vsel %vm5455_vm11, %v1608_v8, %v1615_v43  ;;  %v1909_v52 = vsel %vm5419_vm5, %v1617_v44, %v1908_v35  ;;  %v965_v51 = vmax.f32 %v883_v39, 0.0  ;;  %v1636_v55 = vshrl.u32 %v4824_v47, 16  ;;  %v1918_v8 = vld [vmem:[#allocation3 + $0x60] sm:$0xf] }
 0x113   : > { %v1655_v53 = vrot.slane %v1653_v45, 7  ;;  %1907 = vst.msk [vmem:[#allocation3 + $0x4c] sm:$0xf] %vm1859_vm8, %v1616_v42  ;;  %1910 = vst [vmem:[#allocation3 + $0x50] sm:$0x1] %v1909_v52  ;;  %v1639_v57 = vshll.u32 %v4824_v47, 16  ;;  %v5628_v61 = vpop.f32.mrf.mxu0  ;;  %v886_v11 = vadd.f32 %v5533_v31, %v885_v26 }
 0x114   : > { %v1000_v58 = vmin.f32 %v964_v48, 6.0  ;;  %v998_v60 = vmin.f32 %v962_v49, 6.0  ;;  %v1003_v0 = vmin.f32 %v967_v50, 6.0  ;;  %v1001_v1 = vmin.f32 %v965_v51, 6.0  ;;  %v1929_v26 = vld [vmem:[#allocation3 + $0x74] sm:$0x1] }
 0x115   : > { %v1658_v62 = vor.u32 %v1656_v46, %v1655_v53  ;;  %v1659_v63 = vrot.slane %v1655_v53, 4  ;;  %v1638_v2 = vrot.slane %v1636_v55, 7  ;;  %v968_v5 = vmax.f32 %v894_v40, 0.0  ;;  %v5630_v6 = vpop.f32.mrf.mxu0  ;;  %v1922_v46 = vld [vmem:[#allocation3 + $0x68] sm:$0x1] }
 0x116   : > { %v4827_v3 = vpack.c.bf16 %v1000_v58, %v1000_v58  ;;  %v4825_v4 = vpack.c.bf16 %v998_v60, %v998_v60  ;;  %v4830_v9 = vpack.c.bf16 %v1003_v0, %v1003_v0  ;;  %v4828_v10 = vpack.c.bf16 %v1001_v1, %v1001_v1  ;;  %v1939_v47 = vld [vmem:[#allocation3 + $0x84] sm:$0xf] }
 0x117   : > { %v1926_v7 = vsel %vm5448_vm10, %v1658_v62, %v1925_v54  ;;  %v1641_v12 = vor.u32 %v1639_v57, %v1638_v2  ;;  %v1642_v13 = vrot.slane %v1638_v2, 4  ;;  %v5108_v16 = vpop.f32.mrf.mxu0  ;;  %v1004_v40 = vmin.f32 %v968_v5, 6.0  ;;  %v1932_v54 = vld [vmem:[#allocation3 + $0x78] sm:$0xf] }
 0x118   : > { %1927 = vst [vmem:[#allocation3 + $0x6c] sm:$0xf] %v1926_v7  ;;  %v1661_v14 = vshrl.u32 %v4827_v3, 16  ;;  %v1664_v15 = vshll.u32 %v4827_v3, 16  ;;  %v1644_v19 = vshrl.u32 %v4825_v4, 16  ;;  %v1647_v21 = vshll.u32 %v4825_v4, 16 }
 0x119   : > { %v1687_v23 = vshrl.u32 %v4830_v9, 16  ;;  %v1690_v29 = vshll.u32 %v4830_v9, 16  ;;  %v1919_v30 = vsel %vm5448_vm10, %v1641_v12, %v1918_v8  ;;  %v1670_v34 = vshrl.u32 %v4828_v10, 16  ;;  %v5637_v36 = vpop.f32.mrf.mxu0  ;;  %v5668_v7 = vld [vmem:[#allocation3 + $0xc] sm:$0xff]  }
 0x11a   : > { %v1663_v33 = vrot.slane %v1661_v14, 7  ;;  %v1673_v35 = vshll.u32 %v4828_v10, 16  ;;  %1920 = vst [vmem:[#allocation3 + $0x60] sm:$0xf] %v1919_v30  ;;  %v1646_v38 = vrot.slane %v1644_v19, 7  ;;  %v966_v43 = vmax.f32 %v886_v11, 0.0 }
 0x11b   : > { %v5639_v39 = vrot.slane %v1687_v23, 7  ;;  %v5641_v48 = vrot.slane %v1670_v34, 7  ;;  %v907_v49 = vadd.f32 %v5104_v41, %v5533_v31  ;;  %v5644_v50 = vpop.f32.mrf.mxu0  ;;  %v4831_v1 = vpack.c.bf16 %v1004_v40, %v1004_v40 }
 0x11c   : > { %v1666_v44 = vor.u32 %v1664_v15, %v1663_v33  ;;  %v1668_v45 = vrot.slane %v1663_v33, 4  ;;  %v1649_v42 = vor.u32 %v1647_v21, %v1646_v38  ;;  %v1651_v52 = vrot.slane %v1646_v38, 4  ;;  %v1943_v33 = vld [vmem:[#allocation3 + $0x8c] sm:$0x1] }
 0x11d   : > { %v1692_v53 = vor.u32 %v1690_v29, %v5639_v39  ;;  %v1693_v51 = vrot.slane %v5639_v39, 4  ;;  %v1675_v58 = vor.u32 %v1673_v35, %v5641_v48  ;;  %v1676_v60 = vrot.slane %v5641_v48, 4  ;;  %v5654_v41 = vpop.f32.mrf.mxu0  ;;  %v1957_v48 = vld [vmem:[#allocation3 + $0xa4] sm:$0x1] }
 0x11e   : > { %v1667_v55 = vsel %vm5455_vm11, %v1659_v63, %v1666_v44  ;;  %v1930_v57 = vsel %vm5419_vm5, %v1668_v45, %v1929_v26  ;;  %v1650_v62 = vsel %vm5455_vm11, %v1642_v13, %v1649_v42  ;;  %v1923_v0 = vsel %vm5419_vm5, %v1651_v52, %v1922_v46  ;;  %v1936_v42 = vld [vmem:[#allocation3 + $0x80] sm:$0x1] }
 0x11f   : > { %1928 = vst.msk [vmem:[#allocation3 + $0x70] sm:$0xf] %vm1859_vm8, %v1667_v55  ;;  %1931 = vst [vmem:[#allocation3 + $0x74] sm:$0x1] %v1930_v57  ;;  %v1940_v63 = vsel %vm5448_vm10, %v1692_v53, %v1939_v47  ;;  %v1933_v2 = vsel %vm5448_vm10, %v1675_v58, %v1932_v54  ;;  %v1002_v3 = vmin.f32 %v966_v43, 6.0  ;;  %v971_v4 = vmax.f32 %v907_v49, 0.0  ;;  %v5112_v8 = vpop.f32.mrf.mxu0 }
 0x120   : > { %1921 = vst.msk [vmem:[#allocation3 + $0x64] sm:$0xf] %vm1859_vm8, %v1650_v62  ;;  %1924 = vst [vmem:[#allocation3 + $0x68] sm:$0x1] %v1923_v0  ;;  %v899_v5 = vadd.f32 %v5533_v31, %v5621_v32  ;;  %v1695_v9 = vshrl.u32 %v4831_v1, 16  ;;  %v1698_v10 = vshll.u32 %v4831_v1, 16  ;;  %v910_v11 = vadd.f32 %v5628_v61, %v5533_v31 }
 0x121   : > { %1941 = vst [vmem:[#allocation3 + $0x84] sm:$0xf] %v1940_v63  ;;  %1934 = vst [vmem:[#allocation3 + $0x78] sm:$0xf] %v1933_v2  ;;  %v902_v12 = vadd.f32 %v5533_v31, %v5630_v6  ;;  %v4829_v13 = vpack.c.bf16 %v1002_v3, %v1002_v3  ;;  %v1007_v14 = vmin.f32 %v971_v4, 6.0  ;;  %v923_v19 = vadd.f32 %v5108_v16, %v5533_v31  ;;  %v5675_v21 = vpop.f32.mrf.mxu0 }
 0x122   : > { %v969_v15 = vmax.f32 %v899_v5, 0.0  ;;  %v1697_v32 = vrot.slane %v1695_v9, 7  ;;  %v972_v23 = vmax.f32 %v910_v11, 0.0  ;;  %v2679_v30 = vunpack.c.l.bf16 %v5668_v7  ;;  %v5686_v62 = vld [vmem:[%s6849_s5 + $0x3] ss:$0 sm:$0xff] }
 0x123   : > { %v970_v29 = vmax.f32 %v902_v12, 0.0  ;;  %v1678_v34 = vshrl.u32 %v4829_v13, 16  ;;  %v1681_v35 = vshll.u32 %v4829_v13, 16  ;;  %v4834_v26 = vpack.c.bf16 %v1007_v14, %v1007_v14  ;;  %v5113_v38 = vpop.f32.mrf.mxu0  ;;  %v1953_v0 = vld [vmem:[#allocation3 + $0x9c] sm:$0xf] }
 0x124   : > { %v1005_v61 = vmin.f32 %v969_v15, 6.0  ;;  %v1700_v39 = vor.u32 %v1698_v10, %v1697_v32  ;;  %v1702_v6 = vrot.slane %v1697_v32, 4  ;;  %v1008_v40 = vmin.f32 %v972_v23, 6.0  ;;  %v1946_v14 = vld [vmem:[#allocation3 + $0x90] sm:$0xf] }
 0x125   : > { %v1006_v43 = vmin.f32 %v970_v29, 6.0  ;;  %v1680_v44 = vrot.slane %v1678_v34, 7  ;;  %v1721_v45 = vshrl.u32 %v4834_v26, 16  ;;  %v1724_v16 = vshll.u32 %v4834_v26, 16  ;;  %v5704_v26 = vld [vmem:[%s6849_s5 + $0x4] ss:$0 sm:$0xff] }
 0x126   : > { %v4832_v46 = vpack.c.bf16 %v1005_v61, %v1005_v61  ;;  %v1701_v47 = vsel %vm5455_vm11, %v1693_v51, %v1700_v39  ;;  %v1944_v49 = vsel %vm5419_vm5, %v1702_v6, %v1943_v33  ;;  %v4835_v52 = vpack.c.bf16 %v1008_v40, %v1008_v40  ;;  %v2779_v6 = vld [vmem:[#allocation3 + $0x14] sm:$0x1]  ;;  %v3056_v40 = vld [vmem:[#allocation3 + $0xc] sm:$0xe] }
 0x127   : > { %v4833_v53 = vpack.c.bf16 %v1006_v43, %v1006_v43  ;;  %1942 = vst.msk [vmem:[#allocation3 + $0x88] sm:$0xf] %vm1859_vm8, %v1701_v47  ;;  %1945 = vst [vmem:[#allocation3 + $0x8c] sm:$0x1] %v1944_v49  ;;  %v1683_v54 = vor.u32 %v1681_v35, %v1680_v44  ;;  %v1685_v55 = vrot.slane %v1680_v44, 4  ;;  %v1723_v57 = vrot.slane %v1721_v45, 7 }
 0x128   : > { %v1704_v58 = vshrl.u32 %v4832_v46, 16  ;;  %v1707_v51 = vshll.u32 %v4832_v46, 16  ;;  %v1729_v63 = vshrl.u32 %v4835_v52, 16  ;;  %v1732_v1 = vshll.u32 %v4835_v52, 16  ;;  %v1950_v35 = vld [vmem:[#allocation3 + $0x98] sm:$0x1] }
 0x129   : > { %v1712_v2 = vshrl.u32 %v4833_v53, 16  ;;  %v1684_v3 = vsel %vm5455_vm11, %v1676_v60, %v1683_v54  ;;  %v1937_v4 = vsel %vm5419_vm5, %v1685_v55, %v1936_v42  ;;  %v1726_v5 = vor.u32 %v1724_v16, %v1723_v57  ;;  %v4907_v46 = vld [vmem:[#allocation3 + $0x18] sm:$0xff]  }
 0x12a   : > { %v1727_v8 = vrot.slane %v1723_v57, 4  ;;  %1935 = vst.msk [vmem:[#allocation3 + $0x7c] sm:$0xf] %vm1859_vm8, %v1684_v3  ;;  %1938 = vst [vmem:[#allocation3 + $0x80] sm:$0x1] %v1937_v4  ;;  %v1706_v9 = vrot.slane %v1704_v58, 7  ;;  %v2680_v60 = vunpack.c.h.bf16 %v5668_v7  ;;  %v2715_v32 = vmul.f32 %v5686_v62, %v2679_v30 }
 0x12b   : > { %v1731_v10 = vrot.slane %v1729_v63, 7  ;;  %v1714_v11 = vrot.slane %v1712_v2, 7  ;;  %v1715_v12 = vshll.u32 %v4833_v53, 16  ;;  %v1954_v13 = vsel %vm5448_vm10, %v1726_v5, %v1953_v0  ;;  %v5723_v53 = vld [vmem:[%s6849_s5 + $0x5] ss:$0 sm:$0xff] }
 0x12c   : > { %v975_v15 = vmax.f32 %v923_v19, 0.0  ;;  %1955 = vst [vmem:[#allocation3 + $0x9c] sm:$0xf] %v1954_v13  ;;  %v1709_v23 = vor.u32 %v1707_v51, %v1706_v9  ;;  %v1710_v29 = vrot.slane %v1706_v9, 4  ;;  %v2716_v39 = vmul.f32 %v5686_v62, %v2680_v60  ;;  %v3467_v9 = vld [vmem:[#allocation3 + $0x20] sm:$0x1] }
 0x12d   : > { %v1734_v33 = vor.u32 %v1732_v1, %v1731_v10  ;;  %v1736_v34 = vrot.slane %v1731_v10, 4  ;;  %v1717_v61 = vor.u32 %v1715_v12, %v1714_v11  ;;  %v1719_v38 = vrot.slane %v1714_v11, 4  ;;  %v1967_v10 = vld [vmem:[#allocation3 + $0xb4] sm:$0xf] }
 0x12e   : > { %v1011_v19 = vmin.f32 %v975_v15, 6.0  ;;  %v1947_v43 = vsel %vm5448_vm10, %v1709_v23, %v1946_v14  ;;  %v2747_v16 = vadd.f32 %v2715_v32, %v5556_v18  ;;  %v2748_v52 = vadd.f32 %v2716_v39, %v5559_v28  ;;  %v3744_v23 = vld [vmem:[#allocation3 + $0x18] sm:$0xe] }
 0x12f   : > { %v1735_v44 = vsel %vm5455_vm11, %v1727_v8, %v1734_v33  ;;  %v1958_v45 = vsel %vm5419_vm5, %v1736_v34, %v1957_v48  ;;  %1948 = vst [vmem:[#allocation3 + $0x90] sm:$0xf] %v1947_v43  ;;  %v1718_v47 = vsel %vm5455_vm11, %v1710_v29, %v1717_v61  ;;  %v1951_v49 = vsel %vm5419_vm5, %v1719_v38, %v1950_v35  ;;  %v5743_v8 = vld [vmem:[%s6849_s5 + $0x6] ss:$0 sm:$0xff] }
 0x130   : > { %1956 = vst.msk [vmem:[#allocation3 + $0xa0] sm:$0xf] %vm1859_vm8, %v1735_v44  ;;  %1959 = vst [vmem:[#allocation3 + $0xa4] sm:$0x1] %v1958_v45  ;;  %v4838_v42 = vpack.c.bf16 %v1011_v19, %v1011_v19  ;;  %v2796_v18 = vunpack.c.l.bf16 %v2779_v6  ;;  %v2816_v54 = vmul.f32 %v5704_v26, %v2679_v30  ;;  %v2817_v55 = vmul.f32 %v5704_v26, %v2680_v60  ;;  %v5760_v6 = vld [vmem:[%s6849_s5 + $0x7] ss:$0 sm:$0xff] }
 0x131   : > { %1949 = vst.msk [vmem:[#allocation3 + $0x94] sm:$0xf] %vm1859_vm8, %v1718_v47  ;;  %1952 = vst [vmem:[#allocation3 + $0x98] sm:$0x1] %v1951_v49  ;;  %v3073_v57 = vunpack.c.l.bf16 %v3056_v40  ;;  %v3094_v28 = vmul.f32 %v5723_v53, %v2680_v60  ;;  %v5731_v51 = vunpack.c.l.bf16 %v4907_v46  ;;  %v5738_v5 = vunpack.c.h.bf16 %v4907_v46  ;;  %v5770_v45 = vld [vmem:[%s6849_s5 + $0x8] ss:$0 sm:$0xff] }
 0x132   : > { %v1755_v58 = vshrl.u32 %v4838_v42, 16  ;;  %v1758_v0 = vshll.u32 %v4838_v42, 16  ;;  %v2818_v63 = vmul.f32 %v5704_v26, %v2796_v18  ;;  %v2912_v1 = vrot.slane %v2816_v54, 1 }
 0x133   : > { %v2913_v2 = vrot.slane %v2817_v55, 1  ;;  %v3093_v3 = vmul.f32 %v5723_v53, %v3073_v57  ;;  %v3095_v7 = vmul.f32 %v5723_v53, %v2796_v18  ;;  %v3190_v30 = vrot.slane %v3094_v28, 2 }
 0x134   : > { %v5735_v4 = vrot.slane %v1755_v58, 7  ;;  %v2915_v12 = vrot.slane %v2818_v63, 1  ;;  %v3403_v14 = vmul.f32 %v5731_v51, %v5743_v8  ;;  %v3404_v34 = vmul.f32 %v5738_v5, %v5743_v8  ;;  %v1990_v63 = vld [vmem:[#allocation3 + $0xc] sm:$0xff]  }
 0x135   : > { %v2914_v11 = vsel %vm2222_vm12, %v2912_v1, %v2913_v2  ;;  %v3189_v13 = vrot.slane %v3093_v3, 2  ;;  %v3192_v32 = vrot.slane %v3095_v7, 2  ;;  %v3484_v35 = vunpack.c.l.bf16 %v3467_v9 }
 0x136   : > { %v1760_v48 = vor.u32 %v1758_v0, %v5735_v4  ;;  %v1761_v15 = vrot.slane %v5735_v4, 4  ;;  %v3024_v60 = vadd.f32 %v2914_v11, %v2747_v16  ;;  %v2916_v29 = vsel %vm2222_vm12, %v2913_v2, %v2915_v12  ;;  %v5783_v12 = vld [vmem:[#allocation3 + $0x14] sm:$0x1] }
 0x137   : > { %v3191_v33 = vsel %vm2500_vm13, %v3189_v13, %v3190_v30  ;;  %v3025_v38 = vadd.f32 %v2916_v29, %v2748_v52  ;;  %v3193_v19 = vsel %vm2500_vm13, %v3190_v30, %v3192_v32  ;;  %v3504_v40 = vmul.f32 %v5731_v51, %v5760_v6 }
 0x138   : > { %v1968_v61 = vsel %vm5448_vm10, %v1760_v48, %v1967_v10  ;;  %v3301_v39 = vadd.f32 %v3191_v33, %v3024_v60  ;;  %v3505_v43 = vmul.f32 %v5738_v5, %v5760_v6  ;;  %v3506_v44 = vmul.f32 %v5760_v6, %v3484_v35 }
 0x139   : > { %1969 = vst [vmem:[#allocation3 + $0xb4] sm:$0xf] %v1968_v61  ;;  %v3761_v16 = vunpack.c.l.bf16 %v3744_v23  ;;  %v3302_v46 = vadd.f32 %v3193_v19, %v3025_v38  ;;  %v3782_v49 = vmul.f32 %v5738_v5, %v5770_v45  ;;  %v3783_v42 = vmul.f32 %v5770_v45, %v3484_v35 }
 0x13a   : > { %v3435_v47 = vadd.f32 %v3403_v14, %v3301_v39  ;;  %v3600_v52 = vrot.slane %v3504_v40, 1  ;;  %v3601_v18 = vrot.slane %v3505_v43, 1  ;;  %v3603_v54 = vrot.slane %v3506_v44, 1 }
 0x13b   : > { %v3781_v55 = vmul.f32 %v5770_v45, %v3761_v16  ;;  %v3436_v57 = vadd.f32 %v3404_v34, %v3302_v46  ;;  %v3878_v58 = vrot.slane %v3782_v49, 2  ;;  %v3880_v0 = vrot.slane %v3783_v42, 2 }
 0x13c   : > { %v915_v28 = vadd.f32 %v5533_v31, %v5637_v36  ;;  %v3602_v1 = vsel %vm2222_vm12, %v3600_v52, %v3601_v18  ;;  %v3604_v2 = vsel %vm2222_vm12, %v3601_v18, %v3603_v54  ;;  %v926_v7 = vadd.f32 %v5644_v50, %v5533_v31  ;;  %v5789_v36 = vld [vmem:[%s6850_s6] ss:$0 sm:$0xff]  ;;  %v5803_v54 = vld [vmem:[%s6849_s5 + $0x1] ss:$0 sm:$0xff] }
 0x13d   : > { %v3877_v3 = vrot.slane %v3781_v55, 2  ;;  %v3712_v30 = vadd.f32 %v3602_v1, %v3435_v47  ;;  %v3713_v9 = vadd.f32 %v3604_v2, %v3436_v57  ;;  %v3881_v10 = vsel %vm2500_vm13, %v3878_v58, %v3880_v0  ;;  %v1960_v0 = vld [vmem:[#allocation3 + $0xa8] sm:$0xf] }
 0x13e   : > { %v973_v11 = vmax.f32 %v915_v28, 0.0  ;;  %v976_v14 = vmax.f32 %v926_v7, 0.0  ;;  %v918_v48 = vadd.f32 %v5533_v31, %v5654_v41  ;;  %v2023_v50 = vunpack.c.l.bf16 %v1990_v63 }
 0x13f   : > { %v3879_v13 = vsel %vm2500_vm13, %v3877_v3, %v3878_v58  ;;  %v3990_v32 = vadd.f32 %v3881_v10, %v3713_v9  ;;  %v2024_v29 = vunpack.c.h.bf16 %v1990_v63  ;;  %v2107_v61 = vunpack.c.l.bf16 %v5783_v12  ;;  %v2368_v3 = vld [vmem:[#allocation3 + $0xc] sm:$0xe]  ;;  %v1971_v10 = vld [vmem:[#allocation3 + $0xbc] sm:$0x1] }
 0x140   : > { %v3989_v60 = vadd.f32 %v3879_v13, %v3712_v30  ;;  %v1009_v23 = vmin.f32 %v973_v11, 6.0  ;;  %v1012_v33 = vmin.f32 %v976_v14, 6.0  ;;  %v974_v34 = vmax.f32 %v918_v48, 0.0 }
 0x141   : > { %v2059_v35 = vmul.f32 %v5543_v37, %v2023_v50  ;;  %v4029_v19 = vadd.f32 %v5789_v36, %v3990_v32  ;;  %v2060_v40 = vmul.f32 %v5543_v37, %v2024_v29  ;;  %v2129_v41 = vmul.f32 %v5526_v25, %v2023_v50 }
 0x142   : > { %v4028_v38 = vadd.f32 %v5789_v36, %v3989_v60  ;;  %v4836_v39 = vpack.c.bf16 %v1009_v23, %v1009_v23  ;;  %v4839_v43 = vpack.c.bf16 %v1012_v33, %v1012_v33  ;;  %v1010_v31 = vmin.f32 %v974_v34, 6.0  ;;  %v1964_v60 = vld [vmem:[#allocation3 + $0xb0] sm:$0x1] }
 0x143   : > { %v2130_v44 = vmul.f32 %v5526_v25, %v2024_v29  ;;  %v4061_v46 = vmax.f32 %v4029_v19, 0.0  ;;  %v2131_v37 = vmul.f32 %v5803_v54, %v2107_v61  ;;  %v2228_v28 = vrot.slane %v2129_v41, 1 }
 0x144   : > { %v4060_v16 = vmax.f32 %v4028_v38, 0.0  ;;  %v1738_v47 = vshrl.u32 %v4836_v39, 16  ;;  %v1741_v49 = vshll.u32 %v4836_v39, 16  ;;  %v1763_v42 = vshrl.u32 %v4839_v43, 16 }
 0x145   : > { %v1766_v52 = vshll.u32 %v4839_v43, 16  ;;  %v4837_v18 = vpack.c.bf16 %v1010_v31, %v1010_v31  ;;  %v4093_v57 = vmin.f32 %v4061_v46, 6.0  ;;  %v2229_v2 = vrot.slane %v2130_v44, 1  ;;  %v2780_v43 = vld [vmem:[#allocation3 + $0x20] sm:$0x1] }
 0x146   : > { %v4092_v55 = vmin.f32 %v4060_v16, 6.0  ;;  %v1740_v58 = vrot.slane %v1738_v47, 7  ;;  %v1765_v25 = vrot.slane %v1763_v42, 7  ;;  %v2231_v11 = vrot.slane %v2131_v37, 1  ;;  %v3057_v44 = vld [vmem:[#allocation3 + $0x18] sm:$0xe] }
 0x147   : > { %v1746_v63 = vshrl.u32 %v4837_v18, 16  ;;  %v1749_v1 = vshll.u32 %v4837_v18, 16  ;;  %v2230_v48 = vsel %vm2222_vm12, %v2228_v28, %v2229_v2  ;;  %v2385_v33 = vunpack.c.l.bf16 %v2368_v3 }
 0x148   : > { %v4124_v7 = vpack.c.bf16 %v4093_v57, %v4092_v55  ;;  %v1743_v30 = vor.u32 %v1741_v49, %v1740_v58  ;;  %v1744_v9 = vrot.slane %v1740_v58, 4  ;;  %v1768_v12 = vor.u32 %v1766_v52, %v1765_v25 }
 0x149   : > { %v1770_v13 = vrot.slane %v1765_v25, 4  ;;  %v1748_v14 = vrot.slane %v1746_v63, 7  ;;  %v2232_v32 = vsel %vm2222_vm12, %v2229_v2, %v2231_v11  ;;  %v2337_v23 = vadd.f32 %v2230_v48, %v2059_v35  ;;  %v5821_v35 = vld [vmem:[%s6849_s5 + $0x2] ss:$0 sm:$0xff]  ;;  %v3336_v25 = vld [vmem:[#allocation3 + $0x24] sm:$0xff]  }
 0x14a   : > { %5116 = vmatprep.mubr.msk.bf16.mxu1 %vm4155_vm14, %v4124_v7  ;;  %v1961_v50 = vsel %vm5448_vm10, %v1743_v30, %v1960_v0  ;;  %v1769_v34 = vsel %vm5455_vm11, %v1761_v15, %v1768_v12  ;;  %v2338_v31 = vadd.f32 %v2232_v32, %v2060_v40  ;;  %v2407_v4 = vmul.f32 %v5821_v35, %v2385_v33  ;;  %v3468_v11 = vld [vmem:[#allocation3 + $0x2c] sm:$0x1]  ;;  %v3745_v33 = vld [vmem:[#allocation3 + $0x24] sm:$0xe] }
 0x14b   : > { %1962 = vst [vmem:[#allocation3 + $0xa8] sm:$0xf] %v1961_v50  ;;  %v1972_v38 = vsel %vm5419_vm5, %v1770_v13, %v1971_v10  ;;  %v1751_v19 = vor.u32 %v1749_v1, %v1748_v14  ;;  %v1753_v39 = vrot.slane %v1748_v14, 4  ;;  %1970 = vst.msk [vmem:[#allocation3 + $0xb8] sm:$0xf] %vm1859_vm8, %v1769_v34  ;;  %v2408_v41 = vmul.f32 %v5821_v35, %v2024_v29 }
 0x14c   : > { %1973 = vst [vmem:[#allocation3 + $0xbc] sm:$0x1] %v1972_v38  ;;  %v2409_v15 = vmul.f32 %v5821_v35, %v2107_v61  ;;  %v2717_v40 = vmul.f32 %v5731_v51, %v5686_v62  ;;  %v2718_v47 = vmul.f32 %v5738_v5, %v5686_v62  ;;  %v2506_v49 = vrot.slane %v2407_v4, 2 }
 0x14d   : > { %v1752_v16 = vsel %vm5455_vm11, %v1744_v9, %v1751_v19  ;;  %v1965_v46 = vsel %vm5419_vm5, %v1753_v39, %v1964_v60  ;;  %v2507_v29 = vrot.slane %v2408_v41, 2  ;;  %v2797_v61 = vunpack.c.l.bf16 %v2780_v43 }
 0x14e   : > { %1963 = vst.msk [vmem:[#allocation3 + $0xac] sm:$0xf] %vm1859_vm8, %v1752_v16  ;;  %1966 = vst [vmem:[#allocation3 + $0xb0] sm:$0x1] %v1965_v46  ;;  %v2509_v42 = vrot.slane %v2409_v15, 2  ;;  %v2819_v52 = vmul.f32 %v5731_v51, %v5704_v26  ;;  %v2820_v18 = vmul.f32 %v5738_v5, %v5704_v26  ;;  %v3074_v37 = vunpack.c.l.bf16 %v3057_v44 }
 0x14f   : > { %v3097_v55 = vmul.f32 %v5738_v5, %v5723_v53  ;;  %v2508_v57 = vsel %vm2500_vm13, %v2506_v49, %v2507_v29  ;;  %v2821_v0 = vmul.f32 %v5704_v26, %v2797_v61  ;;  %v3098_v28 = vmul.f32 %v5723_v53, %v2797_v61 }
 0x150   : > { %v2510_v58 = vsel %vm2500_vm13, %v2507_v29, %v2509_v42  ;;  %v2615_v63 = vadd.f32 %v2508_v57, %v2337_v23  ;;  %v2917_v2 = vrot.slane %v2819_v52, 1  ;;  %v2918_v3 = vrot.slane %v2820_v18, 1 }
 0x151   : > { %v2616_v1 = vadd.f32 %v2510_v58, %v2338_v31  ;;  %v2920_v7 = vrot.slane %v2821_v0, 1  ;;  %v3096_v30 = vmul.f32 %v5723_v53, %v3074_v37  ;;  %v3195_v9 = vrot.slane %v3097_v55, 2  ;;  %v5862_v58 = vld [vmem:[%s6848_s4] ss:$0 sm:$0xff] }
 0x152   : > { %v3197_v10 = vrot.slane %v3098_v28, 2  ;;  %v2749_v12 = vadd.f32 %v2717_v40, %v2615_v63  ;;  %v2919_v14 = vsel %vm2222_vm12, %v2917_v2, %v2918_v3  ;;  %v3369_v48 = vunpack.c.l.bf16 %v3336_v25  ;;  %v2091_v28 = vld [vmem:[#allocation3 + $0x20] sm:$0x1]  ;;  %v5870_v2 = vld [vmem:[%s6849_s5] ss:$0 sm:$0xff] }
 0x153   : > { %v2750_v13 = vadd.f32 %v2718_v47, %v2616_v1  ;;  %v2921_v50 = vsel %vm2222_vm12, %v2918_v3, %v2920_v7  ;;  %v3194_v60 = vrot.slane %v3096_v30, 2  ;;  %v3370_v23 = vunpack.c.h.bf16 %v3336_v25  ;;  %v2369_v7 = vld [vmem:[#allocation3 + $0x18] sm:$0xe] }
 0x154   : > { %v3198_v32 = vsel %vm2500_vm13, %v3195_v9, %v3197_v10  ;;  %v3026_v34 = vadd.f32 %v2919_v14, %v2749_v12  ;;  %v3405_v19 = vmul.f32 %v5743_v8, %v3369_v48  ;;  %v3485_v39 = vunpack.c.l.bf16 %v3468_v11 }
 0x155   : > { %v3027_v38 = vadd.f32 %v2921_v50, %v2750_v13  ;;  %v3196_v43 = vsel %vm2500_vm13, %v3194_v60, %v3195_v9  ;;  %v3406_v31 = vmul.f32 %v5743_v8, %v3370_v23  ;;  %v3507_v4 = vmul.f32 %v5760_v6, %v3369_v48 }
 0x156   : > { %v3508_v41 = vmul.f32 %v5760_v6, %v3370_v23  ;;  %v3303_v15 = vadd.f32 %v3196_v43, %v3026_v34  ;;  %v3509_v16 = vmul.f32 %v5760_v6, %v3485_v39  ;;  %v3762_v46 = vunpack.c.l.bf16 %v3745_v33 }
 0x157   : > { %v3304_v44 = vadd.f32 %v3198_v32, %v3027_v38  ;;  %v3605_v40 = vrot.slane %v3507_v4, 1  ;;  %v3785_v49 = vmul.f32 %v5770_v45, %v3370_v23  ;;  %v3786_v29 = vmul.f32 %v5770_v45, %v3485_v39 }
 0x158   : > { %v3606_v47 = vrot.slane %v3508_v41, 1  ;;  %v3437_v42 = vadd.f32 %v3405_v19, %v3303_v15  ;;  %v3608_v52 = vrot.slane %v3509_v16, 1  ;;  %v3784_v18 = vmul.f32 %v5770_v45, %v3762_v46 }
 0x159   : > { %v3438_v61 = vadd.f32 %v3406_v31, %v3304_v44  ;;  %v3883_v55 = vrot.slane %v3785_v49, 2  ;;  %v3885_v57 = vrot.slane %v3786_v29, 2  ;;  %v931_v0 = vadd.f32 %v5862_v58, %v5675_v21 }
 0x15a   : > { %v3607_v37 = vsel %vm2222_vm12, %v3605_v40, %v3606_v47  ;;  %v3609_v25 = vsel %vm2222_vm12, %v3606_v47, %v3608_v52  ;;  %v3882_v1 = vrot.slane %v3784_v18, 2  ;;  %v2061_v3 = vmul.f32 %v5870_v2, %v5731_v51  ;;  %v2650_v47 = vld [vmem:[#allocation3 + $0x24] sm:$0xff]  }
 0x15b   : > { %v3714_v63 = vadd.f32 %v3607_v37, %v3437_v42  ;;  %v3715_v30 = vadd.f32 %v3609_v25, %v3438_v61  ;;  %v3886_v9 = vsel %vm2500_vm13, %v3883_v55, %v3885_v57  ;;  %v977_v10 = vmax.f32 %v931_v0, 0.0  ;;  %v1974_v57 = vld [vmem:[#allocation3 + $0xc0] sm:$0xf] }
 0x15c   : > { %v2062_v21 = vmul.f32 %v5870_v2, %v5738_v5  ;;  %v3884_v11 = vsel %vm2500_vm13, %v3882_v1, %v3883_v55  ;;  %v2108_v12 = vunpack.c.l.bf16 %v2091_v28  ;;  %v2132_v13 = vmul.f32 %v5803_v54, %v5731_v51  ;;  %v2781_v55 = vld [vmem:[#allocation3 + $0x2c] sm:$0x1]  ;;  %v3058_v1 = vld [vmem:[#allocation3 + $0x24] sm:$0xe] }
 0x15d   : > { %v2133_v14 = vmul.f32 %v5803_v54, %v5738_v5  ;;  %v3991_v48 = vadd.f32 %v3884_v11, %v3714_v63  ;;  %v3992_v50 = vadd.f32 %v3886_v9, %v3715_v30  ;;  %v1013_v60 = vmin.f32 %v977_v10, 6.0 }
 0x15e   : > { %v2386_v32 = vunpack.c.l.bf16 %v2369_v7  ;;  %v2134_v23 = vmul.f32 %v5803_v54, %v2108_v12  ;;  %v2233_v33 = vrot.slane %v2132_v13, 1  ;;  %v2411_v38 = vmul.f32 %v5821_v35, %v5738_v5 }
 0x15f   : > { %v2234_v34 = vrot.slane %v2133_v14, 1  ;;  %v4030_v19 = vadd.f32 %v5789_v36, %v3991_v48  ;;  %v4031_v39 = vadd.f32 %v5789_v36, %v3992_v50  ;;  %v4840_v43 = vpack.c.bf16 %v1013_v60, %v1013_v60  ;;  %v5018_v60 = vld [vmem:[#allocation3 + $0x30] sm:$0xff]  }
 0x160   : > { %v2410_v51 = vmul.f32 %v5821_v35, %v2386_v32  ;;  %v2236_v4 = vrot.slane %v2134_v23, 1  ;;  %v2412_v41 = vmul.f32 %v5821_v35, %v2108_v12  ;;  %v2512_v15 = vrot.slane %v2411_v38, 2  ;;  %v3469_v38 = vld [vmem:[#allocation3 + $0x38] sm:$0x1] }
 0x161   : > { %v2235_v31 = vsel %vm2222_vm12, %v2233_v33, %v2234_v34  ;;  %v4062_v44 = vmax.f32 %v4030_v19, 0.0  ;;  %v4063_v16 = vmax.f32 %v4031_v39, 0.0  ;;  %v1772_v46 = vshrl.u32 %v4840_v43, 16 }
 0x162   : > { %v1775_v40 = vshll.u32 %v4840_v43, 16  ;;  %v2237_v5 = vsel %vm2222_vm12, %v2234_v34, %v2236_v4  ;;  %v2339_v49 = vadd.f32 %v2235_v31, %v2061_v3  ;;  %v2511_v29 = vrot.slane %v2410_v51, 2 }
 0x163   : > { %v2514_v42 = vrot.slane %v2412_v41, 2  ;;  %v4094_v61 = vmin.f32 %v4062_v44, 6.0  ;;  %v4095_v52 = vmin.f32 %v4063_v16, 6.0  ;;  %v5891_v18 = vrot.slane %v1772_v46, 7 }
 0x164   : > { %v2340_v37 = vadd.f32 %v2237_v5, %v2062_v21  ;;  %v2513_v0 = vsel %vm2500_vm13, %v2511_v29, %v2512_v15  ;;  %v2683_v25 = vunpack.c.l.bf16 %v2650_v47  ;;  %v2684_v63 = vunpack.c.h.bf16 %v2650_v47  ;;  %v3746_v47 = vld [vmem:[#allocation3 + $0x30] sm:$0xe] }
 0x165   : > { %v2515_v28 = vsel %vm2500_vm13, %v2512_v15, %v2514_v42  ;;  %v4125_v7 = vpack.c.bf16 %v4095_v52, %v4094_v61  ;;  %v1777_v30 = vor.u32 %v1775_v40, %v5891_v18  ;;  %v1778_v3 = vrot.slane %v5891_v18, 4 }
 0x166   : > { %v2617_v9 = vadd.f32 %v2513_v0, %v2339_v49  ;;  %v2618_v10 = vadd.f32 %v2515_v28, %v2340_v37  ;;  %v2719_v11 = vmul.f32 %v5686_v62, %v2683_v25  ;;  %v2720_v21 = vmul.f32 %v5686_v62, %v2684_v63 }
 0x167   : > { %v2798_v12 = vunpack.c.l.bf16 %v2781_v55  ;;  %5117 = vmatmul.mubr.msk.bf16.vlgmr.msra.gmra.mxu1 %vm4155_vm14, %v4125_v7  ;;  %v1975_v13 = vsel %vm5448_vm10, %v1777_v30, %v1974_v57  ;;  %v2822_v14 = vmul.f32 %v5704_v26, %v2683_v25  ;;  %v2823_v48 = vmul.f32 %v5704_v26, %v2684_v63 }
 0x168   : > { %v3075_v50 = vunpack.c.l.bf16 %v3058_v1  ;;  %1976 = vst [vmem:[#allocation3 + $0xc0] sm:$0xf] %v1975_v13  ;;  %v2751_v32 = vadd.f32 %v2719_v11, %v2617_v9  ;;  %v2752_v23 = vadd.f32 %v2720_v21, %v2618_v10  ;;  %v3100_v34 = vmul.f32 %v5723_v53, %v2684_v63  ;;  %v933_v63 = vpop.f32.mrf.mxu0  ;;  %v1383_v10 = vld [vmem:[#allocation3 + $0xc8] sm:$0x1] }
 0x169   : > { %v2824_v33 = vmul.f32 %v5704_v26, %v2798_v12  ;;  %v2922_v19 = vrot.slane %v2822_v14, 1  ;;  %v2923_v39 = vrot.slane %v2823_v48, 1  ;;  %v3101_v51 = vmul.f32 %v5723_v53, %v2798_v12 }
 0x16a   : > { %v3099_v43 = vmul.f32 %v5723_v53, %v3075_v50  ;;  %v3200_v4 = vrot.slane %v3100_v34, 2  ;;  %v5908_v41 = vunpack.c.l.bf16 %v5018_v60  ;;  %v5910_v15 = vunpack.c.h.bf16 %v5018_v60 }
 0x16b   : > { %v2925_v31 = vrot.slane %v2824_v33, 1  ;;  %v2924_v44 = vsel %vm2222_vm12, %v2922_v19, %v2923_v39  ;;  %v3202_v46 = vrot.slane %v3101_v51, 2  ;;  %v3486_v40 = vunpack.c.l.bf16 %v3469_v38 }
 0x16c   : > { %v3199_v16 = vrot.slane %v3099_v43, 2  ;;  %v3028_v49 = vadd.f32 %v2924_v44, %v2751_v32  ;;  %v3407_v29 = vmul.f32 %v5908_v41, %v5743_v8  ;;  %v3408_v42 = vmul.f32 %v5910_v15, %v5743_v8  ;;  %v1994_v32 = vld [vmem:[#allocation3 + $0x24] sm:$0xff]  }
 0x16d   : > { %v2926_v5 = vsel %vm2222_vm12, %v2923_v39, %v2925_v31  ;;  %v3203_v37 = vsel %vm2500_vm13, %v3200_v4, %v3202_v46  ;;  %v3510_v55 = vmul.f32 %v5908_v41, %v5760_v6  ;;  %v3511_v0 = vmul.f32 %v5910_v15, %v5760_v6  ;;  %v2370_v39 = vld [vmem:[#allocation3 + $0x24] sm:$0xe] }
 0x16e   : > { %v3029_v61 = vadd.f32 %v2926_v5, %v2752_v23  ;;  %v3201_v52 = vsel %vm2500_vm13, %v3199_v16, %v3200_v4  ;;  %v3512_v28 = vmul.f32 %v5760_v6, %v3486_v40  ;;  %v3763_v25 = vunpack.c.l.bf16 %v3746_v47  ;;  %v2092_v23 = vld [vmem:[#allocation3 + $0x2c] sm:$0x1] }
 0x16f   : > { %v3305_v57 = vadd.f32 %v3201_v52, %v3028_v49  ;;  %v3610_v7 = vrot.slane %v3510_v55, 1  ;;  %v3788_v30 = vmul.f32 %v5910_v15, %v5770_v45  ;;  %v3789_v9 = vmul.f32 %v5770_v45, %v3486_v40 }
 0x170   : > { %v3306_v1 = vadd.f32 %v3203_v37, %v3029_v61  ;;  %v3611_v21 = vrot.slane %v3511_v0, 1  ;;  %v3613_v12 = vrot.slane %v3512_v28, 1  ;;  %v3787_v13 = vmul.f32 %v5770_v45, %v3763_v25 }
 0x171   : > { %v3439_v11 = vadd.f32 %v3407_v29, %v3305_v57  ;;  %v3888_v48 = vrot.slane %v3788_v30, 2  ;;  %v3890_v50 = vrot.slane %v3789_v9, 2  ;;  %v934_v60 = vadd.f32 %v5862_v58, %v933_v63 }
 0x172   : > { %v3440_v14 = vadd.f32 %v3408_v42, %v3306_v1  ;;  %v3612_v33 = vsel %vm2222_vm12, %v3610_v7, %v3611_v21  ;;  %v3614_v34 = vsel %vm2222_vm12, %v3611_v21, %v3613_v12  ;;  %v3887_v38 = vrot.slane %v3787_v13, 2 }
 0x173   : > { %v1384_v19 = vsel %vm5426_vm7, 0, %v1383_v10  ;;  %v3716_v43 = vadd.f32 %v3612_v33, %v3439_v11  ;;  %v3891_v31 = vsel %vm2500_vm13, %v3888_v48, %v3890_v50  ;;  %v978_v4 = vmax.f32 %v934_v60, 0.0 }
 0x174   : > { %v3717_v51 = vadd.f32 %v3614_v34, %v3440_v14  ;;  %1385 = vst [vmem:[#allocation3 + $0xc8] sm:$0x1] %v1384_v19  ;;  %v3889_v44 = vsel %vm2500_vm13, %v3887_v38, %v3888_v48  ;;  %v2027_v58 = vunpack.c.l.bf16 %v1994_v32  ;;  %v2028_v16 = vunpack.c.h.bf16 %v1994_v32  ;;  %v2782_v32 = vld [vmem:[#allocation3 + $0x38] sm:$0x1] }
 0x175   : > { %v2109_v46 = vunpack.c.l.bf16 %v2092_v23  ;;  %v3993_v40 = vadd.f32 %v3889_v44, %v3716_v43  ;;  %v1014_v5 = vmin.f32 %v978_v4, 6.0  ;;  %v2387_v49 = vunpack.c.l.bf16 %v2370_v39  ;;  %v3059_v4 = vld [vmem:[#allocation3 + $0x30] sm:$0xe] }
 0x176   : > { %v3994_v47 = vadd.f32 %v3891_v31, %v3717_v51  ;;  %v2063_v29 = vmul.f32 %v5870_v2, %v2027_v58  ;;  %v2064_v42 = vmul.f32 %v5870_v2, %v2028_v16  ;;  %v2135_v61 = vmul.f32 %v5803_v54, %v2027_v58 }
 0x177   : > { %v2136_v52 = vmul.f32 %v5803_v54, %v2028_v16  ;;  %v4032_v37 = vadd.f32 %v5789_v36, %v3993_v40  ;;  %v4841_v57 = vpack.c.bf16 %v1014_v5, %v1014_v5  ;;  %v2137_v0 = vmul.f32 %v5803_v54, %v2109_v46 }
 0x178   : > { %v4033_v55 = vadd.f32 %v5789_v36, %v3994_v47  ;;  %v2238_v28 = vrot.slane %v2135_v61, 1  ;;  %v2413_v63 = vmul.f32 %v5821_v35, %v2387_v49  ;;  %v2414_v1 = vmul.f32 %v5821_v35, %v2028_v16 }
 0x179   : > { %v2239_v25 = vrot.slane %v2136_v52, 1  ;;  %v4064_v7 = vmax.f32 %v4032_v37, 0.0  ;;  %v1780_v9 = vshrl.u32 %v4841_v57, 16  ;;  %v1783_v10 = vshll.u32 %v4841_v57, 16  ;;  %v3340_v52 = vld [vmem:[#allocation3 + $0x3c] sm:$0xff]  }
 0x17a   : > { %v4065_v30 = vmax.f32 %v4033_v55, 0.0  ;;  %v2241_v21 = vrot.slane %v2137_v0, 1  ;;  %v2415_v12 = vmul.f32 %v5821_v35, %v2109_v46  ;;  %v2516_v13 = vrot.slane %v2413_v63, 2  ;;  %v3470_v57 = vld [vmem:[#allocation3 + $0x44] sm:$0x1] }
 0x17b   : > { %v2240_v11 = vsel %vm2222_vm12, %v2238_v28, %v2239_v25  ;;  %v4096_v14 = vmin.f32 %v4064_v7, 6.0  ;;  %v1782_v50 = vrot.slane %v1780_v9, 7  ;;  %v1978_v23 = vld [vmem:[#allocation3 + $0xc8] sm:$0x1]  ;;  %v2517_v34 = vrot.slane %v2414_v1, 2 }
 0x17c   : > { %v4097_v48 = vmin.f32 %v4065_v30, 6.0  ;;  %v2341_v60 = vadd.f32 %v2240_v11, %v2063_v29  ;;  %v2242_v33 = vsel %vm2222_vm12, %v2239_v25, %v2241_v21  ;;  %v2519_v38 = vrot.slane %v2415_v12, 2 }
 0x17d   : > { %v2721_v19 = vmul.f32 %v5908_v41, %v5686_v62  ;;  %v1785_v43 = vor.u32 %v1783_v10, %v1782_v50  ;;  %v1787_v51 = vrot.slane %v1782_v50, 4  ;;  %v2342_v31 = vadd.f32 %v2242_v33, %v2064_v42 }
 0x17e   : > { %v4126_v39 = vpack.c.bf16 %v4097_v48, %v4096_v14  ;;  %v2518_v44 = vsel %vm2500_vm13, %v2516_v13, %v2517_v34  ;;  %v2520_v58 = vsel %vm2500_vm13, %v2517_v34, %v2519_v38  ;;  %v2722_v16 = vmul.f32 %v5910_v15, %v5686_v62  ;;  %v3747_v13 = vld [vmem:[#allocation3 + $0x3c] sm:$0xe] }
 0x17f   : > { %v2799_v46 = vunpack.c.l.bf16 %v2782_v32  ;;  %v1786_v40 = vsel %vm5455_vm11, %v1778_v3, %v1785_v43  ;;  %v1979_v47 = vsel %vm5419_vm5, %v1787_v51, %v1978_v23  ;;  %v2619_v5 = vadd.f32 %v2518_v44, %v2341_v60 }
 0x180   : > { %5120 = vmatprep.mubr.msk.bf16.mxu1 %vm4155_vm14, %v4126_v39  ;;  %v2620_v49 = vadd.f32 %v2520_v58, %v2342_v31  ;;  %1977 = vst.msk [vmem:[#allocation3 + $0xc4] sm:$0xf] %vm1859_vm8, %v1786_v40  ;;  %1980 = vst [vmem:[#allocation3 + $0xc8] sm:$0x1] %v1979_v47  ;;  %v2825_v29 = vmul.f32 %v5908_v41, %v5704_v26  ;;  %v2826_v42 = vmul.f32 %v5910_v15, %v5704_v26  ;;  %v2093_v47 = vld [vmem:[#allocation3 + $0x38] sm:$0x1] }
 0x181   : > { %v2827_v61 = vmul.f32 %v5704_v26, %v2799_v46  ;;  %v3076_v18 = vunpack.c.l.bf16 %v3059_v4  ;;  %v2753_v22 = vadd.f32 %v2721_v19, %v2619_v5  ;;  %v3103_v37 = vmul.f32 %v5910_v15, %v5723_v53 }
 0x182   : > { %v2754_v3 = vadd.f32 %v2722_v16, %v2620_v49  ;;  %v3104_v55 = vmul.f32 %v5723_v53, %v2799_v46  ;;  %v2927_v0 = vrot.slane %v2825_v29, 1  ;;  %v2928_v28 = vrot.slane %v2826_v42, 1 }
 0x183   : > { %v2930_v25 = vrot.slane %v2827_v61, 1  ;;  %v3102_v63 = vmul.f32 %v5723_v53, %v3076_v18  ;;  %v3205_v1 = vrot.slane %v3103_v37, 2  ;;  %v3373_v30 = vunpack.c.l.bf16 %v3340_v52  ;;  %v2371_v61 = vld [vmem:[#allocation3 + $0x30] sm:$0xe] }
 0x184   : > { %v3207_v7 = vrot.slane %v3104_v55, 2  ;;  %v3374_v9 = vunpack.c.h.bf16 %v3340_v52  ;;  %v2929_v10 = vsel %vm2222_vm12, %v2927_v0, %v2928_v28  ;;  %v3487_v12 = vunpack.c.l.bf16 %v3470_v57 }
 0x185   : > { %v2931_v11 = vsel %vm2222_vm12, %v2928_v28, %v2930_v25  ;;  %v3204_v21 = vrot.slane %v3102_v63, 2  ;;  %v3030_v14 = vadd.f32 %v2929_v10, %v2753_v22  ;;  %v3409_v60 = vmul.f32 %v5743_v8, %v3373_v30 }
 0x186   : > { %v3031_v48 = vadd.f32 %v2931_v11, %v2754_v3  ;;  %v3208_v50 = vsel %vm2500_vm13, %v3205_v1, %v3207_v7  ;;  %v3410_v23 = vmul.f32 %v5743_v8, %v3374_v9  ;;  %v3513_v33 = vmul.f32 %v5760_v6, %v3373_v30  ;;  %v2654_v7 = vld [vmem:[#allocation3 + $0x3c] sm:$0xff]  }
 0x187   : > { %v3206_v32 = vsel %vm2500_vm13, %v3204_v21, %v3205_v1  ;;  %v3514_v34 = vmul.f32 %v5760_v6, %v3374_v9  ;;  %v3515_v39 = vmul.f32 %v5760_v6, %v3487_v12  ;;  %v3764_v43 = vunpack.c.l.bf16 %v3747_v13 }
 0x188   : > { %v3307_v38 = vadd.f32 %v3206_v32, %v3030_v14  ;;  %v3308_v19 = vadd.f32 %v3208_v50, %v3031_v48  ;;  %v3615_v51 = vrot.slane %v3513_v33, 1  ;;  %v3791_v4 = vmul.f32 %v5770_v45, %v3374_v9 }
 0x189   : > { %v3616_v31 = vrot.slane %v3514_v34, 1  ;;  %v3792_v44 = vmul.f32 %v5770_v45, %v3487_v12  ;;  %v3618_v46 = vrot.slane %v3515_v39, 1  ;;  %v3790_v40 = vmul.f32 %v5770_v45, %v3764_v43  ;;  %v2783_v43 = vld [vmem:[#allocation3 + $0x44] sm:$0x1] }
 0x18a   : > { %v3441_v58 = vadd.f32 %v3409_v60, %v3307_v38  ;;  %v3442_v16 = vadd.f32 %v3410_v23, %v3308_v19  ;;  %v3893_v49 = vrot.slane %v3791_v4, 2  ;;  %v2065_v42 = vmul.f32 %v5870_v2, %v5908_v41 }
 0x18b   : > { %v3617_v5 = vsel %vm2222_vm12, %v3615_v51, %v3616_v31  ;;  %v3895_v29 = vrot.slane %v3792_v44, 2  ;;  %v3619_v18 = vsel %vm2222_vm12, %v3616_v31, %v3618_v46  ;;  %v3892_v22 = vrot.slane %v3790_v40, 2 }
 0x18c   : > { %v3718_v52 = vadd.f32 %v3617_v5, %v3441_v58  ;;  %v2066_v3 = vmul.f32 %v5870_v2, %v5910_v15  ;;  %v3719_v37 = vadd.f32 %v3619_v18, %v3442_v16  ;;  %v2110_v57 = vunpack.c.l.bf16 %v2093_v47  ;;  %v3060_v58 = vld [vmem:[#allocation3 + $0x3c] sm:$0xe] }
 0x18d   : > { %v3896_v55 = vsel %vm2500_vm13, %v3893_v49, %v3895_v29  ;;  %v2138_v0 = vmul.f32 %v5803_v54, %v5908_v41  ;;  %v3894_v28 = vsel %vm2500_vm13, %v3892_v22, %v3893_v49  ;;  %v2139_v25 = vmul.f32 %v5803_v54, %v5910_v15 }
 0x18e   : > { %v2388_v63 = vunpack.c.l.bf16 %v2371_v61  ;;  %v2417_v1 = vmul.f32 %v5821_v35, %v5910_v15  ;;  %v3995_v30 = vadd.f32 %v3894_v28, %v3718_v52  ;;  %v3996_v9 = vadd.f32 %v3896_v55, %v3719_v37  ;;  %v5019_v61 = vld [vmem:[#allocation3 + $0x48] sm:$0xff]   ;;  %v3471_v37 = vld [vmem:[#allocation3 + $0x50] sm:$0x1] }
 0x18f   : > { %v2140_v10 = vmul.f32 %v5803_v54, %v2110_v57  ;;  %v2243_v11 = vrot.slane %v2138_v0, 1  ;;  %v2244_v21 = vrot.slane %v2139_v25, 1  ;;  %v2418_v41 = vmul.f32 %v5821_v35, %v2110_v57 }
 0x190   : > { %v2416_v12 = vmul.f32 %v5821_v35, %v2388_v63  ;;  %v2522_v13 = vrot.slane %v2417_v1, 2  ;;  %v4034_v14 = vadd.f32 %v5789_v36, %v3995_v30  ;;  %v4035_v48 = vadd.f32 %v5789_v36, %v3996_v9 }
 0x191   : > { %v2246_v50 = vrot.slane %v2140_v10, 1  ;;  %v2687_v60 = vunpack.c.l.bf16 %v2654_v7  ;;  %v2245_v15 = vsel %vm2222_vm12, %v2243_v11, %v2244_v21  ;;  %v2524_v23 = vrot.slane %v2418_v41, 2  ;;  %v3748_v41 = vld [vmem:[#allocation3 + $0x48] sm:$0xe] }
 0x192   : > { %v2521_v32 = vrot.slane %v2416_v12, 2  ;;  %v2688_v33 = vunpack.c.h.bf16 %v2654_v7  ;;  %v4066_v34 = vmax.f32 %v4034_v14, 0.0  ;;  %v4067_v38 = vmax.f32 %v4035_v48, 0.0 }
 0x193   : > { %v2247_v19 = vsel %vm2222_vm12, %v2244_v21, %v2246_v50  ;;  %v2343_v39 = vadd.f32 %v2245_v15, %v2065_v42  ;;  %v2525_v4 = vsel %vm2500_vm13, %v2522_v13, %v2524_v23  ;;  %v2723_v44 = vmul.f32 %v5686_v62, %v2687_v60  ;;  %v1998_v23 = vld [vmem:[#allocation3 + $0x3c] sm:$0xff]  }
 0x194   : > { %v2344_v51 = vadd.f32 %v2247_v19, %v2066_v3  ;;  %v2523_v31 = vsel %vm2500_vm13, %v2521_v32, %v2522_v13  ;;  %v4098_v16 = vmin.f32 %v4066_v34, 6.0  ;;  %v4099_v46 = vmin.f32 %v4067_v38, 6.0 }
 0x195   : > { %v2621_v40 = vadd.f32 %v2523_v31, %v2343_v39  ;;  %v2724_v47 = vmul.f32 %v5686_v62, %v2688_v33  ;;  %v2800_v49 = vunpack.c.l.bf16 %v2783_v43  ;;  %v2828_v29 = vmul.f32 %v5704_v26, %v2687_v60 }
 0x196   : > { %v2622_v5 = vadd.f32 %v2525_v4, %v2344_v51  ;;  %v2829_v42 = vmul.f32 %v5704_v26, %v2688_v33  ;;  %v4127_v18 = vpack.c.bf16 %v4099_v46, %v4098_v16  ;;  %v3077_v22 = vunpack.c.l.bf16 %v3060_v58  ;;  %v2094_v16 = vld [vmem:[#allocation3 + $0x44] sm:$0x1] }
 0x197   : > { %v2755_v52 = vadd.f32 %v2723_v44, %v2621_v40  ;;  %v3106_v3 = vmul.f32 %v5723_v53, %v2688_v33  ;;  %v2830_v57 = vmul.f32 %v5704_v26, %v2800_v49  ;;  %v2932_v0 = vrot.slane %v2828_v29, 1 }
 0x198   : > { %v2756_v55 = vadd.f32 %v2724_v47, %v2622_v5  ;;  %v2933_v28 = vrot.slane %v2829_v42, 1  ;;  %5121 = vmatmul.mubr.msk.bf16.gmra.mxu1 %vm4155_vm14, %v4127_v18  ;;  %v3105_v62 = vmul.f32 %v5723_v53, %v3077_v22  ;;  %v3107_v25 = vmul.f32 %v5723_v53, %v2800_v49  ;;  %v2372_v5 = vld [vmem:[#allocation3 + $0x3c] sm:$0xe] }
 0x199   : > { %v3210_v63 = vrot.slane %v3106_v3, 2  ;;  %v6015_v1 = vunpack.c.l.bf16 %v5019_v61  ;;  %v2935_v30 = vrot.slane %v2830_v57, 1  ;;  %v6018_v9 = vunpack.c.h.bf16 %v5019_v61 }
 0x19a   : > { %v2934_v7 = vsel %vm2222_vm12, %v2932_v0, %v2933_v28  ;;  %v3488_v10 = vunpack.c.l.bf16 %v3471_v37  ;;  %v3209_v21 = vrot.slane %v3105_v62, 2  ;;  %v3212_v26 = vrot.slane %v3107_v25, 2 }
 0x19b   : > { %v3032_v11 = vadd.f32 %v2934_v7, %v2755_v52  ;;  %v3411_v12 = vmul.f32 %v6015_v1, %v5743_v8  ;;  %v2936_v13 = vsel %vm2222_vm12, %v2933_v28, %v2935_v30  ;;  %v3412_v53 = vmul.f32 %v6018_v9, %v5743_v8 }
 0x19c   : > { %v3516_v14 = vmul.f32 %v6015_v1, %v5760_v6  ;;  %v3517_v48 = vmul.f32 %v6018_v9, %v5760_v6  ;;  %v3033_v50 = vadd.f32 %v2936_v13, %v2756_v55  ;;  %v3211_v60 = vsel %vm2500_vm13, %v3209_v21, %v3210_v63 }
 0x19d   : > { %v3213_v15 = vsel %vm2500_vm13, %v3210_v63, %v3212_v26  ;;  %v3518_v32 = vmul.f32 %v5760_v6, %v3488_v10  ;;  %v3309_v33 = vadd.f32 %v3211_v60, %v3032_v11  ;;  %v3765_v19 = vunpack.c.l.bf16 %v3748_v41 }
 0x19e   : > { %v3620_v34 = vrot.slane %v3516_v14, 1  ;;  %v3621_v38 = vrot.slane %v3517_v48, 1  ;;  %v3310_v39 = vadd.f32 %v3213_v15, %v3033_v50  ;;  %v3794_v43 = vmul.f32 %v6018_v9, %v5770_v45  ;;  %v2784_v48 = vld [vmem:[#allocation3 + $0x50] sm:$0x1] }
 0x19f   : > { %v3623_v8 = vrot.slane %v3518_v32, 1  ;;  %v3795_v51 = vmul.f32 %v5770_v45, %v3488_v10  ;;  %v3443_v31 = vadd.f32 %v3411_v12, %v3309_v33  ;;  %v3793_v44 = vmul.f32 %v5770_v45, %v3765_v19  ;;  %v6053_v12 = vld [vmem:[%s6849_s5 + $0x3] ss:$0 sm:$0xff]  ;;  %v3061_v32 = vld [vmem:[#allocation3 + $0x48] sm:$0xe] }
 0x1a0   : > { %v3622_v4 = vsel %vm2222_vm12, %v3620_v34, %v3621_v38  ;;  %v2031_v58 = vunpack.c.l.bf16 %v1998_v23  ;;  %v3444_v6 = vadd.f32 %v3412_v53, %v3310_v39  ;;  %v3898_v40 = vrot.slane %v3794_v43, 2 }
 0x1a1   : > { %v3624_v46 = vsel %vm2222_vm12, %v3621_v38, %v3623_v8  ;;  %v3900_v47 = vrot.slane %v3795_v51, 2  ;;  %v3720_v49 = vadd.f32 %v3622_v4, %v3443_v31  ;;  %v3897_v29 = vrot.slane %v3793_v44, 2  ;;  %v6066_v31 = vld [vmem:[%s6849_s5 + $0x4] ss:$0 sm:$0xff] }
 0x1a2   : > { %v2032_v42 = vunpack.c.h.bf16 %v1998_v23  ;;  %v2067_v61 = vmul.f32 %v5870_v2, %v2031_v58  ;;  %v3721_v18 = vadd.f32 %v3624_v46, %v3444_v6  ;;  %v2111_v22 = vunpack.c.l.bf16 %v2094_v16  ;;  %v3344_v16 = vld [vmem:[#allocation3 + $0x54] sm:$0xff]  }
 0x1a3   : > { %v3901_v52 = vsel %vm2500_vm13, %v3898_v40, %v3900_v47  ;;  %v2141_v3 = vmul.f32 %v5803_v54, %v2031_v58  ;;  %v3899_v45 = vsel %vm2500_vm13, %v3897_v29, %v3898_v40  ;;  %v2389_v57 = vunpack.c.l.bf16 %v2372_v5  ;;  %v6076_v47 = vld [vmem:[%s6849_s5 + $0x5] ss:$0 sm:$0xff] }
 0x1a4   : > { %v2068_v37 = vmul.f32 %v5870_v2, %v2032_v42  ;;  %v2142_v55 = vmul.f32 %v5803_v54, %v2032_v42  ;;  %v3997_v0 = vadd.f32 %v3899_v45, %v3720_v49  ;;  %v3998_v28 = vadd.f32 %v3901_v52, %v3721_v18  ;;  %v3472_v49 = vld [vmem:[#allocation3 + $0x5c] sm:$0x1] }
 0x1a5   : > { %v2143_v62 = vmul.f32 %v5803_v54, %v2111_v22  ;;  %v2248_v25 = vrot.slane %v2141_v3, 1  ;;  %v2419_v7 = vmul.f32 %v5821_v35, %v2389_v57  ;;  %v2420_v30 = vmul.f32 %v5821_v35, %v2032_v42 }
 0x1a6   : > { %v2249_v63 = vrot.slane %v2142_v55, 1  ;;  %v2421_v10 = vmul.f32 %v5821_v35, %v2111_v22  ;;  %v4036_v11 = vadd.f32 %v5789_v36, %v3997_v0  ;;  %v4037_v21 = vadd.f32 %v5789_v36, %v3998_v28 }
 0x1a7   : > { %v2251_v26 = vrot.slane %v2143_v62, 1  ;;  %v2725_v54 = vmul.f32 %v6053_v12, %v6015_v1  ;;  %v2526_v13 = vrot.slane %v2419_v7, 2  ;;  %v2527_v53 = vrot.slane %v2420_v30, 2  ;;  %v3749_v30 = vld [vmem:[#allocation3 + $0x54] sm:$0xe] }
 0x1a8   : > { %v2250_v41 = vsel %vm2222_vm12, %v2248_v25, %v2249_v63  ;;  %v2529_v14 = vrot.slane %v2421_v10, 2  ;;  %v4068_v50 = vmax.f32 %v4036_v11, 0.0  ;;  %v4069_v60 = vmax.f32 %v4037_v21, 0.0 }
 0x1a9   : > { %v2252_v15 = vsel %vm2222_vm12, %v2249_v63, %v2251_v26  ;;  %v2345_v36 = vadd.f32 %v2250_v41, %v2067_v61  ;;  %v2528_v33 = vsel %vm2500_vm13, %v2526_v13, %v2527_v53  ;;  %v2726_v38 = vmul.f32 %v6053_v12, %v6018_v9  ;;  %v6088_v63 = vld [vmem:[%s6849_s5 + $0x6] ss:$0 sm:$0xff]  ;;  %v6096_v26 = vld [vmem:[%s6849_s5 + $0x7] ss:$0 sm:$0xff] }
 0x1aa   : > { %v2346_v23 = vadd.f32 %v2252_v15, %v2068_v37  ;;  %v2530_v34 = vsel %vm2500_vm13, %v2527_v53, %v2529_v14  ;;  %v4100_v19 = vmin.f32 %v4068_v50, 6.0  ;;  %v4101_v39 = vmin.f32 %v4069_v60, 6.0  ;;  %v6105_v15 = vld [vmem:[%s6849_s5 + $0x8] ss:$0 sm:$0xff] }
 0x1ab   : > { %v2623_v8 = vadd.f32 %v2528_v33, %v2345_v36  ;;  %v2801_v43 = vunpack.c.l.bf16 %v2784_v48  ;;  %v2831_v4 = vmul.f32 %v6066_v31, %v6015_v1  ;;  %v2832_v44 = vmul.f32 %v6066_v31, %v6018_v9 }
 0x1ac   : > { %v2624_v51 = vadd.f32 %v2530_v34, %v2346_v23  ;;  %v3078_v58 = vunpack.c.l.bf16 %v3061_v32  ;;  %v4128_v6 = vpack.c.bf16 %v4101_v39, %v4100_v19  ;;  %v3109_v5 = vmul.f32 %v6076_v47, %v6018_v9 }
 0x1ad   : > { %v2757_v46 = vadd.f32 %v2725_v54, %v2623_v8  ;;  %v2833_v40 = vmul.f32 %v6066_v31, %v2801_v43  ;;  %v2937_v42 = vrot.slane %v2831_v4, 1  ;;  %v2938_v61 = vrot.slane %v2832_v44, 1 }
 0x1ae   : > { %v2758_v29 = vadd.f32 %v2726_v38, %v2624_v51  ;;  %v3108_v18 = vmul.f32 %v6076_v47, %v3078_v58  ;;  %5124 = vmatprep.mubr.msk.bf16.mxu1 %vm4155_vm14, %v4128_v6  ;;  %v3110_v22 = vmul.f32 %v6076_v47, %v2801_v43  ;;  %v3215_v3 = vrot.slane %v3109_v5, 2  ;;  %v2095_v38 = vld [vmem:[#allocation3 + $0x50] sm:$0x1]  ;;  %v2373_v51 = vld [vmem:[#allocation3 + $0x48] sm:$0xe] }
 0x1af   : > { %v2940_v52 = vrot.slane %v2833_v40, 1  ;;  %v3377_v45 = vunpack.c.l.bf16 %v3344_v16  ;;  %v2939_v37 = vsel %vm2222_vm12, %v2937_v42, %v2938_v61  ;;  %v3378_v57 = vunpack.c.h.bf16 %v3344_v16 }
 0x1b0   : > { %v3214_v55 = vrot.slane %v3108_v18, 2  ;;  %v3489_v0 = vunpack.c.l.bf16 %v3472_v49  ;;  %v3034_v62 = vadd.f32 %v2939_v37, %v2757_v46  ;;  %v3217_v25 = vrot.slane %v3110_v22, 2 }
 0x1b1   : > { %v2941_v28 = vsel %vm2222_vm12, %v2938_v61, %v2940_v52  ;;  %v3413_v7 = vmul.f32 %v6088_v63, %v3377_v45  ;;  %v3414_v21 = vmul.f32 %v6088_v63, %v3378_v57  ;;  %v3519_v54 = vmul.f32 %v6096_v26, %v3377_v45  ;;  %v2658_v45 = vld [vmem:[#allocation3 + $0x54] sm:$0xff]  }
 0x1b2   : > { %v3035_v10 = vadd.f32 %v2941_v28, %v2758_v29  ;;  %v3216_v11 = vsel %vm2500_vm13, %v3214_v55, %v3215_v3  ;;  %v3218_v41 = vsel %vm2500_vm13, %v3215_v3, %v3217_v25  ;;  %v3520_v53 = vmul.f32 %v6096_v26, %v3378_v57  ;;  %v6120_v29 = vld [vmem:[%s6849_s5 + $0x1] ss:$0 sm:$0xff] }
 0x1b3   : > { %v3311_v13 = vadd.f32 %v3216_v11, %v3034_v62  ;;  %v3521_v14 = vmul.f32 %v6096_v26, %v3489_v0  ;;  %v3625_v50 = vrot.slane %v3519_v54, 1  ;;  %v3766_v60 = vunpack.c.l.bf16 %v3749_v30 }
 0x1b4   : > { %v3312_v48 = vadd.f32 %v3218_v41, %v3035_v10  ;;  %v3797_v36 = vmul.f32 %v6105_v15, %v3378_v57  ;;  %v3626_v23 = vrot.slane %v3520_v53, 1  ;;  %v3798_v34 = vmul.f32 %v6105_v15, %v3489_v0  ;;  %v2785_v53 = vld [vmem:[#allocation3 + $0x5c] sm:$0x1] }
 0x1b5   : > { %v3445_v32 = vadd.f32 %v3413_v7, %v3311_v13  ;;  %v3628_v33 = vrot.slane %v3521_v14, 1  ;;  %v3796_v39 = vmul.f32 %v6105_v15, %v3766_v60  ;;  %v2069_v43 = vmul.f32 %v5870_v2, %v6015_v1 }
 0x1b6   : > { %v3446_v19 = vadd.f32 %v3414_v21, %v3312_v48  ;;  %v3903_v8 = vrot.slane %v3797_v36, 2  ;;  %v3627_v4 = vsel %vm2222_vm12, %v3625_v50, %v3626_v23  ;;  %v3905_v58 = vrot.slane %v3798_v34, 2  ;;  %v3062_v36 = vld [vmem:[#allocation3 + $0x54] sm:$0xe] }
 0x1b7   : > { %v3629_v44 = vsel %vm2222_vm12, %v3626_v23, %v3628_v33  ;;  %v2070_v16 = vmul.f32 %v5870_v2, %v6018_v9  ;;  %v3722_v6 = vadd.f32 %v3627_v4, %v3445_v32  ;;  %v3902_v40 = vrot.slane %v3796_v39, 2 }
 0x1b8   : > { %v3723_v46 = vadd.f32 %v3629_v44, %v3446_v19  ;;  %v2112_v5 = vunpack.c.l.bf16 %v2095_v38  ;;  %v3906_v49 = vsel %vm2500_vm13, %v3903_v8, %v3905_v58  ;;  %v2144_v42 = vmul.f32 %v6120_v29, %v6015_v1  ;;  %v6134_v1 = vld [vmem:[%s6850_s6] ss:$0 sm:$0xff]  ;;  %v5020_v44 = vld [vmem:[#allocation3 + $0x60] sm:$0xff]  }
 0x1b9   : > { %v2145_v61 = vmul.f32 %v6120_v29, %v6018_v9  ;;  %v2390_v18 = vunpack.c.l.bf16 %v2373_v51  ;;  %v3904_v2 = vsel %vm2500_vm13, %v3902_v40, %v3903_v8  ;;  %v2423_v3 = vmul.f32 %v5821_v35, %v6018_v9  ;;  %v3473_v40 = vld [vmem:[#allocation3 + $0x68] sm:$0x1] }
 0x1ba   : > { %v4000_v52 = vadd.f32 %v3906_v49, %v3723_v46  ;;  %v2146_v22 = vmul.f32 %v6120_v29, %v2112_v5  ;;  %v3999_v37 = vadd.f32 %v3904_v2, %v3722_v6  ;;  %v2253_v55 = vrot.slane %v2144_v42, 1 }
 0x1bb   : > { %v2254_v57 = vrot.slane %v2145_v61, 1  ;;  %v2422_v0 = vmul.f32 %v5821_v35, %v2390_v18  ;;  %v2424_v25 = vmul.f32 %v5821_v35, %v2112_v5  ;;  %v2532_v7 = vrot.slane %v2423_v3, 2 }
 0x1bc   : > { %v4039_v28 = vadd.f32 %v6134_v1, %v4000_v52  ;;  %v2256_v62 = vrot.slane %v2146_v22, 1  ;;  %v4038_v30 = vadd.f32 %v6134_v1, %v3999_v37  ;;  %v2691_v11 = vunpack.c.l.bf16 %v2658_v45 }
 0x1bd   : > { %v2255_v9 = vsel %vm2222_vm12, %v2253_v55, %v2254_v57  ;;  %v2531_v10 = vrot.slane %v2422_v0, 2  ;;  %v2534_v13 = vrot.slane %v2424_v25, 2  ;;  %v2692_v60 = vunpack.c.h.bf16 %v2658_v45 }
 0x1be   : > { %v4071_v21 = vmax.f32 %v4039_v28, 0.0  ;;  %v2257_v54 = vsel %vm2222_vm12, %v2254_v57, %v2256_v62  ;;  %v2347_v41 = vadd.f32 %v2255_v9, %v2069_v43  ;;  %v4070_v14 = vmax.f32 %v4038_v30, 0.0  ;;  %v3750_v57 = vld [vmem:[#allocation3 + $0x60] sm:$0xe] }
 0x1bf   : > { %v2348_v48 = vadd.f32 %v2257_v54, %v2070_v16  ;;  %v2533_v50 = vsel %vm2500_vm13, %v2531_v10, %v2532_v7  ;;  %v2535_v32 = vsel %vm2500_vm13, %v2532_v7, %v2534_v13  ;;  %v2727_v33 = vmul.f32 %v6053_v12, %v2691_v11  ;;  %v2002_v13 = vld [vmem:[#allocation3 + $0x54] sm:$0xff]  }
 0x1c0   : > { %v4103_v35 = vmin.f32 %v4071_v21, 6.0  ;;  %v2625_v23 = vadd.f32 %v2533_v50, %v2347_v41  ;;  %v4102_v34 = vmin.f32 %v4070_v14, 6.0  ;;  %v2728_v19 = vmul.f32 %v6053_v12, %v2692_v60 }
 0x1c1   : > { %v2626_v38 = vadd.f32 %v2535_v32, %v2348_v48  ;;  %v2802_v39 = vunpack.c.l.bf16 %v2785_v53  ;;  %v2834_v43 = vmul.f32 %v6066_v31, %v2691_v11  ;;  %v2835_v51 = vmul.f32 %v6066_v31, %v2692_v60 }
 0x1c2   : > { %v2759_v8 = vadd.f32 %v2727_v33, %v2625_v23  ;;  %v3079_v4 = vunpack.c.l.bf16 %v3062_v36  ;;  %v4129_v58 = vpack.c.bf16 %v4103_v35, %v4102_v34  ;;  %v3112_v46 = vmul.f32 %v6076_v47, %v2692_v60 }
 0x1c3   : > { %v2760_v16 = vadd.f32 %v2728_v19, %v2626_v38  ;;  %v2836_v6 = vmul.f32 %v6066_v31, %v2802_v39  ;;  %v2942_v5 = vrot.slane %v2834_v43, 1  ;;  %v2943_v49 = vrot.slane %v2835_v51, 1  ;;  %v2096_v19 = vld [vmem:[#allocation3 + $0x5c] sm:$0x1] }
 0x1c4   : > { %v3111_v42 = vmul.f32 %v6076_v47, %v3079_v4  ;;  %v3113_v61 = vmul.f32 %v6076_v47, %v2802_v39  ;;  %5125 = vmatmul.mubr.msk.bf16.gmra.mxu1 %vm4155_vm14, %v4129_v58  ;;  %v3220_v2 = vrot.slane %v3112_v46, 2  ;;  %v6152_v52 = vunpack.c.l.bf16 %v5020_v44  ;;  %v2374_v4 = vld [vmem:[#allocation3 + $0x54] sm:$0xe] }
 0x1c5   : > { %v2945_v18 = vrot.slane %v2836_v6, 1  ;;  %v6154_v22 = vunpack.c.h.bf16 %v5020_v44  ;;  %v2944_v3 = vsel %vm2222_vm12, %v2942_v5, %v2943_v49  ;;  %v3490_v55 = vunpack.c.l.bf16 %v3473_v40  ;;  %v6179_v6 = vld [vmem:[%s6849_s5] ss:$0 sm:$0xff] }
 0x1c6   : > { %v3219_v45 = vrot.slane %v3111_v42, 2  ;;  %v3222_v37 = vrot.slane %v3113_v61, 2  ;;  %v3036_v28 = vadd.f32 %v2944_v3, %v2759_v8  ;;  %v3415_v62 = vmul.f32 %v6088_v63, %v6152_v52 }
 0x1c7   : > { %v2946_v0 = vsel %vm2222_vm12, %v2943_v49, %v2945_v18  ;;  %v3416_v25 = vmul.f32 %v6088_v63, %v6154_v22  ;;  %v3522_v10 = vmul.f32 %v6096_v26, %v6152_v52  ;;  %v3523_v21 = vmul.f32 %v6096_v26, %v6154_v22 }
 0x1c8   : > { %v3037_v7 = vadd.f32 %v2946_v0, %v2760_v16  ;;  %v3221_v30 = vsel %vm2500_vm13, %v3219_v45, %v3220_v2  ;;  %v3223_v9 = vsel %vm2500_vm13, %v3220_v2, %v3222_v37  ;;  %v3524_v54 = vmul.f32 %v6096_v26, %v3490_v55 }
 0x1c9   : > { %v3313_v11 = vadd.f32 %v3221_v30, %v3036_v28  ;;  %v3767_v41 = vunpack.c.l.bf16 %v3750_v57  ;;  %v3630_v14 = vrot.slane %v3522_v10, 1  ;;  %v3800_v48 = vmul.f32 %v6105_v15, %v6154_v22 }
 0x1ca   : > { %v3314_v53 = vadd.f32 %v3223_v9, %v3037_v7  ;;  %v3801_v50 = vmul.f32 %v6105_v15, %v3490_v55  ;;  %v3631_v36 = vrot.slane %v3523_v21, 1  ;;  %v3633_v35 = vrot.slane %v3524_v54, 1  ;;  %v6190_v55 = vld [vmem:[%s6849_s5 + $0x2] ss:$0 sm:$0xff] }
 0x1cb   : > { %v3447_v60 = vadd.f32 %v3415_v62, %v3313_v11  ;;  %v3799_v32 = vmul.f32 %v6105_v15, %v3767_v41  ;;  %v3908_v33 = vrot.slane %v3800_v48, 2  ;;  %v2035_v38 = vunpack.c.l.bf16 %v2002_v13 }
 0x1cc   : > { %v3448_v23 = vadd.f32 %v3416_v25, %v3314_v53  ;;  %v3910_v34 = vrot.slane %v3801_v50, 2  ;;  %v3632_v39 = vsel %vm2222_vm12, %v3630_v14, %v3631_v36  ;;  %v3634_v8 = vsel %vm2222_vm12, %v3631_v36, %v3633_v35  ;;  %v2786_v53 = vld [vmem:[#allocation3 + $0x68] sm:$0x1]  ;;  %v3063_v36 = vld [vmem:[#allocation3 + $0x60] sm:$0xe] }
 0x1cd   : > { %v3907_v43 = vrot.slane %v3799_v32, 2  ;;  %v2036_v51 = vunpack.c.h.bf16 %v2002_v13  ;;  %v3724_v44 = vadd.f32 %v3632_v39, %v3447_v60  ;;  %v2071_v46 = vmul.f32 %v6179_v6, %v2035_v38 }
 0x1ce   : > { %v3725_v58 = vadd.f32 %v3634_v8, %v3448_v23  ;;  %v3911_v16 = vsel %vm2500_vm13, %v3908_v33, %v3910_v34  ;;  %v2113_v49 = vunpack.c.l.bf16 %v2096_v19  ;;  %v2147_v42 = vmul.f32 %v6120_v29, %v2035_v38 }
 0x1cf   : > { %v3909_v40 = vsel %vm2500_vm13, %v3907_v43, %v3908_v33  ;;  %v2072_v5 = vmul.f32 %v6179_v6, %v2036_v51  ;;  %v2148_v2 = vmul.f32 %v6120_v29, %v2036_v51  ;;  %v2391_v3 = vunpack.c.l.bf16 %v2374_v4 }
 0x1d0   : > { %v4001_v61 = vadd.f32 %v3909_v40, %v3724_v44  ;;  %v4002_v18 = vadd.f32 %v3911_v16, %v3725_v58  ;;  %v2149_v45 = vmul.f32 %v6120_v29, %v2113_v49  ;;  %v2258_v37 = vrot.slane %v2147_v42, 1  ;;  %v3348_v44 = vld [vmem:[#allocation3 + $0x6c] sm:$0xff]  }
 0x1d1   : > { %v2426_v57 = vmul.f32 %v6190_v55, %v2036_v51  ;;  %v2427_v0 = vmul.f32 %v6190_v55, %v2113_v49  ;;  %v2259_v25 = vrot.slane %v2148_v2, 1  ;;  %v2425_v7 = vmul.f32 %v6190_v55, %v2391_v3 }
 0x1d2   : > { %v4040_v28 = vadd.f32 %v6134_v1, %v4001_v61  ;;  %v4041_v62 = vadd.f32 %v6134_v1, %v4002_v18  ;;  %v2261_v30 = vrot.slane %v2149_v45, 1  ;;  %v2729_v11 = vmul.f32 %v6053_v12, %v6152_v52 }
 0x1d3   : > { %v2537_v9 = vrot.slane %v2426_v57, 2  ;;  %v2539_v10 = vrot.slane %v2427_v0, 2  ;;  %v2260_v41 = vsel %vm2222_vm12, %v2258_v37, %v2259_v25  ;;  %v2536_v13 = vrot.slane %v2425_v7, 2 }
 0x1d4   : > { %v4072_v21 = vmax.f32 %v4040_v28, 0.0  ;;  %v4073_v54 = vmax.f32 %v4041_v62, 0.0  ;;  %v2262_v14 = vsel %vm2222_vm12, %v2259_v25, %v2261_v30  ;;  %v2349_v48 = vadd.f32 %v2260_v41, %v2071_v46  ;;  %v3751_v25 = vld [vmem:[#allocation3 + $0x6c] sm:$0xe] }
 0x1d5   : > { %v2540_v50 = vsel %vm2500_vm13, %v2537_v9, %v2539_v10  ;;  %v2730_v60 = vmul.f32 %v6053_v12, %v6154_v22  ;;  %v2350_v23 = vadd.f32 %v2262_v14, %v2072_v5  ;;  %v2538_v33 = vsel %vm2500_vm13, %v2536_v13, %v2537_v9  ;;  %v3474_v5 = vld [vmem:[#allocation3 + $0x74] sm:$0x1] }
 0x1d6   : > { %v4104_v35 = vmin.f32 %v4072_v21, 6.0  ;;  %v4105_v32 = vmin.f32 %v4073_v54, 6.0  ;;  %v2627_v34 = vadd.f32 %v2538_v33, %v2349_v48  ;;  %v2803_v38 = vunpack.c.l.bf16 %v2786_v53 }
 0x1d7   : > { %v2837_v19 = vmul.f32 %v6066_v31, %v6152_v52  ;;  %v2838_v39 = vmul.f32 %v6066_v31, %v6154_v22  ;;  %v2628_v43 = vadd.f32 %v2540_v50, %v2350_v23  ;;  %v3080_v51 = vunpack.c.l.bf16 %v3063_v36 }
 0x1d8   : > { %v4130_v8 = vpack.c.bf16 %v4105_v32, %v4104_v35  ;;  %v3115_v4 = vmul.f32 %v6076_v47, %v6154_v22  ;;  %v2761_v58 = vadd.f32 %v2729_v11, %v2627_v34  ;;  %v2839_v16 = vmul.f32 %v6066_v31, %v2803_v38 }
 0x1d9   : > { %v2947_v46 = vrot.slane %v2837_v19, 1  ;;  %v2948_v40 = vrot.slane %v2838_v39, 1  ;;  %v2762_v49 = vadd.f32 %v2730_v60, %v2628_v43  ;;  %v3114_v42 = vmul.f32 %v6076_v47, %v3080_v51  ;;  %v2375_v51 = vld [vmem:[#allocation3 + $0x60] sm:$0xe] }
 0x1da   : > { %5128 = vmatprep.mubr.msk.bf16.mxu1 %vm4155_vm14, %v4130_v8  ;;  %v3116_v61 = vmul.f32 %v6076_v47, %v2803_v38  ;;  %v3225_v18 = vrot.slane %v3115_v4, 2  ;;  %v2950_v3 = vrot.slane %v2839_v16, 1  ;;  %v3381_v45 = vunpack.c.l.bf16 %v3348_v44  ;;  %v2097_v38 = vld [vmem:[#allocation3 + $0x68] sm:$0x1] }
 0x1db   : > { %v2949_v2 = vsel %vm2222_vm12, %v2947_v46, %v2948_v40  ;;  %v3382_v37 = vunpack.c.h.bf16 %v3348_v44  ;;  %v3224_v0 = vrot.slane %v3114_v42, 2  ;;  %v3491_v62 = vunpack.c.l.bf16 %v3474_v5 }
 0x1dc   : > { %v3038_v57 = vadd.f32 %v2949_v2, %v2761_v58  ;;  %v3227_v28 = vrot.slane %v3116_v61, 2  ;;  %v2951_v7 = vsel %vm2222_vm12, %v2948_v40, %v2950_v3  ;;  %v3417_v30 = vmul.f32 %v6088_v63, %v3381_v45  ;;  %v2662_v3 = vld [vmem:[#allocation3 + $0x6c] sm:$0xff]  }
 0x1dd   : > { %v3418_v9 = vmul.f32 %v6088_v63, %v3382_v37  ;;  %v3525_v10 = vmul.f32 %v6096_v26, %v3381_v45  ;;  %v3039_v11 = vadd.f32 %v2951_v7, %v2762_v49  ;;  %v3226_v21 = vsel %vm2500_vm13, %v3224_v0, %v3225_v18 }
 0x1de   : > { %v3228_v54 = vsel %vm2500_vm13, %v3225_v18, %v3227_v28  ;;  %v3526_v41 = vmul.f32 %v6096_v26, %v3382_v37  ;;  %v3315_v13 = vadd.f32 %v3226_v21, %v3038_v57  ;;  %v3527_v53 = vmul.f32 %v6096_v26, %v3491_v62 }
 0x1df   : > { %v3635_v14 = vrot.slane %v3525_v10, 1  ;;  %v3768_v48 = vunpack.c.l.bf16 %v3751_v25  ;;  %v3316_v50 = vadd.f32 %v3228_v54, %v3039_v11  ;;  %v3803_v36 = vmul.f32 %v6105_v15, %v3382_v37 }
 0x1e0   : > { %v3636_v60 = vrot.slane %v3526_v41, 1  ;;  %v3804_v35 = vmul.f32 %v6105_v15, %v3491_v62  ;;  %v3449_v32 = vadd.f32 %v3417_v30, %v3315_v13  ;;  %v3638_v23 = vrot.slane %v3527_v53, 1 }
 0x1e1   : > { %v3802_v33 = vmul.f32 %v6105_v15, %v3768_v48  ;;  %v2073_v34 = vmul.f32 %v6179_v6, %v6152_v52  ;;  %v3450_v19 = vadd.f32 %v3418_v9, %v3316_v50  ;;  %v3913_v8 = vrot.slane %v3803_v36, 2  ;;  %v2787_v48 = vld [vmem:[#allocation3 + $0x74] sm:$0x1] }
 0x1e2   : > { %v3637_v39 = vsel %vm2222_vm12, %v3635_v14, %v3636_v60  ;;  %v3915_v43 = vrot.slane %v3804_v35, 2  ;;  %v3639_v4 = vsel %vm2222_vm12, %v3636_v60, %v3638_v23  ;;  %v2074_v16 = vmul.f32 %v6179_v6, %v6154_v22 }
 0x1e3   : > { %v3726_v44 = vadd.f32 %v3637_v39, %v3449_v32  ;;  %v3912_v58 = vrot.slane %v3802_v33, 2  ;;  %v3727_v46 = vadd.f32 %v3639_v4, %v3450_v19  ;;  %v2114_v5 = vunpack.c.l.bf16 %v2097_v38  ;;  %v3064_v32 = vld [vmem:[#allocation3 + $0x6c] sm:$0xe] }
 0x1e4   : > { %v3916_v40 = vsel %vm2500_vm13, %v3913_v8, %v3915_v43  ;;  %v2150_v49 = vmul.f32 %v6120_v29, %v6152_v52  ;;  %v2151_v61 = vmul.f32 %v6120_v29, %v6154_v22  ;;  %v2392_v18 = vunpack.c.l.bf16 %v2375_v51  ;;  %v5021_v51 = vld [vmem:[#allocation3 + $0x78] sm:$0xff]  }
 0x1e5   : > { %v3914_v42 = vsel %vm2500_vm13, %v3912_v58, %v3913_v8  ;;  %v2429_v2 = vmul.f32 %v6190_v55, %v6154_v22  ;;  %v4004_v37 = vadd.f32 %v3916_v40, %v3727_v46  ;;  %v2152_v57 = vmul.f32 %v6120_v29, %v2114_v5  ;;  %v3475_v46 = vld [vmem:[#allocation3 + $0x80] sm:$0x1] }
 0x1e6   : > { %v4003_v45 = vadd.f32 %v3914_v42, %v3726_v44  ;;  %v2263_v0 = vrot.slane %v2150_v49, 1  ;;  %v2264_v28 = vrot.slane %v2151_v61, 1  ;;  %v2428_v62 = vmul.f32 %v6190_v55, %v2392_v18 }
 0x1e7   : > { %v2430_v52 = vmul.f32 %v6190_v55, %v2114_v5  ;;  %v2542_v25 = vrot.slane %v2429_v2, 2  ;;  %v4043_v30 = vadd.f32 %v6134_v1, %v4004_v37  ;;  %v2266_v9 = vrot.slane %v2152_v57, 1 }
 0x1e8   : > { %v4042_v7 = vadd.f32 %v6134_v1, %v4003_v45  ;;  %v2695_v10 = vunpack.c.l.bf16 %v2662_v3  ;;  %v2265_v22 = vsel %vm2222_vm12, %v2263_v0, %v2264_v28  ;;  %v2541_v11 = vrot.slane %v2428_v62, 2 }
 0x1e9   : > { %v2544_v21 = vrot.slane %v2430_v52, 2  ;;  %v2696_v54 = vunpack.c.h.bf16 %v2662_v3  ;;  %v4075_v13 = vmax.f32 %v4043_v30, 0.0  ;;  %v2267_v53 = vsel %vm2222_vm12, %v2264_v28, %v2266_v9 }
 0x1ea   : > { %v4074_v41 = vmax.f32 %v4042_v7, 0.0  ;;  %v2351_v14 = vadd.f32 %v2265_v22, %v2073_v34  ;;  %v2352_v50 = vadd.f32 %v2267_v53, %v2074_v16  ;;  %v2543_v60 = vsel %vm2500_vm13, %v2541_v11, %v2542_v25  ;;  %v3752_v7 = vld [vmem:[#allocation3 + $0x78] sm:$0xe] }
 0x1eb   : > { %v2545_v36 = vsel %vm2500_vm13, %v2542_v25, %v2544_v21  ;;  %v2731_v35 = vmul.f32 %v6053_v12, %v2695_v10  ;;  %v4107_v33 = vmin.f32 %v4075_v13, 6.0  ;;  %v2732_v19 = vmul.f32 %v6053_v12, %v2696_v54  ;;  %v2006_v13 = vld [vmem:[#allocation3 + $0x6c] sm:$0xff]  }
 0x1ec   : > { %v4106_v23 = vmin.f32 %v4074_v41, 6.0  ;;  %v2629_v38 = vadd.f32 %v2543_v60, %v2351_v14  ;;  %v2630_v39 = vadd.f32 %v2545_v36, %v2352_v50  ;;  %v2804_v8 = vunpack.c.l.bf16 %v2787_v48 }
 0x1ed   : > { %v2840_v43 = vmul.f32 %v6066_v31, %v2695_v10  ;;  %v2841_v34 = vmul.f32 %v6066_v31, %v2696_v54  ;;  %v3081_v58 = vunpack.c.l.bf16 %v3064_v32  ;;  %v3118_v16 = vmul.f32 %v6076_v47, %v2696_v54 }
 0x1ee   : > { %v4131_v4 = vpack.c.bf16 %v4107_v33, %v4106_v23  ;;  %v2763_v44 = vadd.f32 %v2731_v35, %v2629_v38  ;;  %v2764_v40 = vadd.f32 %v2732_v19, %v2630_v39  ;;  %v2842_v5 = vmul.f32 %v6066_v31, %v2804_v8  ;;  %v2098_v39 = vld [vmem:[#allocation3 + $0x74] sm:$0x1] }
 0x1ef   : > { %v2952_v49 = vrot.slane %v2840_v43, 1  ;;  %v2953_v42 = vrot.slane %v2841_v34, 1  ;;  %v3117_v61 = vmul.f32 %v6076_v47, %v3081_v58  ;;  %v3119_v18 = vmul.f32 %v6076_v47, %v2804_v8 }
 0x1f0   : > { %5129 = vmatmul.mubr.msk.bf16.gmra.mxu1 %vm4155_vm14, %v4131_v4  ;;  %v3230_v2 = vrot.slane %v3118_v16, 2  ;;  %v6259_v3 = vunpack.c.l.bf16 %v5021_v51  ;;  %v2955_v37 = vrot.slane %v2842_v5, 1  ;;  %v6262_v57 = vunpack.c.h.bf16 %v5021_v51  ;;  %v2376_v4 = vld [vmem:[#allocation3 + $0x6c] sm:$0xe] }
 0x1f1   : > { %v2954_v45 = vsel %vm2222_vm12, %v2952_v49, %v2953_v42  ;;  %v3492_v0 = vunpack.c.l.bf16 %v3475_v46  ;;  %v3229_v62 = vrot.slane %v3117_v61, 2  ;;  %v3232_v52 = vrot.slane %v3119_v18, 2 }
 0x1f2   : > { %v3040_v28 = vadd.f32 %v2954_v45, %v2763_v44  ;;  %v3419_v25 = vmul.f32 %v6088_v63, %v6259_v3  ;;  %v2956_v30 = vsel %vm2222_vm12, %v2953_v42, %v2955_v37  ;;  %v3420_v9 = vmul.f32 %v6088_v63, %v6262_v57 }
 0x1f3   : > { %v3528_v10 = vmul.f32 %v6096_v26, %v6259_v3  ;;  %v3529_v22 = vmul.f32 %v6096_v26, %v6262_v57  ;;  %v3041_v11 = vadd.f32 %v2956_v30, %v2764_v40  ;;  %v3231_v21 = vsel %vm2500_vm13, %v3229_v62, %v3230_v2 }
 0x1f4   : > { %v3233_v54 = vsel %vm2500_vm13, %v3230_v2, %v3232_v52  ;;  %v3530_v41 = vmul.f32 %v6096_v26, %v3492_v0  ;;  %v3317_v53 = vadd.f32 %v3231_v21, %v3040_v28  ;;  %v3769_v50 = vunpack.c.l.bf16 %v3752_v7 }
 0x1f5   : > { %v3640_v14 = vrot.slane %v3528_v10, 1  ;;  %v3641_v48 = vrot.slane %v3529_v22, 1  ;;  %v3318_v60 = vadd.f32 %v3233_v54, %v3041_v11  ;;  %v3806_v35 = vmul.f32 %v6105_v15, %v6262_v57 }
 0x1f6   : > { %v3643_v36 = vrot.slane %v3530_v41, 1  ;;  %v3807_v32 = vmul.f32 %v6105_v15, %v3492_v0  ;;  %v3451_v23 = vadd.f32 %v3419_v25, %v3317_v53  ;;  %v3805_v38 = vmul.f32 %v6105_v15, %v3769_v50  ;;  %v2788_v53 = vld [vmem:[#allocation3 + $0x80] sm:$0x1] }
 0x1f7   : > { %v3642_v33 = vsel %vm2222_vm12, %v3640_v14, %v3641_v48  ;;  %v2039_v19 = vunpack.c.l.bf16 %v2006_v13  ;;  %v3452_v8 = vadd.f32 %v3420_v9, %v3318_v60  ;;  %v3918_v34 = vrot.slane %v3806_v35, 2 }
 0x1f8   : > { %v3644_v43 = vsel %vm2222_vm12, %v3641_v48, %v3643_v36  ;;  %v3920_v51 = vrot.slane %v3807_v32, 2  ;;  %v3728_v44 = vadd.f32 %v3642_v33, %v3451_v23  ;;  %v3917_v58 = vrot.slane %v3805_v38, 2  ;;  %v3065_v36 = vld [vmem:[#allocation3 + $0x78] sm:$0xe] }
 0x1f9   : > { %v2040_v16 = vunpack.c.h.bf16 %v2006_v13  ;;  %v2075_v46 = vmul.f32 %v6179_v6, %v2039_v19  ;;  %v3729_v40 = vadd.f32 %v3644_v43, %v3452_v8  ;;  %v2115_v49 = vunpack.c.l.bf16 %v2098_v39 }
 0x1fa   : > { %v3921_v5 = vsel %vm2500_vm13, %v3918_v34, %v3920_v51  ;;  %v2153_v42 = vmul.f32 %v6120_v29, %v2039_v19  ;;  %v3919_v61 = vsel %vm2500_vm13, %v3917_v58, %v3918_v34  ;;  %v2393_v45 = vunpack.c.l.bf16 %v2376_v4 }
 0x1fb   : > { %v2076_v18 = vmul.f32 %v6179_v6, %v2040_v16  ;;  %v2154_v2 = vmul.f32 %v6120_v29, %v2040_v16  ;;  %v4005_v37 = vadd.f32 %v3919_v61, %v3728_v44  ;;  %v4006_v0 = vadd.f32 %v3921_v5, %v3729_v40  ;;  %v3352_v44 = vld [vmem:[#allocation3 + $0x84] sm:$0xff]   ;;  %v3476_v5 = vld [vmem:[#allocation3 + $0x8c] sm:$0x1] }
 0x1fc   : > { %v2155_v28 = vmul.f32 %v6120_v29, %v2115_v49  ;;  %v2268_v62 = vrot.slane %v2153_v42, 1  ;;  %v2431_v25 = vmul.f32 %v6190_v55, %v2393_v45  ;;  %v2432_v7 = vmul.f32 %v6190_v55, %v2040_v16 }
 0x1fd   : > { %v2269_v52 = vrot.slane %v2154_v2, 1  ;;  %v2433_v30 = vmul.f32 %v6190_v55, %v2115_v49  ;;  %v4044_v9 = vadd.f32 %v6134_v1, %v4005_v37  ;;  %v4045_v10 = vadd.f32 %v6134_v1, %v4006_v0 }
 0x1fe   : > { %v2271_v22 = vrot.slane %v2155_v28, 1  ;;  %v2733_v11 = vmul.f32 %v6053_v12, %v6259_v3  ;;  %v2546_v54 = vrot.slane %v2431_v25, 2  ;;  %v2547_v41 = vrot.slane %v2432_v7, 2 }
 0x1ff   : > { %v2270_v21 = vsel %vm2222_vm12, %v2268_v62, %v2269_v52  ;;  %v2549_v13 = vrot.slane %v2433_v30, 2  ;;  %v4076_v14 = vmax.f32 %v4044_v9, 0.0  ;;  %v4077_v48 = vmax.f32 %v4045_v10, 0.0 }
 0x200   : > { %v2272_v50 = vsel %vm2222_vm12, %v2269_v52, %v2271_v22  ;;  %v2353_v60 = vadd.f32 %v2270_v21, %v2075_v46  ;;  %v2548_v32 = vsel %vm2500_vm13, %v2546_v54, %v2547_v41  ;;  %v2734_v33 = vmul.f32 %v6053_v12, %v6262_v57  ;;  %v3753_v22 = vld [vmem:[#allocation3 + $0x84] sm:$0xe] }
 0x201   : > { %v2354_v35 = vadd.f32 %v2272_v50, %v2076_v18  ;;  %v2550_v23 = vsel %vm2500_vm13, %v2547_v41, %v2549_v13  ;;  %v4108_v38 = vmin.f32 %v4076_v14, 6.0  ;;  %v4109_v19 = vmin.f32 %v4077_v48, 6.0 }
 0x202   : > { %v2631_v39 = vadd.f32 %v2548_v32, %v2353_v60  ;;  %v2805_v8 = vunpack.c.l.bf16 %v2788_v53  ;;  %v2843_v34 = vmul.f32 %v6066_v31, %v6259_v3  ;;  %v2844_v51 = vmul.f32 %v6066_v31, %v6262_v57 }
 0x203   : > { %v2632_v43 = vadd.f32 %v2550_v23, %v2354_v35  ;;  %v3082_v4 = vunpack.c.l.bf16 %v3065_v36  ;;  %v4132_v58 = vpack.c.bf16 %v4109_v19, %v4108_v38  ;;  %v3121_v40 = vmul.f32 %v6076_v47, %v6262_v57  ;;  %v2099_v19 = vld [vmem:[#allocation3 + $0x80] sm:$0x1] }
 0x204   : > { %v2765_v16 = vadd.f32 %v2733_v11, %v2631_v39  ;;  %v2845_v46 = vmul.f32 %v6066_v31, %v2805_v8  ;;  %v2957_v42 = vrot.slane %v2843_v34, 1  ;;  %v2958_v61 = vrot.slane %v2844_v51, 1  ;;  %v2377_v51 = vld [vmem:[#allocation3 + $0x78] sm:$0xe] }
 0x205   : > { %v2766_v49 = vadd.f32 %v2734_v33, %v2632_v43  ;;  %v3120_v18 = vmul.f32 %v6076_v47, %v3082_v4  ;;  %5132 = vmatprep.mubr.msk.bf16.mxu1 %vm4155_vm14, %v4132_v58  ;;  %v3122_v45 = vmul.f32 %v6076_v47, %v2805_v8  ;;  %v3235_v37 = vrot.slane %v3121_v40, 2 }
 0x206   : > { %v2960_v2 = vrot.slane %v2845_v46, 1  ;;  %v3385_v0 = vunpack.c.l.bf16 %v3352_v44  ;;  %v2959_v28 = vsel %vm2222_vm12, %v2957_v42, %v2958_v61  ;;  %v3386_v52 = vunpack.c.h.bf16 %v3352_v44 }
 0x207   : > { %v3234_v62 = vrot.slane %v3120_v18, 2  ;;  %v3493_v25 = vunpack.c.l.bf16 %v3476_v5  ;;  %v3042_v30 = vadd.f32 %v2959_v28, %v2765_v16  ;;  %v3237_v9 = vrot.slane %v3122_v45, 2 }
 0x208   : > { %v2961_v7 = vsel %vm2222_vm12, %v2958_v61, %v2960_v2  ;;  %v3421_v10 = vmul.f32 %v6088_v63, %v3385_v0  ;;  %v3422_v54 = vmul.f32 %v6088_v63, %v3386_v52  ;;  %v3531_v41 = vmul.f32 %v6096_v26, %v3385_v0 }
 0x209   : > { %v3043_v11 = vadd.f32 %v2961_v7, %v2766_v49  ;;  %v3236_v21 = vsel %vm2500_vm13, %v3234_v62, %v3235_v37  ;;  %v3238_v13 = vsel %vm2500_vm13, %v3235_v37, %v3237_v9  ;;  %v3532_v14 = vmul.f32 %v6096_v26, %v3386_v52  ;;  %v2666_v62 = vld [vmem:[#allocation3 + $0x84] sm:$0xff]  }
 0x20a   : > { %v3319_v53 = vadd.f32 %v3236_v21, %v3042_v30  ;;  %v3533_v48 = vmul.f32 %v6096_v26, %v3493_v25  ;;  %v3645_v60 = vrot.slane %v3531_v41, 1  ;;  %v3770_v36 = vunpack.c.l.bf16 %v3753_v22 }
 0x20b   : > { %v3320_v50 = vadd.f32 %v3238_v13, %v3043_v11  ;;  %v3809_v35 = vmul.f32 %v6105_v15, %v3386_v52  ;;  %v3646_v23 = vrot.slane %v3532_v14, 1  ;;  %v3810_v38 = vmul.f32 %v6105_v15, %v3493_v25 }
 0x20c   : > { %v3453_v32 = vadd.f32 %v3421_v10, %v3319_v53  ;;  %v3648_v33 = vrot.slane %v3533_v48, 1  ;;  %v3808_v8 = vmul.f32 %v6105_v15, %v3770_v36  ;;  %v2077_v34 = vmul.f32 %v6179_v6, %v6259_v3  ;;  %v2789_v48 = vld [vmem:[#allocation3 + $0x8c] sm:$0x1] }
 0x20d   : > { %v3454_v39 = vadd.f32 %v3422_v54, %v3320_v50  ;;  %v3923_v43 = vrot.slane %v3809_v35, 2  ;;  %v3647_v4 = vsel %vm2222_vm12, %v3645_v60, %v3646_v23  ;;  %v3925_v58 = vrot.slane %v3810_v38, 2 }
 0x20e   : > { %v3649_v44 = vsel %vm2222_vm12, %v3646_v23, %v3648_v33  ;;  %v2078_v16 = vmul.f32 %v6179_v6, %v6262_v57  ;;  %v3730_v46 = vadd.f32 %v3647_v4, %v3453_v32  ;;  %v3922_v5 = vrot.slane %v3808_v8, 2  ;;  %v3066_v32 = vld [vmem:[#allocation3 + $0x84] sm:$0xe] }
 0x20f   : > { %v3731_v40 = vadd.f32 %v3649_v44, %v3454_v39  ;;  %v2116_v49 = vunpack.c.l.bf16 %v2099_v19  ;;  %v3926_v42 = vsel %vm2500_vm13, %v3923_v43, %v3925_v58  ;;  %v2156_v61 = vmul.f32 %v6120_v29, %v6259_v3 }
 0x210   : > { %v2157_v18 = vmul.f32 %v6120_v29, %v6262_v57  ;;  %v2394_v2 = vunpack.c.l.bf16 %v2377_v51  ;;  %v3924_v45 = vsel %vm2500_vm13, %v3922_v5, %v3923_v43  ;;  %v2435_v28 = vmul.f32 %v6190_v55, %v6262_v57 }
 0x211   : > { %v4008_v37 = vadd.f32 %v3926_v42, %v3731_v40  ;;  %v2158_v0 = vmul.f32 %v6120_v29, %v2116_v49  ;;  %v4007_v52 = vadd.f32 %v3924_v45, %v3730_v46  ;;  %v2273_v25 = vrot.slane %v2156_v61, 1  ;;  %v3477_v42 = vld [vmem:[#allocation3 + $0x98] sm:$0x1] }
 0x212   : > { %v2274_v7 = vrot.slane %v2157_v18, 1  ;;  %v2434_v30 = vmul.f32 %v6190_v55, %v2394_v2  ;;  %v2436_v10 = vmul.f32 %v6190_v55, %v2116_v49  ;;  %v2552_v22 = vrot.slane %v2435_v28, 2 }
 0x213   : > { %v4047_v3 = vadd.f32 %v6134_v1, %v4008_v37  ;;  %v2276_v9 = vrot.slane %v2158_v0, 1  ;;  %v4046_v11 = vadd.f32 %v6134_v1, %v4007_v52  ;;  %v2699_v41 = vunpack.c.l.bf16 %v2666_v62 }
 0x214   : > { %v2275_v21 = vsel %vm2222_vm12, %v2273_v25, %v2274_v7  ;;  %v2551_v54 = vrot.slane %v2434_v30, 2  ;;  %v2554_v14 = vrot.slane %v2436_v10, 2  ;;  %v2700_v35 = vunpack.c.h.bf16 %v2666_v62 }
 0x215   : > { %v4079_v13 = vmax.f32 %v4047_v3, 0.0  ;;  %v2277_v57 = vsel %vm2222_vm12, %v2274_v7, %v2276_v9  ;;  %v2355_v53 = vadd.f32 %v2275_v21, %v2077_v34  ;;  %v4078_v50 = vmax.f32 %v4046_v11, 0.0  ;;  %v3754_v7 = vld [vmem:[#allocation3 + $0x90] sm:$0xe] }
 0x216   : > { %v2356_v60 = vadd.f32 %v2277_v57, %v2078_v16  ;;  %v2553_v36 = vsel %vm2500_vm13, %v2551_v54, %v2552_v22  ;;  %v2555_v33 = vsel %vm2500_vm13, %v2552_v22, %v2554_v14  ;;  %v2735_v19 = vmul.f32 %v6053_v12, %v2699_v41  ;;  %v5022_v16 = vld [vmem:[#allocation3 + $0x90] sm:$0xff]  }
 0x217   : > { %v4111_v23 = vmin.f32 %v4079_v13, 6.0  ;;  %v2633_v38 = vadd.f32 %v2553_v36, %v2355_v53  ;;  %v4110_v39 = vmin.f32 %v4078_v50, 6.0  ;;  %v2736_v43 = vmul.f32 %v6053_v12, %v2700_v35  ;;  %v2010_v53 = vld [vmem:[#allocation3 + $0x84] sm:$0xff]  }
 0x218   : > { %v2634_v8 = vadd.f32 %v2555_v33, %v2356_v60  ;;  %v2806_v51 = vunpack.c.l.bf16 %v2789_v48  ;;  %v2846_v4 = vmul.f32 %v6066_v31, %v2699_v41  ;;  %v2847_v44 = vmul.f32 %v6066_v31, %v2700_v35 }
 0x219   : > { %v2767_v34 = vadd.f32 %v2735_v19, %v2633_v38  ;;  %v3083_v58 = vunpack.c.l.bf16 %v3066_v32  ;;  %v4133_v46 = vpack.c.bf16 %v4111_v23, %v4110_v39  ;;  %v3124_v49 = vmul.f32 %v6076_v47, %v2700_v35  ;;  %v2100_v39 = vld [vmem:[#allocation3 + $0x8c] sm:$0x1] }
 0x21a   : > { %v2768_v40 = vadd.f32 %v2736_v43, %v2634_v8  ;;  %v2848_v5 = vmul.f32 %v6066_v31, %v2806_v51  ;;  %v2962_v61 = vrot.slane %v2846_v4, 1  ;;  %v2963_v18 = vrot.slane %v2847_v44, 1 }
 0x21b   : > { %v3123_v2 = vmul.f32 %v6076_v47, %v3083_v58  ;;  %v3125_v12 = vmul.f32 %v6076_v47, %v2806_v51  ;;  %5133 = vmatmul.mubr.msk.bf16.gmra.mxu1 %vm4155_vm14, %v4133_v46  ;;  %v3240_v37 = vrot.slane %v3124_v49, 2  ;;  %v6356_v0 = vunpack.c.l.bf16 %v5022_v16 }
 0x21c   : > { %v2965_v45 = vrot.slane %v2848_v5, 1  ;;  %v6358_v28 = vunpack.c.h.bf16 %v5022_v16  ;;  %v2964_v62 = vsel %vm2222_vm12, %v2962_v61, %v2963_v18  ;;  %v3494_v25 = vunpack.c.l.bf16 %v3477_v42 }
 0x21d   : > { %v3239_v31 = vrot.slane %v3123_v2, 2  ;;  %v3242_v52 = vrot.slane %v3125_v12, 2  ;;  %v3044_v3 = vadd.f32 %v2964_v62, %v2767_v34  ;;  %v3423_v47 = vmul.f32 %v6088_v63, %v6356_v0  ;;  %v2378_v34 = vld [vmem:[#allocation3 + $0x84] sm:$0xe] }
 0x21e   : > { %v2966_v30 = vsel %vm2222_vm12, %v2963_v18, %v2965_v45  ;;  %v3424_v9 = vmul.f32 %v6088_v63, %v6358_v28  ;;  %v3534_v21 = vmul.f32 %v6096_v26, %v6356_v0  ;;  %v3535_v41 = vmul.f32 %v6096_v26, %v6358_v28 }
 0x21f   : > { %v3045_v10 = vadd.f32 %v2966_v30, %v2768_v40  ;;  %v3241_v22 = vsel %vm2500_vm13, %v3239_v31, %v3240_v37  ;;  %v3243_v11 = vsel %vm2500_vm13, %v3240_v37, %v3242_v52  ;;  %v3536_v13 = vmul.f32 %v6096_v26, %v3494_v25 }
 0x220   : > { %v3321_v54 = vadd.f32 %v3241_v22, %v3044_v3  ;;  %v3771_v57 = vunpack.c.l.bf16 %v3754_v7  ;;  %v3650_v48 = vrot.slane %v3534_v21, 1  ;;  %v3812_v63 = vmul.f32 %v6105_v15, %v6358_v28 }
 0x221   : > { %v3322_v14 = vadd.f32 %v3243_v11, %v3045_v10  ;;  %v3813_v50 = vmul.f32 %v6105_v15, %v3494_v25  ;;  %v3651_v36 = vrot.slane %v3535_v41, 1  ;;  %v3653_v35 = vrot.slane %v3536_v13, 1 }
 0x222   : > { %v3455_v60 = vadd.f32 %v3423_v47, %v3321_v54  ;;  %v3811_v32 = vmul.f32 %v6105_v15, %v3771_v57  ;;  %v3928_v33 = vrot.slane %v3812_v63, 2  ;;  %v2043_v19 = vunpack.c.l.bf16 %v2010_v53  ;;  %v6394_v47 = vld [vmem:[%s6849_s5 + $0x3] ss:$0 sm:$0xff] }
 0x223   : > { %v3456_v23 = vadd.f32 %v3424_v9, %v3322_v14  ;;  %v3930_v38 = vrot.slane %v3813_v50, 2  ;;  %v3652_v26 = vsel %vm2222_vm12, %v3650_v48, %v3651_v36  ;;  %v3654_v8 = vsel %vm2222_vm12, %v3651_v36, %v3653_v35  ;;  %v3067_v57 = vld [vmem:[#allocation3 + $0x90] sm:$0xe]  ;;  %v6407_v36 = vld [vmem:[%s6849_s5 + $0x4] ss:$0 sm:$0xff] }
 0x224   : > { %v3927_v43 = vrot.slane %v3811_v32, 2  ;;  %v2044_v51 = vunpack.c.h.bf16 %v2010_v53  ;;  %v3732_v4 = vadd.f32 %v3652_v26, %v3455_v60  ;;  %v2079_v16 = vmul.f32 %v6179_v6, %v2043_v19  ;;  %v3356_v26 = vld [vmem:[#allocation3 + $0x9c] sm:$0xff]  }
 0x225   : > { %v3733_v44 = vadd.f32 %v3654_v8, %v3456_v23  ;;  %v3931_v58 = vsel %vm2500_vm13, %v3928_v33, %v3930_v38  ;;  %v2117_v40 = vunpack.c.l.bf16 %v2100_v39  ;;  %v2159_v5 = vmul.f32 %v6120_v29, %v2043_v19  ;;  %v6416_v19 = vld [vmem:[%s6849_s5 + $0x5] ss:$0 sm:$0xff] }
 0x226   : > { %v3929_v15 = vsel %vm2500_vm13, %v3927_v43, %v3928_v33  ;;  %v2080_v46 = vmul.f32 %v6179_v6, %v2044_v51  ;;  %v2160_v61 = vmul.f32 %v6120_v29, %v2044_v51  ;;  %v2395_v18 = vunpack.c.l.bf16 %v2378_v34 }
 0x227   : > { %v4009_v49 = vadd.f32 %v3929_v15, %v3732_v4  ;;  %v4010_v42 = vadd.f32 %v3931_v58, %v3733_v44  ;;  %v2161_v2 = vmul.f32 %v6120_v29, %v2117_v40  ;;  %v2278_v12 = vrot.slane %v2159_v5, 1  ;;  %v3478_v4 = vld [vmem:[#allocation3 + $0xa4] sm:$0x1] }
 0x228   : > { %v2438_v45 = vmul.f32 %v6190_v55, %v2044_v51  ;;  %v2439_v37 = vmul.f32 %v6190_v55, %v2117_v40  ;;  %v2279_v52 = vrot.slane %v2160_v61, 1  ;;  %v2437_v25 = vmul.f32 %v6190_v55, %v2395_v18 }
 0x229   : > { %v4048_v62 = vadd.f32 %v6134_v1, %v4009_v49  ;;  %v4049_v31 = vadd.f32 %v6134_v1, %v4010_v42  ;;  %v2281_v7 = vrot.slane %v2161_v2, 1  ;;  %v2737_v29 = vmul.f32 %v6394_v47, %v6356_v0  ;;  %v2790_v1 = vld [vmem:[#allocation3 + $0x98] sm:$0x1] }
 0x22a   : > { %v2557_v30 = vrot.slane %v2438_v45, 2  ;;  %v2559_v3 = vrot.slane %v2439_v37, 2  ;;  %v2280_v22 = vsel %vm2222_vm12, %v2278_v12, %v2279_v52  ;;  %v2556_v11 = vrot.slane %v2437_v25, 2  ;;  %v3755_v12 = vld [vmem:[#allocation3 + $0x9c] sm:$0xe] }
 0x22b   : > { %v4080_v9 = vmax.f32 %v4048_v62, 0.0  ;;  %v4081_v10 = vmax.f32 %v4049_v31, 0.0  ;;  %v2282_v21 = vsel %vm2222_vm12, %v2279_v52, %v2281_v7  ;;  %v2357_v54 = vadd.f32 %v2280_v22, %v2079_v16  ;;  %v6429_v37 = vld [vmem:[%s6849_s5 + $0x6] ss:$0 sm:$0xff]  ;;  %v6436_v52 = vld [vmem:[%s6849_s5 + $0x7] ss:$0 sm:$0xff] }
 0x22c   : > { %v2560_v41 = vsel %vm2500_vm13, %v2557_v30, %v2559_v3  ;;  %v2738_v13 = vmul.f32 %v6394_v47, %v6358_v28  ;;  %v2358_v48 = vadd.f32 %v2282_v21, %v2080_v46  ;;  %v2558_v63 = vsel %vm2500_vm13, %v2556_v11, %v2557_v30 }
 0x22d   : > { %v4112_v53 = vmin.f32 %v4080_v9, 6.0  ;;  %v4113_v14 = vmin.f32 %v4081_v10, 6.0  ;;  %v2635_v50 = vadd.f32 %v2558_v63, %v2357_v54  ;;  %v2807_v60 = vunpack.c.l.bf16 %v2790_v1  ;;  %v6446_v54 = vld [vmem:[%s6849_s5 + $0x8] ss:$0 sm:$0xff] }
 0x22e   : > { %v2849_v35 = vmul.f32 %v6407_v36, %v6356_v0  ;;  %v2850_v32 = vmul.f32 %v6407_v36, %v6358_v28  ;;  %v2636_v33 = vadd.f32 %v2560_v41, %v2358_v48  ;;  %v3084_v38 = vunpack.c.l.bf16 %v3067_v57  ;;  %v2101_v63 = vld [vmem:[#allocation3 + $0x98] sm:$0x1] }
 0x22f   : > { %v4134_v23 = vpack.c.bf16 %v4113_v14, %v4112_v53  ;;  %v3127_v39 = vmul.f32 %v6416_v19, %v6358_v28  ;;  %v2769_v8 = vadd.f32 %v2737_v29, %v2635_v50  ;;  %v2851_v43 = vmul.f32 %v6407_v36, %v2807_v60 }
 0x230   : > { %v2967_v51 = vrot.slane %v2849_v35, 1  ;;  %v2968_v34 = vrot.slane %v2850_v32, 1  ;;  %v2770_v44 = vadd.f32 %v2738_v13, %v2636_v33  ;;  %v3126_v58 = vmul.f32 %v6416_v19, %v3084_v38 }
 0x231   : > { %5136 = vmatprep.mubr.msk.bf16.mxu1 %vm4155_vm14, %v4134_v23  ;;  %v3128_v16 = vmul.f32 %v6416_v19, %v2807_v60  ;;  %v3245_v15 = vrot.slane %v3127_v39, 2  ;;  %v2970_v40 = vrot.slane %v2851_v43, 1  ;;  %v3389_v5 = vunpack.c.l.bf16 %v3356_v26  ;;  %v2379_v23 = vld [vmem:[#allocation3 + $0x90] sm:$0xe] }
 0x232   : > { %v2969_v46 = vsel %vm2222_vm12, %v2967_v51, %v2968_v34  ;;  %v3390_v49 = vunpack.c.h.bf16 %v3356_v26  ;;  %v3244_v61 = vrot.slane %v3126_v58, 2  ;;  %v3495_v2 = vunpack.c.l.bf16 %v3478_v4 }
 0x233   : > { %v3046_v42 = vadd.f32 %v2969_v46, %v2769_v8  ;;  %v3247_v18 = vrot.slane %v3128_v16, 2  ;;  %v2971_v45 = vsel %vm2222_vm12, %v2968_v34, %v2970_v40  ;;  %v3425_v62 = vmul.f32 %v6429_v37, %v3389_v5  ;;  %v6461_v34 = vld [vmem:[%s6849_s5 + $0x1] ss:$0 sm:$0xff] }
 0x234   : > { %v3426_v31 = vmul.f32 %v6429_v37, %v3390_v49  ;;  %v3537_v25 = vmul.f32 %v6436_v52, %v3389_v5  ;;  %v3047_v7 = vadd.f32 %v2971_v45, %v2770_v44  ;;  %v3246_v30 = vsel %vm2500_vm13, %v3244_v61, %v3245_v15 }
 0x235   : > { %v3248_v3 = vsel %vm2500_vm13, %v3245_v15, %v3247_v18  ;;  %v3538_v29 = vmul.f32 %v6436_v52, %v3390_v49  ;;  %v3323_v9 = vadd.f32 %v3246_v30, %v3046_v42  ;;  %v3539_v10 = vmul.f32 %v6436_v52, %v3495_v2  ;;  %v2670_v15 = vld [vmem:[#allocation3 + $0x9c] sm:$0xff]  }
 0x236   : > { %v3655_v22 = vrot.slane %v3537_v25, 1  ;;  %v3772_v11 = vunpack.c.l.bf16 %v3755_v12  ;;  %v3324_v1 = vadd.f32 %v3248_v3, %v3047_v7  ;;  %v3815_v41 = vmul.f32 %v6446_v54, %v3390_v49 }
 0x237   : > { %v3656_v21 = vrot.slane %v3538_v29, 1  ;;  %v3816_v13 = vmul.f32 %v6446_v54, %v3495_v2  ;;  %v3457_v57 = vadd.f32 %v3425_v62, %v3323_v9  ;;  %v3658_v53 = vrot.slane %v3539_v10, 1  ;;  %v6476_v2 = vld [vmem:[%s6850_s6] ss:$0 sm:$0xff]  ;;  %v2791_v10 = vld [vmem:[#allocation3 + $0xa4] sm:$0x1] }
 0x238   : > { %v3814_v14 = vmul.f32 %v6446_v54, %v3772_v11  ;;  %v2081_v48 = vmul.f32 %v6179_v6, %v6356_v0  ;;  %v3458_v50 = vadd.f32 %v3426_v31, %v3324_v1  ;;  %v3933_v35 = vrot.slane %v3815_v41, 2  ;;  %v3068_v41 = vld [vmem:[#allocation3 + $0x9c] sm:$0xe] }
 0x239   : > { %v3657_v60 = vsel %vm2222_vm12, %v3655_v22, %v3656_v21  ;;  %v3935_v32 = vrot.slane %v3816_v13, 2  ;;  %v3659_v33 = vsel %vm2222_vm12, %v3656_v21, %v3658_v53  ;;  %v2082_v26 = vmul.f32 %v6179_v6, %v6358_v28 }
 0x23a   : > { %v3734_v38 = vadd.f32 %v3657_v60, %v3457_v57  ;;  %v3932_v39 = vrot.slane %v3814_v14, 2  ;;  %v3735_v8 = vadd.f32 %v3659_v33, %v3458_v50  ;;  %v2118_v51 = vunpack.c.l.bf16 %v2101_v63 }
 0x23b   : > { %v3936_v43 = vsel %vm2500_vm13, %v3933_v35, %v3935_v32  ;;  %v2162_v4 = vmul.f32 %v6461_v34, %v6356_v0  ;;  %v2163_v58 = vmul.f32 %v6461_v34, %v6358_v28  ;;  %v2396_v16 = vunpack.c.l.bf16 %v2379_v23 }
 0x23c   : > { %v3934_v44 = vsel %vm2500_vm13, %v3932_v39, %v3933_v35  ;;  %v2441_v6 = vmul.f32 %v6190_v55, %v6358_v28  ;;  %v4012_v40 = vadd.f32 %v3936_v43, %v3735_v8  ;;  %v2164_v5 = vmul.f32 %v6461_v34, %v2118_v51  ;;  %v5023_v35 = vld [vmem:[#allocation3 + $0xa8] sm:$0xff]   ;;  %v3479_v39 = vld [vmem:[#allocation3 + $0xb0] sm:$0x1] }
 0x23d   : > { %v4011_v46 = vadd.f32 %v3934_v44, %v3734_v38  ;;  %v2283_v49 = vrot.slane %v2162_v4, 1  ;;  %v2284_v42 = vrot.slane %v2163_v58, 1  ;;  %v2440_v61 = vmul.f32 %v6190_v55, %v2396_v16 }
 0x23e   : > { %v2442_v0 = vmul.f32 %v6190_v55, %v2118_v51  ;;  %v2562_v18 = vrot.slane %v2441_v6, 2  ;;  %v4051_v28 = vadd.f32 %v6476_v2, %v4012_v40  ;;  %v2286_v45 = vrot.slane %v2164_v5, 1 }
 0x23f   : > { %v4050_v12 = vadd.f32 %v6476_v2, %v4011_v46  ;;  %v2703_v62 = vunpack.c.l.bf16 %v2670_v15  ;;  %v2285_v31 = vsel %vm2222_vm12, %v2283_v49, %v2284_v42  ;;  %v2561_v25 = vrot.slane %v2440_v61, 2 }
 0x240   : > { %v2564_v7 = vrot.slane %v2442_v0, 2  ;;  %v2704_v30 = vunpack.c.h.bf16 %v2670_v15  ;;  %v4083_v29 = vmax.f32 %v4051_v28, 0.0  ;;  %v2287_v55 = vsel %vm2222_vm12, %v2284_v42, %v2286_v45  ;;  %v3756_v0 = vld [vmem:[#allocation3 + $0xa8] sm:$0xe] }
 0x241   : > { %v4082_v3 = vmax.f32 %v4050_v12, 0.0  ;;  %v2359_v9 = vadd.f32 %v2285_v31, %v2081_v48  ;;  %v2360_v22 = vadd.f32 %v2287_v55, %v2082_v26  ;;  %v2563_v11 = vsel %vm2500_vm13, %v2561_v25, %v2562_v18 }
 0x242   : > { %v2565_v1 = vsel %vm2500_vm13, %v2562_v18, %v2564_v7  ;;  %v2739_v21 = vmul.f32 %v6394_v47, %v2703_v62  ;;  %v4115_v57 = vmin.f32 %v4083_v29, 6.0  ;;  %v2740_v14 = vmul.f32 %v6394_v47, %v2704_v30 }
 0x243   : > { %v4114_v13 = vmin.f32 %v4082_v3, 6.0  ;;  %v2637_v53 = vadd.f32 %v2563_v11, %v2359_v9  ;;  %v2638_v63 = vadd.f32 %v2565_v1, %v2360_v22  ;;  %v2808_v50 = vunpack.c.l.bf16 %v2791_v10 }
 0x244   : > { %v2852_v60 = vmul.f32 %v6407_v36, %v2703_v62  ;;  %v2853_v48 = vmul.f32 %v6407_v36, %v2704_v30  ;;  %v3085_v33 = vunpack.c.l.bf16 %v3068_v41  ;;  %v3130_v38 = vmul.f32 %v6416_v19, %v2704_v30  ;;  %v2014_v30 = vld [vmem:[#allocation3 + $0x9c] sm:$0xff]  }
 0x245   : > { %v4135_v32 = vpack.c.bf16 %v4115_v57, %v4114_v13  ;;  %v2771_v23 = vadd.f32 %v2739_v21, %v2637_v53  ;;  %v2772_v26 = vadd.f32 %v2740_v14, %v2638_v63  ;;  %v2854_v8 = vmul.f32 %v6407_v36, %v2808_v50  ;;  %v2102_v53 = vld [vmem:[#allocation3 + $0xa4] sm:$0x1] }
 0x246   : > { %v2972_v43 = vrot.slane %v2852_v60, 1  ;;  %v2973_v51 = vrot.slane %v2853_v48, 1  ;;  %v3129_v4 = vmul.f32 %v6416_v19, %v3085_v33  ;;  %v3131_v44 = vmul.f32 %v6416_v19, %v2808_v50  ;;  %v2380_v48 = vld [vmem:[#allocation3 + $0x9c] sm:$0xe]  ;;  %v6519_v33 = vld [vmem:[%s6849_s5] ss:$0 sm:$0xff] }
 0x247   : > { %5137 = vmatmul.mubr.msk.bf16.gmra.mxu1 %vm4155_vm14, %v4135_v32  ;;  %v3250_v58 = vrot.slane %v3130_v38, 2  ;;  %v6493_v16 = vunpack.c.l.bf16 %v5023_v35  ;;  %v2975_v15 = vrot.slane %v2854_v8, 1  ;;  %v6496_v46 = vunpack.c.h.bf16 %v5023_v35 }
 0x248   : > { %v2974_v6 = vsel %vm2222_vm12, %v2972_v43, %v2973_v51  ;;  %v3496_v40 = vunpack.c.l.bf16 %v3479_v39  ;;  %v3249_v49 = vrot.slane %v3129_v4, 2  ;;  %v3252_v42 = vrot.slane %v3131_v44, 2 }
 0x249   : > { %v3048_v5 = vadd.f32 %v2974_v6, %v2771_v23  ;;  %v3427_v61 = vmul.f32 %v6429_v37, %v6493_v16  ;;  %v2976_v18 = vsel %vm2222_vm12, %v2973_v51, %v2975_v15  ;;  %v3428_v12 = vmul.f32 %v6429_v37, %v6496_v46 }
 0x24a   : > { %v3540_v28 = vmul.f32 %v6436_v52, %v6493_v16  ;;  %v3541_v45 = vmul.f32 %v6436_v52, %v6496_v46  ;;  %v3049_v62 = vadd.f32 %v2976_v18, %v2772_v26  ;;  %v3251_v31 = vsel %vm2500_vm13, %v3249_v49, %v3250_v58 }
 0x24b   : > { %v3253_v25 = vsel %vm2500_vm13, %v3250_v58, %v3252_v42  ;;  %v3542_v7 = vmul.f32 %v6436_v52, %v3496_v40  ;;  %v3325_v3 = vadd.f32 %v3251_v31, %v3048_v5  ;;  %v3773_v9 = vunpack.c.l.bf16 %v3756_v0  ;;  %v6531_v42 = vld [vmem:[%s6849_s5 + $0x2] ss:$0 sm:$0xff] }
 0x24c   : > { %v3660_v29 = vrot.slane %v3540_v28, 1  ;;  %v3661_v55 = vrot.slane %v3541_v45, 1  ;;  %v3326_v10 = vadd.f32 %v3253_v25, %v3049_v62  ;;  %v3818_v11 = vmul.f32 %v6446_v54, %v6496_v46 }
 0x24d   : > { %v3663_v22 = vrot.slane %v3542_v7, 1  ;;  %v3819_v1 = vmul.f32 %v6446_v54, %v3496_v40  ;;  %v3459_v21 = vadd.f32 %v3427_v61, %v3325_v3  ;;  %v3817_v13 = vmul.f32 %v6446_v54, %v3773_v9  ;;  %v2792_v3 = vld [vmem:[#allocation3 + $0xb0] sm:$0x1] }
 0x24e   : > { %v3662_v41 = vsel %vm2222_vm12, %v3660_v29, %v3661_v55  ;;  %v2047_v57 = vunpack.c.l.bf16 %v2014_v30  ;;  %v3460_v14 = vadd.f32 %v3428_v12, %v3326_v10  ;;  %v3938_v50 = vrot.slane %v3818_v11, 2 }
 0x24f   : > { %v3664_v63 = vsel %vm2222_vm12, %v3661_v55, %v3663_v22  ;;  %v3940_v60 = vrot.slane %v3819_v1, 2  ;;  %v3736_v35 = vadd.f32 %v3662_v41, %v3459_v21  ;;  %v3937_v32 = vrot.slane %v3817_v13, 2  ;;  %v3069_v22 = vld [vmem:[#allocation3 + $0xa8] sm:$0xe] }
 0x250   : > { %v2048_v23 = vunpack.c.h.bf16 %v2014_v30  ;;  %v2083_v38 = vmul.f32 %v6519_v33, %v2047_v57  ;;  %v3737_v39 = vadd.f32 %v3664_v63, %v3460_v14  ;;  %v2119_v8 = vunpack.c.l.bf16 %v2102_v53 }
 0x251   : > { %v3941_v26 = vsel %vm2500_vm13, %v3938_v50, %v3940_v60  ;;  %v2165_v43 = vmul.f32 %v6461_v34, %v2047_v57  ;;  %v3939_v51 = vsel %vm2500_vm13, %v3937_v32, %v3938_v50  ;;  %v2397_v58 = vunpack.c.l.bf16 %v2380_v48 }
 0x252   : > { %v2084_v4 = vmul.f32 %v6519_v33, %v2048_v23  ;;  %v2166_v44 = vmul.f32 %v6461_v34, %v2048_v23  ;;  %v4013_v6 = vadd.f32 %v3939_v51, %v3736_v35  ;;  %v4014_v15 = vadd.f32 %v3941_v26, %v3737_v39  ;;  %v3360_v35 = vld [vmem:[#allocation3 + $0xb4] sm:$0xff]   ;;  %v3480_v26 = vld [vmem:[#allocation3 + $0xbc] sm:$0x1] }
 0x253   : > { %v2167_v40 = vmul.f32 %v6461_v34, %v2119_v8  ;;  %v2288_v5 = vrot.slane %v2165_v43, 1  ;;  %v2443_v61 = vmul.f32 %v6531_v42, %v2397_v58  ;;  %v2444_v0 = vmul.f32 %v6531_v42, %v2048_v23 }
 0x254   : > { %v2289_v49 = vrot.slane %v2166_v44, 1  ;;  %v2445_v18 = vmul.f32 %v6531_v42, %v2119_v8  ;;  %v4052_v12 = vadd.f32 %v6476_v2, %v4013_v6  ;;  %v4053_v28 = vadd.f32 %v6476_v2, %v4014_v15 }
 0x255   : > { %v2291_v45 = vrot.slane %v2167_v40, 1  ;;  %v2741_v62 = vmul.f32 %v6394_v47, %v6493_v16  ;;  %v2566_v25 = vrot.slane %v2443_v61, 2  ;;  %v2567_v7 = vrot.slane %v2444_v0, 2 }
 0x256   : > { %v2290_v31 = vsel %vm2222_vm12, %v2288_v5, %v2289_v49  ;;  %v2569_v30 = vrot.slane %v2445_v18, 2  ;;  %v4084_v29 = vmax.f32 %v4052_v12, 0.0  ;;  %v4085_v55 = vmax.f32 %v4053_v28, 0.0 }
 0x257   : > { %v2292_v9 = vsel %vm2222_vm12, %v2289_v49, %v2291_v45  ;;  %v2361_v10 = vadd.f32 %v2290_v31, %v2083_v38  ;;  %v2568_v1 = vsel %vm2500_vm13, %v2566_v25, %v2567_v7  ;;  %v2742_v41 = vmul.f32 %v6394_v47, %v6496_v46  ;;  %v3757_v45 = vld [vmem:[#allocation3 + $0xb4] sm:$0xe] }
 0x258   : > { %v2362_v11 = vadd.f32 %v2292_v9, %v2084_v4  ;;  %v2570_v21 = vsel %vm2500_vm13, %v2567_v7, %v2569_v30  ;;  %v4116_v13 = vmin.f32 %v4084_v29, 6.0  ;;  %v4117_v57 = vmin.f32 %v4085_v55, 6.0 }
 0x259   : > { %v2639_v53 = vadd.f32 %v2568_v1, %v2361_v10  ;;  %v2809_v14 = vunpack.c.l.bf16 %v2792_v3  ;;  %v2855_v50 = vmul.f32 %v6407_v36, %v6493_v16  ;;  %v2856_v60 = vmul.f32 %v6407_v36, %v6496_v46 }
 0x25a   : > { %v2640_v63 = vadd.f32 %v2570_v21, %v2362_v11  ;;  %v3086_v48 = vunpack.c.l.bf16 %v3069_v22  ;;  %v4136_v32 = vpack.c.bf16 %v4117_v57, %v4116_v13  ;;  %v3133_v39 = vmul.f32 %v6416_v19, %v6496_v46  ;;  %v2103_v57 = vld [vmem:[#allocation3 + $0xb0] sm:$0x1] }
 0x25b   : > { %v2773_v23 = vadd.f32 %v2741_v62, %v2639_v53  ;;  %v2857_v38 = vmul.f32 %v6407_v36, %v2809_v14  ;;  %v2977_v43 = vrot.slane %v2855_v50, 1  ;;  %v2978_v51 = vrot.slane %v2856_v60, 1  ;;  %v2381_v60 = vld [vmem:[#allocation3 + $0xa8] sm:$0xe] }
 0x25c   : > { %v2774_v8 = vadd.f32 %v2742_v41, %v2640_v63  ;;  %v3132_v4 = vmul.f32 %v6416_v19, %v3086_v48  ;;  %5140 = vmatprep.mubr.msk.bf16.mxu1 %vm4155_vm14, %v4136_v32  ;;  %v3134_v58 = vmul.f32 %v6416_v19, %v2809_v14  ;;  %v3255_v6 = vrot.slane %v3133_v39, 2 }
 0x25d   : > { %v2980_v44 = vrot.slane %v2857_v38, 1  ;;  %v3393_v15 = vunpack.c.l.bf16 %v3360_v35  ;;  %v2979_v40 = vsel %vm2222_vm12, %v2977_v43, %v2978_v51  ;;  %v3394_v49 = vunpack.c.h.bf16 %v3360_v35 }
 0x25e   : > { %v3254_v5 = vrot.slane %v3132_v4, 2  ;;  %v3497_v61 = vunpack.c.l.bf16 %v3480_v26  ;;  %v3050_v18 = vadd.f32 %v2979_v40, %v2773_v23  ;;  %v3257_v12 = vrot.slane %v3134_v58, 2 }
 0x25f   : > { %v2981_v0 = vsel %vm2222_vm12, %v2978_v51, %v2980_v44  ;;  %v3429_v28 = vmul.f32 %v6429_v37, %v3393_v15  ;;  %v3430_v25 = vmul.f32 %v6429_v37, %v3394_v49  ;;  %v3543_v7 = vmul.f32 %v6436_v52, %v3393_v15 }
 0x260   : > { %v3051_v62 = vadd.f32 %v2981_v0, %v2774_v8  ;;  %v3256_v31 = vsel %vm2500_vm13, %v3254_v5, %v3255_v6  ;;  %v3258_v30 = vsel %vm2500_vm13, %v3255_v6, %v3257_v12  ;;  %v3544_v29 = vmul.f32 %v6436_v52, %v3394_v49  ;;  %v2674_v5 = vld [vmem:[#allocation3 + $0xb4] sm:$0xff]  }
 0x261   : > { %v3327_v3 = vadd.f32 %v3256_v31, %v3050_v18  ;;  %v3545_v55 = vmul.f32 %v6436_v52, %v3497_v61  ;;  %v3665_v10 = vrot.slane %v3543_v7, 1  ;;  %v3774_v22 = vunpack.c.l.bf16 %v3757_v45 }
 0x262   : > { %v3328_v9 = vadd.f32 %v3258_v30, %v3051_v62  ;;  %v3821_v11 = vmul.f32 %v6446_v54, %v3394_v49  ;;  %v3666_v21 = vrot.slane %v3544_v29, 1  ;;  %v3822_v13 = vmul.f32 %v6446_v54, %v3497_v61 }
 0x263   : > { %v3461_v1 = vadd.f32 %v3429_v28, %v3327_v3  ;;  %v3668_v41 = vrot.slane %v3545_v55, 1  ;;  %v3820_v14 = vmul.f32 %v6446_v54, %v3774_v22  ;;  %v2085_v50 = vmul.f32 %v6519_v33, %v6493_v16  ;;  %v2793_v55 = vld [vmem:[#allocation3 + $0xbc] sm:$0x1] }
 0x264   : > { %v3462_v53 = vadd.f32 %v3430_v25, %v3328_v9  ;;  %v3943_v63 = vrot.slane %v3821_v11, 2  ;;  %v3667_v48 = vsel %vm2222_vm12, %v3665_v10, %v3666_v21  ;;  %v3945_v32 = vrot.slane %v3822_v13, 2 }
 0x265   : > { %v3669_v35 = vsel %vm2222_vm12, %v3666_v21, %v3668_v41  ;;  %v2086_v23 = vmul.f32 %v6519_v33, %v6496_v46  ;;  %v3738_v38 = vadd.f32 %v3667_v48, %v3461_v1  ;;  %v3942_v26 = vrot.slane %v3820_v14, 2  ;;  %v3070_v1 = vld [vmem:[#allocation3 + $0xb4] sm:$0xe] }
 0x266   : > { %v3739_v39 = vadd.f32 %v3669_v35, %v3462_v53  ;;  %v2120_v8 = vunpack.c.l.bf16 %v2103_v57  ;;  %v3946_v43 = vsel %vm2500_vm13, %v3943_v63, %v3945_v32  ;;  %v2168_v51 = vmul.f32 %v6461_v34, %v6493_v16 }
 0x267   : > { %v2169_v4 = vmul.f32 %v6461_v34, %v6496_v46  ;;  %v2398_v44 = vunpack.c.l.bf16 %v2381_v60  ;;  %v3944_v58 = vsel %vm2500_vm13, %v3942_v26, %v3943_v63  ;;  %v2447_v40 = vmul.f32 %v6531_v42, %v6496_v46 }
 0x268   : > { %v4016_v6 = vadd.f32 %v3946_v43, %v3739_v39  ;;  %v2170_v15 = vmul.f32 %v6461_v34, %v2120_v8  ;;  %v4015_v49 = vadd.f32 %v3944_v58, %v3738_v38  ;;  %v2293_v61 = vrot.slane %v2168_v51, 1  ;;  %v3481_v43 = vld [vmem:[#allocation3 + $0xc8] sm:$0x1] }
 0x269   : > { %v2294_v0 = vrot.slane %v2169_v4, 1  ;;  %v2446_v18 = vmul.f32 %v6531_v42, %v2398_v44  ;;  %v2448_v28 = vmul.f32 %v6531_v42, %v2120_v8  ;;  %v2572_v45 = vrot.slane %v2447_v40, 2 }
 0x26a   : > { %v4055_v16 = vadd.f32 %v6476_v2, %v4016_v6  ;;  %v2296_v12 = vrot.slane %v2170_v15, 1  ;;  %v4054_v62 = vadd.f32 %v6476_v2, %v4015_v49  ;;  %v2707_v7 = vunpack.c.l.bf16 %v2674_v5  ;;  %v6599_v6 = vpop.f32.mrf.mxu1 }
 0x26b   : > { %v2295_v31 = vsel %vm2222_vm12, %v2293_v61, %v2294_v0  ;;  %v2571_v25 = vrot.slane %v2446_v18, 2  ;;  %v2574_v29 = vrot.slane %v2448_v28, 2  ;;  %v2708_v11 = vunpack.c.h.bf16 %v2674_v5 }
 0x26c   : > { %v4087_v30 = vmax.f32 %v4055_v16, 0.0  ;;  %v2297_v46 = vsel %vm2222_vm12, %v2294_v0, %v2296_v12  ;;  %v2363_v3 = vadd.f32 %v2295_v31, %v2085_v50  ;;  %v4086_v9 = vmax.f32 %v4054_v62, 0.0  ;;  %v3758_v12 = vld [vmem:[#allocation3 + $0xc0] sm:$0xe] }
 0x26d   : > { %v2364_v10 = vadd.f32 %v2297_v46, %v2086_v23  ;;  %v2573_v22 = vsel %vm2500_vm13, %v2571_v25, %v2572_v45  ;;  %v2575_v41 = vsel %vm2500_vm13, %v2572_v45, %v2574_v29  ;;  %v2743_v57 = vmul.f32 %v6394_v47, %v2707_v7  ;;  %v5024_v23 = vld [vmem:[#allocation3 + $0xc0] sm:$0xff]  }
 0x26e   : > { %v4119_v21 = vmin.f32 %v4087_v30, 6.0  ;;  %v2641_v13 = vadd.f32 %v2573_v22, %v2363_v3  ;;  %v4118_v53 = vmin.f32 %v4086_v9, 6.0  ;;  %v2744_v63 = vmul.f32 %v6394_v47, %v2708_v11  ;;  %v6616_v3 = vpop.f32.mrf.mxu1  ;;  %v1330_v22 = vld [vmem:[#allocation3 + $0xcc] sm:$0x1] }
 0x26f   : > { %v2642_v14 = vadd.f32 %v2575_v41, %v2364_v10  ;;  %v2810_v60 = vunpack.c.l.bf16 %v2793_v55  ;;  %v2858_v48 = vmul.f32 %v6407_v36, %v2707_v7  ;;  %v2859_v35 = vmul.f32 %v6407_v36, %v2708_v11 }
 0x270   : > { %v2775_v50 = vadd.f32 %v2743_v57, %v2641_v13  ;;  %v3087_v32 = vunpack.c.l.bf16 %v3070_v1  ;;  %v4137_v38 = vpack.c.bf16 %v4119_v21, %v4118_v53  ;;  %v3136_v8 = vmul.f32 %v6416_v19, %v2708_v11  ;;  %v1386_v13 = vld [vmem:[#allocation3 + $0xd4] sm:$0x1] }
 0x271   : > { %v2776_v39 = vadd.f32 %v2744_v63, %v2642_v14  ;;  %v2860_v26 = vmul.f32 %v6407_v36, %v2810_v60  ;;  %v2982_v51 = vrot.slane %v2858_v48, 1  ;;  %v2983_v4 = vrot.slane %v2859_v35, 1 }
 0x272   : > { %v3135_v44 = vmul.f32 %v6416_v19, %v3087_v32  ;;  %v3137_v58 = vmul.f32 %v6416_v19, %v2810_v60  ;;  %5141 = vmatmul.mubr.msk.bf16.gmra.mxu1 %vm4155_vm14, %v4137_v38  ;;  %v3260_v40 = vrot.slane %v3136_v8, 2  ;;  %v6602_v5 = vunpack.c.l.bf16 %v5024_v23  ;;  %v2018_v60 = vld [vmem:[#allocation3 + $0xb4] sm:$0xff]   ;;  %v2104_v38 = vld [vmem:[#allocation3 + $0xbc] sm:$0x1] }
 0x273   : > { %v2985_v15 = vrot.slane %v2860_v26, 1  ;;  %v6604_v49 = vunpack.c.h.bf16 %v5024_v23  ;;  %v2984_v61 = vsel %vm2222_vm12, %v2982_v51, %v2983_v4  ;;  %v3498_v16 = vunpack.c.l.bf16 %v3481_v43 }
 0x274   : > { %v3259_v0 = vrot.slane %v3135_v44, 2  ;;  %v3262_v18 = vrot.slane %v3137_v58, 2  ;;  %v3052_v45 = vadd.f32 %v2984_v61, %v2775_v50  ;;  %v3431_v62 = vmul.f32 %v6429_v37, %v6602_v5  ;;  %v2382_v50 = vld [vmem:[#allocation3 + $0xb4] sm:$0xe] }
 0x275   : > { %v2986_v28 = vsel %vm2222_vm12, %v2983_v4, %v2985_v15  ;;  %v3432_v31 = vmul.f32 %v6429_v37, %v6604_v49  ;;  %v3546_v46 = vmul.f32 %v6436_v52, %v6602_v5  ;;  %v3547_v55 = vmul.f32 %v6436_v52, %v6604_v49 }
 0x276   : > { %v3053_v25 = vadd.f32 %v2986_v28, %v2776_v39  ;;  %v3261_v7 = vsel %vm2500_vm13, %v3259_v0, %v3260_v40  ;;  %v3263_v30 = vsel %vm2500_vm13, %v3260_v40, %v3262_v18  ;;  %v3548_v9 = vmul.f32 %v6436_v52, %v3498_v16  ;;  %v6627_v39 = vpop.f32.mrf.mxu1 }
 0x277   : > { %v3329_v29 = vadd.f32 %v3261_v7, %v3052_v45  ;;  %v3775_v10 = vunpack.c.l.bf16 %v3758_v12  ;;  %v3670_v1 = vrot.slane %v3546_v46, 1  ;;  %v3824_v21 = vmul.f32 %v6446_v54, %v6604_v49 }
 0x278   : > { %v3330_v11 = vadd.f32 %v3263_v30, %v3053_v25  ;;  %v3825_v41 = vmul.f32 %v6446_v54, %v3498_v16  ;;  %v3671_v53 = vrot.slane %v3547_v55, 1  ;;  %v3673_v14 = vrot.slane %v3548_v9, 1 }
 0x279   : > { %v3463_v57 = vadd.f32 %v3431_v62, %v3329_v29  ;;  %v3823_v63 = vmul.f32 %v6446_v54, %v3775_v10  ;;  %v3948_v35 = vrot.slane %v3824_v21, 2  ;;  %v1331_v23 = vsel %vm5419_vm5, 0, %v1330_v22  ;;  %v6637_v62 = vpop.f32.mrf.mxu1 }
 0x27a   : > { %v3464_v48 = vadd.f32 %v3432_v31, %v3330_v11  ;;  %v3950_v32 = vrot.slane %v3825_v41, 2  ;;  %v3672_v26 = vsel %vm2222_vm12, %v3670_v1, %v3671_v53  ;;  %v3674_v8 = vsel %vm2222_vm12, %v3671_v53, %v3673_v14  ;;  %1332 = vst [vmem:[#allocation3 + $0xcc] sm:$0x1] %v1331_v23  ;;  %v3071_v23 = vld [vmem:[#allocation3 + $0xc0] sm:$0xe] }
 0x27b   : > { %v3947_v43 = vrot.slane %v3823_v63, 2  ;;  %v1387_v51 = vsel %vm5426_vm7, 0, %v1386_v13  ;;  %v3740_v4 = vadd.f32 %v3672_v26, %v3463_v57  ;;  %v2051_v15 = vunpack.c.l.bf16 %v2018_v60  ;;  %v6649_v13 = vpop.f32.mrf.mxu1 }
 0x27c   : > { %v3741_v44 = vadd.f32 %v3674_v8, %v3464_v48  ;;  %v3951_v58 = vsel %vm2500_vm13, %v3948_v35, %v3950_v32  ;;  %1388 = vst [vmem:[#allocation3 + $0xd4] sm:$0x1] %v1387_v51  ;;  %v2052_v61 = vunpack.c.h.bf16 %v2018_v60  ;;  %v2121_v0 = vunpack.c.l.bf16 %v2104_v38  ;;  %v2794_v60 = vld [vmem:[#allocation3 + $0xc8] sm:$0x1] }
 0x27d   : > { %v3949_v40 = vsel %vm2500_vm13, %v3947_v43, %v3948_v35  ;;  %v2399_v18 = vunpack.c.l.bf16 %v2382_v50  ;;  %v2087_v28 = vmul.f32 %v6519_v33, %v2051_v15  ;;  %v2171_v45 = vmul.f32 %v6461_v34, %v2051_v15  ;;  %v6666_v20 = vpop.f32.mrf.mxu1  ;;  %v6678_v15 = vld [vmem:[%s5326_s21 + $0x8] sm:$0xff]  }
 0x27e   : > { %v4017_v16 = vadd.f32 %v3949_v40, %v3740_v4  ;;  %v4018_v12 = vadd.f32 %v3951_v58, %v3741_v44  ;;  %v2088_v59 = vmul.f32 %v6519_v33, %v2052_v61  ;;  %v2172_v31 = vmul.f32 %v6461_v34, %v2052_v61 }
 0x27f   : > { %v2173_v25 = vmul.f32 %v6461_v34, %v2121_v0  ;;  %v2449_v7 = vmul.f32 %v6531_v42, %v2399_v18  ;;  %v2298_v29 = vrot.slane %v2171_v45, 1  ;;  %v2450_v55 = vmul.f32 %v6531_v42, %v2052_v61  ;;  %v6684_v18 = vld [vmem:[%s5326_s21] sm:$0xff]  }
 0x280   : > { %v4056_v30 = vadd.f32 %v6476_v2, %v4017_v16  ;;  %v4057_v46 = vadd.f32 %v6476_v2, %v4018_v12  ;;  %v2299_v9 = vrot.slane %v2172_v31, 1  ;;  %v2451_v22 = vmul.f32 %v6531_v42, %v2121_v0 }
 0x281   : > { %v2301_v10 = vrot.slane %v2173_v25, 1  ;;  %v2576_v11 = vrot.slane %v2449_v7, 2  ;;  %v1981_v21 = vld [vmem:[#allocation3 + $0xcc] sm:$0xf]  ;;  %v2577_v41 = vrot.slane %v2450_v55, 2  ;;  %v2745_v34 = vmul.f32 %v6394_v47, %v6602_v5  ;;  %v6690_v7 = vpop.f32.mrf.mxu1 }
 0x282   : > { %v4088_v1 = vmax.f32 %v4056_v30, 0.0  ;;  %v4089_v33 = vmax.f32 %v4057_v46, 0.0  ;;  %v1982_v57 = vsel %vm5448_vm10, %v5459_v24, %v1981_v21  ;;  %v2300_v14 = vsel %vm2222_vm12, %v2298_v29, %v2299_v9 }
 0x283   : > { %v1985_v53 = vld [vmem:[#allocation3 + $0xd4] sm:$0x1]  ;;  %v2302_v63 = vsel %vm2222_vm12, %v2299_v9, %v2301_v10  ;;  %v2579_v42 = vrot.slane %v2451_v22, 2  ;;  %1983 = vst [vmem:[#allocation3 + $0xcc] sm:$0xf] %v1982_v57  ;;  %v2365_v32 = vadd.f32 %v2300_v14, %v2087_v28  ;;  %v2578_v24 = vsel %vm2500_vm13, %v2576_v11, %v2577_v41  ;;  %v4257_v14 = vpop.f32.mrf.mxu1 }
 0x284   : > { %v4120_v50 = vmin.f32 %v4088_v1, 6.0  ;;  %v4121_v48 = vmin.f32 %v4089_v33, 6.0  ;;  %v1986_v35 = vsel %vm5419_vm5, %v1515_v27, %v1985_v53  ;;  %v2366_v17 = vadd.f32 %v2302_v63, %v2088_v59 }
 0x285   : > { %1987 = vst [vmem:[#allocation3 + $0xd4] sm:$0x1] %v1986_v35  ;;  %v2580_v38 = vsel %vm2500_vm13, %v2577_v41, %v2579_v42  ;;  %v2746_v26 = vmul.f32 %v6394_v47, %v6604_v49  ;;  %v2643_v43 = vadd.f32 %v2578_v24, %v2365_v32  ;;  %v2811_v51 = vunpack.c.l.bf16 %v2794_v60  ;;  %v6675_v47 = vld [vmem:[%s6852_s8] ss:$0 sm:$0xff] }
 0x286   : > { %v4138_v8 = vpack.c.bf16 %v4121_v48, %v4120_v50  ;;  %v2861_v56 = vmul.f32 %v6407_v36, %v6602_v5  ;;  %v2644_v27 = vadd.f32 %v2580_v38, %v2366_v17  ;;  %v2862_v4 = vmul.f32 %v6407_v36, %v6604_v49 }
 0x287   : > { %v3088_v44 = vunpack.c.l.bf16 %v3071_v23  ;;  %v3139_v58 = vmul.f32 %v6416_v19, %v6604_v49  ;;  %v2777_v5 = vadd.f32 %v2745_v34, %v2643_v43  ;;  %v2863_v40 = vmul.f32 %v6407_v36, %v2811_v51 }
 0x288   : > { %5144 = vmatprep.mubr.msk.bf16.mxu1 %vm4155_vm14, %v4138_v8  ;;  %v2987_v61 = vrot.slane %v2861_v56, 1  ;;  %v3140_v0 = vmul.f32 %v6416_v19, %v2811_v51  ;;  %v2778_v16 = vadd.f32 %v2746_v26, %v2644_v27  ;;  %v2988_v12 = vrot.slane %v2862_v4, 1  ;;  %v5126_v56 = vpop.f32.mrf.mxu1 }
 0x289   : > { %v3138_v49 = vmul.f32 %v6416_v19, %v3088_v44  ;;  %v3265_v28 = vrot.slane %v3139_v58, 2  ;;  %v2990_v45 = vrot.slane %v2863_v40, 1  ;;  %v4247_v31 = vadd.f32 %v6599_v6, %v6675_v47 }
 0x28a   : > { %v3267_v59 = vrot.slane %v3140_v0, 2  ;;  %v4944_v25 = vunpack.c.l.bf16 %v6678_v15  ;;  %v2989_v36 = vsel %vm2222_vm12, %v2987_v61, %v2988_v12  ;;  %v3364_v46 = vld [vmem:[#allocation3 + $0xcc] sm:$0xff]   ;;  %v4239_v55 = vadd.f32 %v6675_v47, %v6616_v3 }
 0x28b   : > { %v3264_v30 = vrot.slane %v3138_v49, 2  ;;  %v3759_v29 = vld [vmem:[#allocation3 + $0xcc] sm:$0xe]  ;;  %v4940_v19 = vunpack.c.l.bf16 %v6684_v18  ;;  %v2991_v9 = vsel %vm2222_vm12, %v2988_v12, %v2990_v45  ;;  %v3054_v10 = vadd.f32 %v2989_v36, %v2777_v5  ;;  %v4270_v36 = vpop.f32.mrf.mxu1 }
 0x28c   : > { %v3268_v22 = vsel %vm2500_vm13, %v3265_v28, %v3267_v59  ;;  %v3397_v6 = vunpack.c.l.bf16 %v3364_v46  ;;  %v3482_v11 = vld [vmem:[#allocation3 + $0xd4] sm:$0x1]  ;;  %v3055_v1 = vadd.f32 %v2991_v9, %v2778_v16  ;;  %v3398_v21 = vunpack.c.h.bf16 %v3364_v46  ;;  %v5027_v49 = vld [vmem:[%s5326_s21 + $0x18] sm:$0xff]  }
 0x28d   : > { %v3266_v33 = vsel %vm2500_vm13, %v3264_v30, %v3265_v28  ;;  %v3499_v41 = vunpack.c.l.bf16 %v3482_v11  ;;  %v3776_v53 = vunpack.c.l.bf16 %v3759_v29  ;;  %v4367_v51 = vmax.f32 %v4247_v31, 0.0  ;;  %v5026_v31 = vld [vmem:[%s5326_s21 + $0x10] sm:$0xff]  }
 0x28e   : > { %v3331_v34 = vadd.f32 %v3266_v33, %v3054_v10  ;;  %v3433_v57 = vmul.f32 %v6429_v37, %v3397_v6  ;;  %v3549_v3 = vmul.f32 %v6436_v52, %v3397_v6  ;;  %v3332_v63 = vadd.f32 %v3268_v22, %v3055_v1 }
 0x28f   : > { %v3434_v42 = vmul.f32 %v6429_v37, %v3398_v21  ;;  %v3550_v60 = vmul.f32 %v6436_v52, %v3398_v21  ;;  %v3551_v50 = vmul.f32 %v6436_v52, %v3499_v41  ;;  %v3826_v32 = vmul.f32 %v6446_v54, %v3776_v53 }
 0x290   : > { %v3465_v48 = vadd.f32 %v3433_v57, %v3331_v34  ;;  %v3675_v35 = vrot.slane %v3549_v3, 1  ;;  %v3827_v23 = vmul.f32 %v6446_v54, %v3398_v21  ;;  %v3828_v26 = vmul.f32 %v6446_v54, %v3499_v41 }
 0x291   : > { %v3466_v17 = vadd.f32 %v3434_v42, %v3332_v63  ;;  %v3676_v24 = vrot.slane %v3550_v60, 1  ;;  %v3678_v38 = vrot.slane %v3551_v50, 1  ;;  %v3952_v8 = vrot.slane %v3826_v32, 2 }
 0x292   : > { %v3953_v43 = vrot.slane %v3827_v23, 2  ;;  %v4365_v37 = vmax.f32 %v4239_v55, 0.0  ;;  %v3955_v4 = vrot.slane %v3828_v26, 2  ;;  %v4250_v44 = vadd.f32 %v6627_v39, %v6675_v47  ;;  %v5028_v23 = vld [vmem:[%s5326_s21 + $0x20] sm:$0xff]  }
 0x293   : > { %v3677_v52 = vsel %vm2222_vm12, %v3675_v35, %v3676_v24  ;;  %v3679_v27 = vsel %vm2222_vm12, %v3676_v24, %v3678_v38  ;;  %v4399_v40 = vmin.f32 %v4367_v51, 6.0  ;;  %v4945_v12 = vunpack.c.h.bf16 %v6678_v15 }
 0x294   : > { %v3742_v58 = vadd.f32 %v3677_v52, %v3465_v48  ;;  %v3743_v5 = vadd.f32 %v3679_v27, %v3466_v17  ;;  %v3954_v54 = vsel %vm2500_vm13, %v3952_v8, %v3953_v43  ;;  %v3956_v61 = vsel %vm2500_vm13, %v3953_v43, %v3955_v4 }
 0x295   : > { %v4397_v0 = vmin.f32 %v4365_v37, 6.0  ;;  %v4368_v16 = vmax.f32 %v4250_v44, 0.0  ;;  %v4495_v45 = vadd.f32 %v4944_v25, %v4399_v40  ;;  %v4242_v59 = vadd.f32 %v6675_v47, %v6637_v62 }
 0x296   : > { %v4019_v39 = vadd.f32 %v3954_v54, %v3742_v58  ;;  %v4020_v28 = vadd.f32 %v3956_v61, %v3743_v5  ;;  %v4941_v29 = vunpack.c.h.bf16 %v6684_v18  ;;  %v4263_v55 = vadd.f32 %v6649_v13, %v6675_v47 }
 0x297   : > { %v4493_v30 = vadd.f32 %v4940_v19, %v4397_v0  ;;  %v4400_v46 = vmin.f32 %v4368_v16, 6.0  ;;  %4527 = vst.msk [vmem:[%s6716_s22 + $0x10] sm:$0xff] %vm709_vm2, %v4495_v45  ;;  %v4366_v25 = vmax.f32 %v4242_v59, 0.0  ;;  %v4952_v10 = vunpack.c.l.bf16 %v5027_v49  ;;  %v5031_v45 = vld [vmem:[%s5326_s21 + $0x38] sm:$0xff]  }
 0x298   : > { %v4058_v15 = vadd.f32 %v6476_v2, %v4019_v39  ;;  %v4059_v9 = vadd.f32 %v6476_v2, %v4020_v28  ;;  %v4371_v22 = vmax.f32 %v4263_v55, 0.0  ;;  %v4255_v19 = vadd.f32 %v6675_v47, %v6666_v20  ;;  %v5127_v2 = vpop.f32.mrf.mxu1 }
 0x299   : > { %4525 = vst.msk [vmem:[%s6716_s22] sm:$0xff] %vm709_vm2, %v4493_v30  ;;  %v4496_v62 = vadd.f32 %v4945_v12, %v4400_v46  ;;  %v4948_v18 = vunpack.c.l.bf16 %v5026_v31  ;;  %v4398_v13 = vmin.f32 %v4366_v25, 6.0  ;;  %v4266_v1 = vadd.f32 %v6690_v7, %v6675_v47  ;;  %v5029_v7 = vld [vmem:[%s5326_s21 + $0x28] sm:$0xff]  }
 0x29a   : > { %v4090_v6 = vmax.f32 %v4058_v15, 0.0  ;;  %v4091_v11 = vmax.f32 %v4059_v9, 0.0  ;;  %v4403_v33 = vmin.f32 %v4371_v22, 6.0  ;;  %v4369_v21 = vmax.f32 %v4255_v19, 0.0 }
 0x29b   : > { %4528 = vst.msk [vmem:[%s6716_s22 + $0x18] sm:$0xff] %vm709_vm2, %v4496_v62  ;;  %v4953_v41 = vunpack.c.h.bf16 %v5027_v49  ;;  %v4258_v34 = vadd.f32 %v6675_v47, %v4257_v14  ;;  %v4494_v3 = vadd.f32 %v4941_v29, %v4398_v13  ;;  %v4372_v53 = vmax.f32 %v4266_v1, 0.0  ;;  %v4273_v14 = vpop.f32.mrf.mxu1 }
 0x29c   : > { %v4122_v20 = vmin.f32 %v4090_v6, 6.0  ;;  %v4123_v57 = vmin.f32 %v4091_v11, 6.0  ;;  %v4499_v63 = vadd.f32 %v4952_v10, %v4403_v33  ;;  %v4401_v42 = vmin.f32 %v4369_v21, 6.0 }
 0x29d   : > { %v4370_v60 = vmax.f32 %v4258_v34, 0.0  ;;  %v4949_v50 = vunpack.c.h.bf16 %v5026_v31  ;;  %4526 = vst.msk [vmem:[%s6716_s22 + $0x8] sm:$0xff] %vm709_vm2, %v4494_v3  ;;  %v4404_v35 = vmin.f32 %v4372_v53, 6.0  ;;  %v4279_v32 = vadd.f32 %v5126_v56, %v6675_v47 }
 0x29e   : > { %v4139_v48 = vpack.c.bf16 %v4123_v57, %v4122_v20  ;;  %4531 = vst.msk [vmem:[%s6716_s22 + $0x30] sm:$0xff] %vm709_vm2, %v4499_v63  ;;  %v4497_v17 = vadd.f32 %v4948_v18, %v4401_v42  ;;  %v4271_v38 = vadd.f32 %v6675_v47, %v4270_v36  ;;  %v4960_v43 = vunpack.c.l.bf16 %v5029_v7  ;;  %v5030_v36 = vld [vmem:[%s5326_s21 + $0x30] sm:$0xff]   ;;  %v5033_v57 = vld [vmem:[%s5326_s21 + $0x48] sm:$0xff]   ;;  %v5032_v63 = vld [vmem:[%s5326_s21 + $0x40] sm:$0xff]  }
 0x29f   : > { %v4402_v24 = vmin.f32 %v4370_v60, 6.0  ;;  %v4500_v26 = vadd.f32 %v4953_v41, %v4404_v35  ;;  %v4375_v8 = vmax.f32 %v4279_v32, 0.0  ;;  %v4282_v51 = vadd.f32 %v5127_v2, %v6675_v47 }
 0x2a0   : > { %5145 = vmatmul.mubr.msk.bf16.gmra.mxu1 %vm4155_vm14, %v4139_v48  ;;  %4529 = vst.msk [vmem:[%s6716_s22 + $0x20] sm:$0xff] %vm709_vm2, %v4497_v17  ;;  %v4373_v56 = vmax.f32 %v4271_v38, 0.0  ;;  %v4956_v52 = vunpack.c.l.bf16 %v5028_v23  ;;  %v4274_v27 = vadd.f32 %v6675_v47, %v4273_v14  ;;  %v4961_v58 = vunpack.c.h.bf16 %v5029_v7 }
 0x2a1   : > { %v4498_v37 = vadd.f32 %v4949_v50, %v4402_v24  ;;  %4532 = vst.msk [vmem:[%s6716_s22 + $0x38] sm:$0xff] %vm709_vm2, %v4500_v26  ;;  %v4407_v4 = vmin.f32 %v4375_v8, 6.0  ;;  %v4376_v44 = vmax.f32 %v4282_v51, 0.0  ;;  %v4957_v40 = vunpack.c.h.bf16 %v5028_v23 }
 0x2a2   : > { %v4405_v5 = vmin.f32 %v4373_v56, 6.0  ;;  %v4374_v54 = vmax.f32 %v4274_v27, 0.0  ;;  %v4968_v46 = vunpack.c.l.bf16 %v5031_v45  ;;  %v4964_v25 = vunpack.c.l.bf16 %v5030_v36 }
 0x2a3   : > { %4530 = vst.msk [vmem:[%s6716_s22 + $0x28] sm:$0xff] %vm709_vm2, %v4498_v37  ;;  %v4503_v61 = vadd.f32 %v4960_v43, %v4407_v4  ;;  %v4408_v0 = vmin.f32 %v4376_v44, 6.0  ;;  %v4969_v62 = vunpack.c.h.bf16 %v5031_v45  ;;  %v4965_v33 = vunpack.c.h.bf16 %v5030_v36 }
 0x2a4   : > { %v4501_v16 = vadd.f32 %v4956_v52, %v4405_v5  ;;  %v4406_v12 = vmin.f32 %v4374_v54, 6.0  ;;  %v4976_v60 = vunpack.c.l.bf16 %v5033_v57  ;;  %v4972_v32 = vunpack.c.l.bf16 %v5032_v63 }
 0x2a5   : > { %4535 = vst.msk [vmem:[%s6716_s22 + $0x50] sm:$0xff] %vm709_vm2, %v4503_v61  ;;  %v4504_v49 = vadd.f32 %v4961_v58, %v4408_v0  ;;  %v4977_v14 = vunpack.c.h.bf16 %v5033_v57  ;;  %v4973_v56 = vunpack.c.h.bf16 %v5032_v63  ;;  %v5035_v58 = vld [vmem:[%s5326_s21 + $0x58] sm:$0xff]  }
 0x2a6   : > { %4533 = vst.msk [vmem:[%s6716_s22 + $0x40] sm:$0xff] %vm709_vm2, %v4501_v16  ;;  %v4502_v39 = vadd.f32 %v4957_v40, %v4406_v12  ;;  %v5034_v40 = vld [vmem:[%s5326_s21 + $0x50] sm:$0xff]   ;;  %v4984_v0 = vunpack.c.l.bf16 %v5035_v58 }
 0x2a7   : > { %4536 = vst.msk [vmem:[%s6716_s22 + $0x58] sm:$0xff] %vm709_vm2, %v4504_v49 }
 0x2a8   : > { %4534 = vst.msk [vmem:[%s6716_s22 + $0x48] sm:$0xff] %vm709_vm2, %v4502_v39 }
 0x2b0   : > { %v5130_v28 = vpop.f32.mrf.mxu1 }
 0x2b1   : > { %v4295_v59 = vadd.f32 %v5130_v28, %v6675_v47  ;;  %v4980_v28 = vunpack.c.l.bf16 %v5034_v40 }
 0x2b2   : > { %v4286_v31 = vpop.f32.mrf.mxu1 }
 0x2b3   : > { %v4379_v30 = vmax.f32 %v4295_v59, 0.0  ;;  %v4287_v29 = vadd.f32 %v6675_v47, %v4286_v31  ;;  %v4985_v59 = vunpack.c.h.bf16 %v5035_v58 }
 0x2b4   : > { %v5131_v55 = vpop.f32.mrf.mxu1 }
 0x2b5   : > { %v4411_v15 = vmin.f32 %v4379_v30, 6.0  ;;  %v4377_v9 = vmax.f32 %v4287_v29, 0.0  ;;  %v4298_v10 = vadd.f32 %v5131_v55, %v6675_v47 }
 0x2b6   : > { %v4289_v22 = vpop.f32.mrf.mxu1 }
 0x2b7   : > { %v4507_v19 = vadd.f32 %v4968_v46, %v4411_v15  ;;  %v4409_v18 = vmin.f32 %v4377_v9, 6.0  ;;  %v4380_v6 = vmax.f32 %v4298_v10, 0.0  ;;  %v4290_v11 = vadd.f32 %v6675_v47, %v4289_v22 }
 0x2b9   : > { %4539 = vst.msk [vmem:[%s6716_s22 + $0x70] sm:$0xff] %vm709_vm2, %v4507_v19  ;;  %v4505_v13 = vadd.f32 %v4964_v25, %v4409_v18  ;;  %v4412_v1 = vmin.f32 %v4380_v6, 6.0  ;;  %v4378_v2 = vmax.f32 %v4290_v11, 0.0  ;;  %v4981_v25 = vunpack.c.h.bf16 %v5034_v40  ;;  %v5037_v18 = vld [vmem:[%s5326_s21 + $0x68] sm:$0xff]  }
 0x2bb   : > { %4537 = vst.msk [vmem:[%s6716_s22 + $0x60] sm:$0xff] %vm709_vm2, %v4505_v13  ;;  %v4508_v21 = vadd.f32 %v4969_v62, %v4412_v1  ;;  %v4410_v41 = vmin.f32 %v4378_v2, 6.0  ;;  %v5036_v13 = vld [vmem:[%s5326_s21 + $0x60] sm:$0xff]   ;;  %v4992_v2 = vunpack.c.l.bf16 %v5037_v18 }
 0x2bd   : > { %4540 = vst.msk [vmem:[%s6716_s22 + $0x78] sm:$0xff] %vm709_vm2, %v4508_v21  ;;  %v4506_v34 = vadd.f32 %v4965_v33, %v4410_v41 }
 0x2bf   : > { %4538 = vst.msk [vmem:[%s6716_s22 + $0x68] sm:$0xff] %vm709_vm2, %v4506_v34 }
 0x2db   : > { %v5134_v20 = vpop.f32.mrf.mxu1 }
 0x2dc   : > { %v4311_v3 = vadd.f32 %v5134_v20, %v6675_v47  ;;  %v4988_v20 = vunpack.c.l.bf16 %v5036_v13 }
 0x2dd   : > { %v4302_v53 = vpop.f32.mrf.mxu1 }
 0x2de   : > { %v4383_v42 = vmax.f32 %v4311_v3, 0.0  ;;  %v4303_v50 = vadd.f32 %v6675_v47, %v4302_v53  ;;  %v4993_v3 = vunpack.c.h.bf16 %v5037_v18 }
 0x2df   : > { %v5135_v7 = vpop.f32.mrf.mxu1 }
 0x2e0   : > { %v4415_v48 = vmin.f32 %v4383_v42, 6.0  ;;  %v4381_v35 = vmax.f32 %v4303_v50, 0.0  ;;  %v4314_v23 = vadd.f32 %v5135_v7, %v6675_v47 }
 0x2e1   : > { %v4305_v17 = vpop.f32.mrf.mxu1 }
 0x2e2   : > { %v4511_v24 = vadd.f32 %v4976_v60, %v4415_v48  ;;  %v4413_v38 = vmin.f32 %v4381_v35, 6.0  ;;  %v4384_v26 = vmax.f32 %v4314_v23, 0.0  ;;  %v4306_v8 = vadd.f32 %v6675_v47, %v4305_v17 }
 0x2e4   : > { %4543 = vst.msk [vmem:[%s6716_s22 + $0x90] sm:$0xff] %vm709_vm2, %v4511_v24  ;;  %v4509_v43 = vadd.f32 %v4972_v32, %v4413_v38  ;;  %v4416_v51 = vmin.f32 %v4384_v26, 6.0  ;;  %v4382_v37 = vmax.f32 %v4306_v8, 0.0  ;;  %v4989_v32 = vunpack.c.h.bf16 %v5036_v13  ;;  %v5039_v38 = vld [vmem:[%s5326_s21 + $0x78] sm:$0xff]  }
 0x2e6   : > { %4541 = vst.msk [vmem:[%s6716_s22 + $0x80] sm:$0xff] %vm709_vm2, %v4509_v43  ;;  %v4512_v52 = vadd.f32 %v4977_v14, %v4416_v51  ;;  %v4414_v27 = vmin.f32 %v4382_v37, 6.0  ;;  %v5038_v43 = vld [vmem:[%s5326_s21 + $0x70] sm:$0xff]   ;;  %v5000_v37 = vunpack.c.l.bf16 %v5039_v38 }
 0x2e8   : > { %4544 = vst.msk [vmem:[%s6716_s22 + $0x98] sm:$0xff] %vm709_vm2, %v4512_v52  ;;  %v4510_v4 = vadd.f32 %v4973_v56, %v4414_v27 }
 0x2ea   : > { %4542 = vst.msk [vmem:[%s6716_s22 + $0x88] sm:$0xff] %vm709_vm2, %v4510_v4 }
 0x307   : > { %v5138_v44 = vpop.f32.mrf.mxu1 }
 0x308   : > { %v4327_v5 = vadd.f32 %v5138_v44, %v6675_v47  ;;  %v4996_v44 = vunpack.c.l.bf16 %v5038_v43 }
 0x309   : > { %v4318_v54 = vpop.f32.mrf.mxu1 }
 0x30a   : > { %v4387_v61 = vmax.f32 %v4327_v5, 0.0  ;;  %v4319_v16 = vadd.f32 %v6675_v47, %v4318_v54  ;;  %v5001_v5 = vunpack.c.h.bf16 %v5039_v38 }
 0x30b   : > { %v5139_v12 = vpop.f32.mrf.mxu1 }
 0x30c   : > { %v4419_v49 = vmin.f32 %v4387_v61, 6.0  ;;  %v4385_v39 = vmax.f32 %v4319_v16, 0.0  ;;  %v4330_v45 = vadd.f32 %v5139_v12, %v6675_v47 }
 0x30d   : > { %v4321_v31 = vpop.f32.mrf.mxu1 }
 0x30e   : > { %v4515_v36 = vadd.f32 %v4984_v0, %v4419_v49  ;;  %v4417_v30 = vmin.f32 %v4385_v39, 6.0  ;;  %v4388_v46 = vmax.f32 %v4330_v45, 0.0  ;;  %v4322_v29 = vadd.f32 %v6675_v47, %v4321_v31 }
 0x310   : > { %4547 = vst.msk [vmem:[%s6716_s22 + $0xb0] sm:$0xff] %vm709_vm2, %v4515_v36  ;;  %v4513_v55 = vadd.f32 %v4980_v28, %v4417_v30  ;;  %v4420_v15 = vmin.f32 %v4388_v46, 6.0  ;;  %v4386_v9 = vmax.f32 %v4322_v29, 0.0  ;;  %v4997_v28 = vunpack.c.h.bf16 %v5038_v43 }
 0x312   : > { %4545 = vst.msk [vmem:[%s6716_s22 + $0xa0] sm:$0xff] %vm709_vm2, %v4513_v55  ;;  %v4516_v10 = vadd.f32 %v4985_v59, %v4420_v15  ;;  %v4418_v62 = vmin.f32 %v4386_v9, 6.0 }
 0x314   : > { %4548 = vst.msk [vmem:[%s6716_s22 + $0xb8] sm:$0xff] %vm709_vm2, %v4516_v10  ;;  %v4514_v22 = vadd.f32 %v4981_v25, %v4418_v62 }
 0x316   : > { %4546 = vst.msk [vmem:[%s6716_s22 + $0xa8] sm:$0xff] %vm709_vm2, %v4514_v22 }
 0x332   : > { %v5142_v19 = vpop.f32.mrf.mxu1 }
 0x333   : > { %v4343_v6 = vadd.f32 %v5142_v19, %v6675_v47 }
 0x334   : > { %v4334_v11 = vpop.f32.mrf.mxu1 }
 0x335   : > { %v4391_v1 = vmax.f32 %v4343_v6, 0.0  ;;  %v4335_v33 = vadd.f32 %v6675_v47, %v4334_v11 }
 0x336   : > { %v5143_v21 = vpop.f32.mrf.mxu1 }
 0x337   : > { %v4423_v41 = vmin.f32 %v4391_v1, 6.0  ;;  %v4389_v34 = vmax.f32 %v4335_v33, 0.0  ;;  %v4346_v57 = vadd.f32 %v5143_v21, %v6675_v47 }
 0x338   : > { %v4337_v53 = vpop.f32.mrf.mxu1 }
 0x339   : > { %v4519_v63 = vadd.f32 %v4992_v2, %v4423_v41  ;;  %v4421_v42 = vmin.f32 %v4389_v34, 6.0  ;;  %v4392_v60 = vmax.f32 %v4346_v57, 0.0  ;;  %v4338_v50 = vadd.f32 %v6675_v47, %v4337_v53 }
 0x33b   : > { %4551 = vst.msk [vmem:[%s6716_s22 + $0xd0] sm:$0xff] %vm709_vm2, %v4519_v63  ;;  %v4517_v7 = vadd.f32 %v4988_v20, %v4421_v42  ;;  %v4424_v48 = vmin.f32 %v4392_v60, 6.0  ;;  %v4390_v35 = vmax.f32 %v4338_v50, 0.0 }
 0x33d   : > { %4549 = vst.msk [vmem:[%s6716_s22 + $0xc0] sm:$0xff] %vm709_vm2, %v4517_v7  ;;  %v4520_v23 = vadd.f32 %v4993_v3, %v4424_v48  ;;  %v4422_v14 = vmin.f32 %v4390_v35, 6.0 }
 0x33f   : > { %4552 = vst.msk [vmem:[%s6716_s22 + $0xd8] sm:$0xff] %vm709_vm2, %v4520_v23  ;;  %v4518_v17 = vadd.f32 %v4989_v32, %v4422_v14 }
 0x341   : > { %4550 = vst.msk [vmem:[%s6716_s22 + $0xc8] sm:$0xff] %vm709_vm2, %v4518_v17 }
 0x360   : > { %v5146_v24 = vpop.f32.mrf.mxu1 }
 0x361   : > { %v4359_v26 = vadd.f32 %v5146_v24, %v6675_v47 }
 0x362   : > { %v4350_v8 = vpop.f32.mrf.mxu1 }
 0x363   : > { %v4395_v51 = vmax.f32 %v4359_v26, 0.0  ;;  %v4351_v56 = vadd.f32 %v6675_v47, %v4350_v8 }
 0x364   : > { %v5147_v52 = vpop.f32.mrf.mxu1 }
 0x365   : > { %v4427_v27 = vmin.f32 %v4395_v51, 6.0  ;;  %v4393_v4 = vmax.f32 %v4351_v56, 0.0  ;;  %v4362_v58 = vadd.f32 %v5147_v52, %v6675_v47 }
 0x366   : > { %v4353_v54 = vpop.f32.mrf.mxu1 }
 0x367   : > { %v4523_v40 = vadd.f32 %v5000_v37, %v4427_v27  ;;  %v4425_v61 = vmin.f32 %v4393_v4, 6.0  ;;  %v4396_v0 = vmax.f32 %v4362_v58, 0.0  ;;  %v4354_v16 = vadd.f32 %v6675_v47, %v4353_v54 }
 0x369   : > { %4555 = vst.msk [vmem:[%s6716_s22 + $0xf0] sm:$0xff] %vm709_vm2, %v4523_v40  ;;  %v4521_v12 = vadd.f32 %v4996_v44, %v4425_v61  ;;  %v4428_v49 = vmin.f32 %v4396_v0, 6.0  ;;  %v4394_v39 = vmax.f32 %v4354_v16, 0.0 }
 0x36b   : > { %4553 = vst.msk [vmem:[%s6716_s22 + $0xe0] sm:$0xff] %vm709_vm2, %v4521_v12  ;;  %v4524_v45 = vadd.f32 %v5001_v5, %v4428_v49  ;;  %v4426_v59 = vmin.f32 %v4394_v39, 6.0 }
 0x36d   : > { %4556 = vst.msk [vmem:[%s6716_s22 + $0xf8] sm:$0xff] %vm709_vm2, %v4524_v45  ;;  %v4522_v31 = vadd.f32 %v4997_v28, %v4426_v59 }
 0x36f   : > { %4554 = vst.msk [vmem:[%s6716_s22 + $0xe8] sm:$0xff] %vm709_vm2, %v4522_v31 }
 0x370 PF: > { %s19_s11 = sadd.s32 1, %s5239_s11   ;;  %s6862_s30 = smov %s5235_s10 }
 0x371   : > { %p16_p5 = scmp.ge.s32.totalorder %s19_s11, 4   ;;  %s6863_s10 = smov %s6865_s12 }
 0x373   :  { %18 = sbr.rel (!%p16_p5) target bundleno = 2 (0x2), region = 96 }

</bundles_post_ra>
